<compile_context>
chip_gen: v6e
topology: v6e:2x2x1
jax: 0.10.0
libtpu: 0.0.40
codegen_flags: <defaults>
</compile_context>

<pallas_src>
import functools

import jax
import jax.numpy as jnp
import numpy as np
from jax.experimental import pallas as pl
from jax.experimental.pallas import tpu as pltpu


GATE_LANE = 128   # each GRU gate (r, z, n) owns its own 128-lane block
ROWS = 8          # batch is padded to a full sublane tile


def _round_up(x, m):
    return ((x + m - 1) // m) * m


# ----------------------------------------------------------------------------
# Pallas kernel
# ----------------------------------------------------------------------------
def _seq2seq_kernel(enc_ref, w1_ref, b1_ref, w1wi_ref, bi_ref, wh_ref, bh_ref,
                    wd_ref, bd_ref, out_ref, *, rows, t_in, t_out):
    """Fused forward pass.

    enc_ref  : (t_in*rows, input_size)  bf16   time-major, batch padded to `rows`
    w1_ref   : (input_size, osz)        bf16   fc1 (used only for the seed frame)
    w1wi_ref : (input_size, 3*gp)       bf16   prefused fc1 @ Wi
    bi_ref   : (1, 3*gp)                f32    b1 @ Wi + b_ih
    wh_ref   : (gp, 3*gp)               bf16   fused hidden-gate weights (r|z|n)
    wd_ref   : (gp, 3*gp + w2pad + 3*gp) bf16  fused decoder RHS [Wh | W2 | W2@Wi]
    bd_ref   : (1,  3*gp + w2pad + 3*gp) f32   [b_hh | b2 | b2@Wi]
    out_ref  : (rows, t_out*osz)        f32    lane-dense output slab
    Padded gate lanes / hidden lanes provably stay exactly zero.
    """
    gp = wh_ref.shape[0]
    g3 = 3 * gp
    osz = w1_ref.shape[1]
    w2pad = wd_ref.shape[1] - 2 * g3
    f32 = jnp.float32
    bf16 = jnp.bfloat16

    # Bias broadcast for the encoder loop, hoisted (3 vregs).
    bh_b = jnp.broadcast_to(bh_ref[...], (rows, g3))

    # ---- Hoisted prologue: ONE matmul gives the input-gate projection of every
    # frame (fc1 prefused into W1@Wi).  Off the recurrence critical path.
    enc = enc_ref[...]
    xg_all = jnp.dot(enc, w1wi_ref[...], preferred_element_type=f32) + bi_ref[...]

    def rows_of(t, mat):
        # batch is padded to `rows` (a full sublane tile) -> aligned slices
        return mat[t * rows:(t + 1) * rows, :]

    def gru_elem(xg, hg, h):
        # torch.nn.GRUCell gate order (r, z, n); xg/hg already hold the biases.
        r = jax.nn.sigmoid(xg[:, 0:gp] + hg[:, 0:gp])
        z = jax.nn.sigmoid(xg[:, gp:2 * gp] + hg[:, gp:2 * gp])
        n = jnp.tanh(xg[:, 2 * gp:g3] + r * hg[:, 2 * gp:g3])
        return (1.0 - z) * n + z * h

    h = jnp.zeros((rows, gp), f32)

    # ---- Encoder recurrence: one h @ Wh push + elementwise per step.  Weights
    # are re-read from VMEM at each dot (not held live across the unrolled loop).
    for t in range(t_in - 1):
        hg = jnp.dot(h.astype(bf16), wh_ref[...], preferred_element_type=f32) + bh_b
        h = gru_elem(rows_of(t, xg_all), hg, h)

    # ---- Decoder: one fused matmul per step: h @ [Wh | W2 | W2@Wi] ----
    bd_b = jnp.broadcast_to(bd_ref[...], (rows, wd_ref.shape[1]))
    inp = jnp.dot(rows_of(t_in - 1, enc), w1_ref[...],
                  preferred_element_type=f32) + b1_ref[...]   # seed = fc1(last frame)
    xg = rows_of(t_in - 1, xg_all)                            # seed input gates
    fused = jnp.dot(h.astype(bf16), wd_ref[...], preferred_element_type=f32) + bd_b

    outs = []
    for t in range(t_out):
        h = gru_elem(xg, fused[:, :g3], h)
        fused = jnp.dot(h.astype(bf16), wd_ref[...], preferred_element_type=f32) + bd_b
        out = inp + fused[:, g3:g3 + osz]            # inp + h@W2 + b2
        outs.append(out)
        if t + 1 < t_out:
            inp = out
            xg = xg + fused[:, g3 + w2pad:]          # out@Wi + b_ih, without a matmul

    # Single lane-dense store (t_out*osz lanes) instead of t_out masked sub-stores.
    out_ref[...] = jnp.concatenate(outs, axis=1)


# ----------------------------------------------------------------------------
# Wrapper
# ----------------------------------------------------------------------------
def seq2seq_forward(fused_params, encoder_inputs, decoder_inputs, target_seq):
    """encoder_inputs: (batch, input_seq, input_size) -> (batch, target_seq, output_size)"""
    del decoder_inputs  # unused by the reference forward (outputs are fed back)
    batch, input_seq, input_size = encoder_inputs.shape
    output_size = fused_params["w1"].shape[1]
    rows = _round_up(max(batch, 1), ROWS)

    # Time-major + sublane-pad batch so every per-step kernel slice is aligned.
    enc = jnp.transpose(encoder_inputs, (1, 0, 2)).astype(jnp.bfloat16)
    enc = jnp.pad(enc, ((0, 0), (0, rows - batch), (0, 0)))
    enc = enc.reshape(input_seq * rows, input_size)

    kernel = functools.partial(_seq2seq_kernel, rows=rows, t_in=input_seq,
                               t_out=target_seq)
    vmem = pl.BlockSpec(memory_space=pltpu.MemorySpace.VMEM)
    args = (enc,
            fused_params["w1"], fused_params["b1"],
            fused_params["w1wi"], fused_params["bi"],
            fused_params["wh"], fused_params["bh"],
            fused_params["wd"], fused_params["bd"])

    out = pl.pallas_call(
        kernel,
        out_shape=jax.ShapeDtypeStruct((rows, target_seq * output_size), jnp.float32),
        in_specs=[vmem] * len(args),
        out_specs=vmem,
    )(*args)

    return out[:batch].reshape(batch, target_seq, output_size)


# ----------------------------------------------------------------------------
# Parameters: PyTorch-layout init + kernel-side fusing/padding
# ----------------------------------------------------------------------------
def init_params(key, input_size, output_size, rnn_size):
    ks = jax.random.split(key, 8)
    u = lambda k, shape, bound: jax.random.uniform(
        k, shape, jnp.float32, minval=-bound, maxval=bound)
    b_fc1 = 1.0 / np.sqrt(input_size)
    b_gru = 1.0 / np.sqrt(rnn_size)
    b_fc2 = 1.0 / np.sqrt(rnn_size)
    return {
        "w1": u(ks[0], (input_size, output_size), b_fc1),      # fc1 (in, out)
        "b1": u(ks[1], (1, output_size), b_fc1),
        "w_ih": u(ks[2], (3 * rnn_size, output_size), b_gru),  # GRUCell weight_ih
        "w_hh": u(ks[3], (3 * rnn_size, rnn_size), b_gru),     # GRUCell weight_hh
        "b_ih": u(ks[4], (3 * rnn_size,), b_gru),
        "b_hh": u(ks[5], (3 * rnn_size,), b_gru),
        "w2": u(ks[6], (rnn_size, output_size), b_fc2),        # fc2 (in, out)
        "b2": u(ks[7], (1, output_size), b_fc2),
    }


def fuse_params(params, gate_lane=GATE_LANE):
    """Fuse per-gate GRU weights, lane-pad each gate to its own 128-lane block,
    prefuse W1@Wi / W2@Wi, and cast matmul operands to bf16."""
    rnn = params["w_hh"].shape[1]
    osz = params["w1"].shape[1]
    gp = _round_up(rnn, gate_lane)
    w2pad = _round_up(osz, gate_lane)

    wi = jnp.zeros((osz, 3 * gp), jnp.float32)
    wh = jnp.zeros((gp, 3 * gp), jnp.float32)
    bi = jnp.zeros((1, 3 * gp), jnp.float32)
    bh = jnp.zeros((1, 3 * gp), jnp.float32)
    for g in range(3):  # gate order (r, z, n), matching torch.nn.GRUCell
        wi = wi.at[:, g * gp:g * gp + rnn].set(params["w_ih"][g * rnn:(g + 1) * rnn, :].T)
        wh = wh.at[:rnn, g * gp:g * gp + rnn].set(params["w_hh"][g * rnn:(g + 1) * rnn, :].T)
        bi = bi.at[0, g * gp:g * gp + rnn].set(params["b_ih"][g * rnn:(g + 1) * rnn])
        bh = bh.at[0, g * gp:g * gp + rnn].set(params["b_hh"][g * rnn:(g + 1) * rnn])

    w2 = jnp.zeros((gp, w2pad), jnp.float32).at[:rnn, :osz].set(params["w2"])
    b2 = jnp.zeros((1, w2pad), jnp.float32).at[:, :osz].set(params["b2"])

    # Prefused prologue: xg_all = enc @ (W1@Wi) + (b1@Wi + b_ih).
    w1wi = params["w1"] @ wi
    bi_total = params["b1"] @ wi + bi

    # Fused decoder RHS: one matmul per step -> [Wh | W2 | W2@Wi].
    w2wi = w2[:, :osz] @ wi
    b2wi = params["b2"] @ wi
    wd = jnp.concatenate([wh, w2, w2wi], axis=1)     # (gp, 3gp + w2pad + 3gp)
    bd = jnp.concatenate([bh, b2, b2wi], axis=1)     # (1,  same)

    bf16 = jnp.bfloat16
    return {
        "w1": params["w1"].astype(bf16), "b1": params["b1"],
        "w1wi": w1wi.astype(bf16), "bi": bi_total,
        "wh": wh.astype(bf16), "bh": bh,
        "wd": wd.astype(bf16), "bd": bd,
    }


# ----------------------------------------------------------------------------
# Pure-JAX reference (mirrors the PyTorch forward, eval mode, f32)
# ----------------------------------------------------------------------------
def seq2seq_reference(params, encoder_inputs, target_seq):
    enc = jnp.transpose(encoder_inputs, (1, 0, 2)).astype(jnp.float32)
    enc = enc @ params["w1"] + params["b1"]
    batch = encoder_inputs.shape[0]
    R = params["w_hh"].shape[1]
    wir, wiz, win = [params["w_ih"][i * R:(i + 1) * R].T for i in range(3)]
    whr, whz, whn = [params["w_hh"][i * R:(i + 1) * R].T for i in range(3)]
    bir, biz, bin_ = [params["b_ih"][i * R:(i + 1) * R] for i in range(3)]
    bhr, bhz, bhn = [params["b_hh"][i * R:(i + 1) * R] for i in range(3)]

    def gru(x, h):
        r = jax.nn.sigmoid(x @ wir + bir + h @ whr + bhr)
        z = jax.nn.sigmoid(x @ wiz + biz + h @ whz + bhz)
        n = jnp.tanh(x @ win + bin_ + r * (h @ whn + bhn))
        return (1.0 - z) * n + z * h

    state = jnp.zeros((batch, R), jnp.float32)
    for t in range(enc.shape[0] - 1):
        state = gru(enc[t], state)

    inp = enc[-1]
    outs = []
    for _ in range(target_seq):
        state = gru(inp, state)
        out = inp + state @ params["w2"] + params["b2"]
        outs.append(out)
        inp = out
    return jnp.transpose(jnp.stack(outs, 0), (1, 0, 2))


if __name__ == "__main__":
    # Small shapes implied by the module's forward pass.
    batch = 2
    input_seq = 8
    target_seq = 8
    input_size = 16
    output_size = 16
    rnn_size = 32

    key = jax.random.PRNGKey(0)
    k_enc, k_dec, k_par = jax.random.split(key, 3)

    encoder_inputs = jax.random.normal(k_enc, (batch, input_seq, input_size), jnp.float32)
    decoder_inputs = jax.random.normal(k_dec, (batch, target_seq, input_size), jnp.float32)
    params = init_params(k_par, input_size, output_size, rnn_size)
    fused = fuse_params(params)

    out = seq2seq_forward(fused, encoder_inputs, decoder_inputs, target_seq)
    out = jax.block_until_ready(out)

    ref = jax.block_until_ready(seq2seq_reference(params, encoder_inputs, target_seq))
    assert out.shape == (batch, target_seq, output_size), out.shape
    # bf16 MXU operands (f32 accumulation / gate math) -> loosened tolerance.
    np.testing.assert_allclose(np.asarray(out), np.asarray(ref), rtol=5e-2, atol=5e-2)

    print("KERNEL_OK")
</pallas_src>

<mosaic_0001>
module attributes {stable_mosaic.version = 11 : i64} {
  func.func @_seq2seq_kernel(%arg0: memref<64x16xbf16, #tpu.memory_space<vmem>>, %arg1: memref<16x16xbf16, #tpu.memory_space<vmem>>, %arg2: memref<1x16xf32, #tpu.memory_space<vmem>>, %arg3: memref<16x384xbf16, #tpu.memory_space<vmem>>, %arg4: memref<1x384xf32, #tpu.memory_space<vmem>>, %arg5: memref<128x384xbf16, #tpu.memory_space<vmem>>, %arg6: memref<1x384xf32, #tpu.memory_space<vmem>>, %arg7: memref<128x896xbf16, #tpu.memory_space<vmem>>, %arg8: memref<1x896xf32, #tpu.memory_space<vmem>>, %arg9: memref<8x128xf32, #tpu.memory_space<vmem>>) attributes {dimension_semantics = [], scalar_prefetch = 0 : i64, scratch_operands = 0 : i64, tpu.core_type = #tpu.core_type<tc>} {
    %c0 = arith.constant 0 : index
    %c0_0 = arith.constant 0 : index
    %0 = vector.load %arg6[%c0, %c0_0] : memref<1x384xf32, #tpu.memory_space<vmem>>, vector<1x384xf32>
    %1 = vector.shape_cast %0 : vector<1x384xf32> to vector<1x384xf32>
    %2 = vector.broadcast %1 : vector<1x384xf32> to vector<8x384xf32>
    %c0_1 = arith.constant 0 : index
    %c0_2 = arith.constant 0 : index
    %3 = vector.load %arg0[%c0_1, %c0_2] : memref<64x16xbf16, #tpu.memory_space<vmem>>, vector<64x16xbf16>
    %c0_3 = arith.constant 0 : index
    %c0_4 = arith.constant 0 : index
    %4 = vector.load %arg3[%c0_3, %c0_4] : memref<16x384xbf16, #tpu.memory_space<vmem>>, vector<16x384xbf16>
    %cst = arith.constant dense<0.000000e+00> : vector<64x384xf32>
    %5 = tpu.matmul %3, %4, %cst {dimension_numbers = #tpu.dot_dimension_numbers<[1], [0], [0], [1], [0, 0, 1, 1], [], []>} : vector<64x16xbf16>, vector<16x384xbf16>, vector<64x384xf32> -> vector<64x384xf32>
    %c0_5 = arith.constant 0 : index
    %c0_6 = arith.constant 0 : index
    %6 = vector.load %arg4[%c0_5, %c0_6] : memref<1x384xf32, #tpu.memory_space<vmem>>, vector<1x384xf32>
    %7 = vector.broadcast %6 : vector<1x384xf32> to vector<64x384xf32>
    %8 = arith.addf %5, %7 : vector<64x384xf32>
    %cst_7 = arith.constant 0.000000e+00 : f32
    %9 = vector.broadcast %cst_7 : f32 to vector<8x128xf32>
    %10 = arith.truncf %9 : vector<8x128xf32> to vector<8x128xbf16>
    %c0_8 = arith.constant 0 : index
    %c0_9 = arith.constant 0 : index
    %11 = vector.load %arg5[%c0_8, %c0_9] : memref<128x384xbf16, #tpu.memory_space<vmem>>, vector<128x384xbf16>
    %cst_10 = arith.constant dense<0.000000e+00> : vector<8x384xf32>
    %12 = tpu.matmul %10, %11, %cst_10 {dimension_numbers = #tpu.dot_dimension_numbers<[1], [0], [0], [1], [0, 0, 1, 1], [], []>} : vector<8x128xbf16>, vector<128x384xbf16>, vector<8x384xf32> -> vector<8x384xf32>
    %13 = arith.addf %12, %2 : vector<8x384xf32>
    %14 = vector.extract_strided_slice %8 {offsets = [0, 0], sizes = [8, 384], strides = [1, 1]} : vector<64x384xf32> to vector<8x384xf32>
    %15 = vector.extract_strided_slice %14 {offsets = [0, 0], sizes = [8, 128], strides = [1, 1]} : vector<8x384xf32> to vector<8x128xf32>
    %16 = vector.extract_strided_slice %13 {offsets = [0, 0], sizes = [8, 128], strides = [1, 1]} : vector<8x384xf32> to vector<8x128xf32>
    %17 = arith.addf %15, %16 : vector<8x128xf32>
    %18 = arith.negf %17 : vector<8x128xf32>
    %19 = math.exp %18 : vector<8x128xf32>
    %cst_11 = arith.constant 1.000000e+00 : f32
    %20 = vector.broadcast %cst_11 : f32 to vector<8x128xf32>
    %21 = arith.addf %20, %19 : vector<8x128xf32>
    %22 = arith.divf %20, %21 : vector<8x128xf32>
    %23 = vector.extract_strided_slice %14 {offsets = [0, 128], sizes = [8, 128], strides = [1, 1]} : vector<8x384xf32> to vector<8x128xf32>
    %24 = vector.extract_strided_slice %13 {offsets = [0, 128], sizes = [8, 128], strides = [1, 1]} : vector<8x384xf32> to vector<8x128xf32>
    %25 = arith.addf %23, %24 : vector<8x128xf32>
    %26 = arith.negf %25 : vector<8x128xf32>
    %27 = math.exp %26 : vector<8x128xf32>
    %cst_12 = arith.constant 1.000000e+00 : f32
    %28 = vector.broadcast %cst_12 : f32 to vector<8x128xf32>
    %29 = arith.addf %28, %27 : vector<8x128xf32>
    %30 = arith.divf %28, %29 : vector<8x128xf32>
    %31 = vector.extract_strided_slice %14 {offsets = [0, 256], sizes = [8, 128], strides = [1, 1]} : vector<8x384xf32> to vector<8x128xf32>
    %32 = vector.extract_strided_slice %13 {offsets = [0, 256], sizes = [8, 128], strides = [1, 1]} : vector<8x384xf32> to vector<8x128xf32>
    %33 = arith.mulf %22, %32 : vector<8x128xf32>
    %34 = arith.addf %31, %33 : vector<8x128xf32>
    %35 = math.tanh %34 : vector<8x128xf32>
    %cst_13 = arith.constant 1.000000e+00 : f32
    %36 = vector.broadcast %cst_13 : f32 to vector<8x128xf32>
    %37 = arith.subf %36, %30 : vector<8x128xf32>
    %38 = arith.mulf %37, %35 : vector<8x128xf32>
    %39 = arith.mulf %30, %9 : vector<8x128xf32>
    %40 = arith.addf %38, %39 : vector<8x128xf32>
    %41 = arith.truncf %40 : vector<8x128xf32> to vector<8x128xbf16>
    %c0_14 = arith.constant 0 : index
    %c0_15 = arith.constant 0 : index
    %42 = vector.load %arg5[%c0_14, %c0_15] : memref<128x384xbf16, #tpu.memory_space<vmem>>, vector<128x384xbf16>
    %cst_16 = arith.constant dense<0.000000e+00> : vector<8x384xf32>
    %43 = tpu.matmul %41, %42, %cst_16 {dimension_numbers = #tpu.dot_dimension_numbers<[1], [0], [0], [1], [0, 0, 1, 1], [], []>} : vector<8x128xbf16>, vector<128x384xbf16>, vector<8x384xf32> -> vector<8x384xf32>
    %44 = arith.addf %43, %2 : vector<8x384xf32>
    %45 = vector.extract_strided_slice %8 {offsets = [8, 0], sizes = [8, 384], strides = [1, 1]} : vector<64x384xf32> to vector<8x384xf32>
    %46 = vector.extract_strided_slice %45 {offsets = [0, 0], sizes = [8, 128], strides = [1, 1]} : vector<8x384xf32> to vector<8x128xf32>
    %47 = vector.extract_strided_slice %44 {offsets = [0, 0], sizes = [8, 128], strides = [1, 1]} : vector<8x384xf32> to vector<8x128xf32>
    %48 = arith.addf %46, %47 : vector<8x128xf32>
    %49 = arith.negf %48 : vector<8x128xf32>
    %50 = math.exp %49 : vector<8x128xf32>
    %cst_17 = arith.constant 1.000000e+00 : f32
    %51 = vector.broadcast %cst_17 : f32 to vector<8x128xf32>
    %52 = arith.addf %51, %50 : vector<8x128xf32>
    %53 = arith.divf %51, %52 : vector<8x128xf32>
    %54 = vector.extract_strided_slice %45 {offsets = [0, 128], sizes = [8, 128], strides = [1, 1]} : vector<8x384xf32> to vector<8x128xf32>
    %55 = vector.extract_strided_slice %44 {offsets = [0, 128], sizes = [8, 128], strides = [1, 1]} : vector<8x384xf32> to vector<8x128xf32>
    %56 = arith.addf %54, %55 : vector<8x128xf32>
    %57 = arith.negf %56 : vector<8x128xf32>
    %58 = math.exp %57 : vector<8x128xf32>
    %cst_18 = arith.constant 1.000000e+00 : f32
    %59 = vector.broadcast %cst_18 : f32 to vector<8x128xf32>
    %60 = arith.addf %59, %58 : vector<8x128xf32>
    %61 = arith.divf %59, %60 : vector<8x128xf32>
    %62 = vector.extract_strided_slice %45 {offsets = [0, 256], sizes = [8, 128], strides = [1, 1]} : vector<8x384xf32> to vector<8x128xf32>
    %63 = vector.extract_strided_slice %44 {offsets = [0, 256], sizes = [8, 128], strides = [1, 1]} : vector<8x384xf32> to vector<8x128xf32>
    %64 = arith.mulf %53, %63 : vector<8x128xf32>
    %65 = arith.addf %62, %64 : vector<8x128xf32>
    %66 = math.tanh %65 : vector<8x128xf32>
    %cst_19 = arith.constant 1.000000e+00 : f32
    %67 = vector.broadcast %cst_19 : f32 to vector<8x128xf32>
    %68 = arith.subf %67, %61 : vector<8x128xf32>
    %69 = arith.mulf %68, %66 : vector<8x128xf32>
    %70 = arith.mulf %61, %40 : vector<8x128xf32>
    %71 = arith.addf %69, %70 : vector<8x128xf32>
    %72 = arith.truncf %71 : vector<8x128xf32> to vector<8x128xbf16>
    %c0_20 = arith.constant 0 : index
    %c0_21 = arith.constant 0 : index
    %73 = vector.load %arg5[%c0_20, %c0_21] : memref<128x384xbf16, #tpu.memory_space<vmem>>, vector<128x384xbf16>
    %cst_22 = arith.constant dense<0.000000e+00> : vector<8x384xf32>
    %74 = tpu.matmul %72, %73, %cst_22 {dimension_numbers = #tpu.dot_dimension_numbers<[1], [0], [0], [1], [0, 0, 1, 1], [], []>} : vector<8x128xbf16>, vector<128x384xbf16>, vector<8x384xf32> -> vector<8x384xf32>
    %75 = arith.addf %74, %2 : vector<8x384xf32>
    %76 = vector.extract_strided_slice %8 {offsets = [16, 0], sizes = [8, 384], strides = [1, 1]} : vector<64x384xf32> to vector<8x384xf32>
    %77 = vector.extract_strided_slice %76 {offsets = [0, 0], sizes = [8, 128], strides = [1, 1]} : vector<8x384xf32> to vector<8x128xf32>
    %78 = vector.extract_strided_slice %75 {offsets = [0, 0], sizes = [8, 128], strides = [1, 1]} : vector<8x384xf32> to vector<8x128xf32>
    %79 = arith.addf %77, %78 : vector<8x128xf32>
    %80 = arith.negf %79 : vector<8x128xf32>
    %81 = math.exp %80 : vector<8x128xf32>
    %cst_23 = arith.constant 1.000000e+00 : f32
    %82 = vector.broadcast %cst_23 : f32 to vector<8x128xf32>
    %83 = arith.addf %82, %81 : vector<8x128xf32>
    %84 = arith.divf %82, %83 : vector<8x128xf32>
    %85 = vector.extract_strided_slice %76 {offsets = [0, 128], sizes = [8, 128], strides = [1, 1]} : vector<8x384xf32> to vector<8x128xf32>
    %86 = vector.extract_strided_slice %75 {offsets = [0, 128], sizes = [8, 128], strides = [1, 1]} : vector<8x384xf32> to vector<8x128xf32>
    %87 = arith.addf %85, %86 : vector<8x128xf32>
    %88 = arith.negf %87 : vector<8x128xf32>
    %89 = math.exp %88 : vector<8x128xf32>
    %cst_24 = arith.constant 1.000000e+00 : f32
    %90 = vector.broadcast %cst_24 : f32 to vector<8x128xf32>
    %91 = arith.addf %90, %89 : vector<8x128xf32>
    %92 = arith.divf %90, %91 : vector<8x128xf32>
    %93 = vector.extract_strided_slice %76 {offsets = [0, 256], sizes = [8, 128], strides = [1, 1]} : vector<8x384xf32> to vector<8x128xf32>
    %94 = vector.extract_strided_slice %75 {offsets = [0, 256], sizes = [8, 128], strides = [1, 1]} : vector<8x384xf32> to vector<8x128xf32>
    %95 = arith.mulf %84, %94 : vector<8x128xf32>
    %96 = arith.addf %93, %95 : vector<8x128xf32>
    %97 = math.tanh %96 : vector<8x128xf32>
    %cst_25 = arith.constant 1.000000e+00 : f32
    %98 = vector.broadcast %cst_25 : f32 to vector<8x128xf32>
    %99 = arith.subf %98, %92 : vector<8x128xf32>
    %100 = arith.mulf %99, %97 : vector<8x128xf32>
    %101 = arith.mulf %92, %71 : vector<8x128xf32>
    %102 = arith.addf %100, %101 : vector<8x128xf32>
    %103 = arith.truncf %102 : vector<8x128xf32> to vector<8x128xbf16>
    %c0_26 = arith.constant 0 : index
    %c0_27 = arith.constant 0 : index
    %104 = vector.load %arg5[%c0_26, %c0_27] : memref<128x384xbf16, #tpu.memory_space<vmem>>, vector<128x384xbf16>
    %cst_28 = arith.constant dense<0.000000e+00> : vector<8x384xf32>
    %105 = tpu.matmul %103, %104, %cst_28 {dimension_numbers = #tpu.dot_dimension_numbers<[1], [0], [0], [1], [0, 0, 1, 1], [], []>} : vector<8x128xbf16>, vector<128x384xbf16>, vector<8x384xf32> -> vector<8x384xf32>
    %106 = arith.addf %105, %2 : vector<8x384xf32>
    %107 = vector.extract_strided_slice %8 {offsets = [24, 0], sizes = [8, 384], strides = [1, 1]} : vector<64x384xf32> to vector<8x384xf32>
    %108 = vector.extract_strided_slice %107 {offsets = [0, 0], sizes = [8, 128], strides = [1, 1]} : vector<8x384xf32> to vector<8x128xf32>
    %109 = vector.extract_strided_slice %106 {offsets = [0, 0], sizes = [8, 128], strides = [1, 1]} : vector<8x384xf32> to vector<8x128xf32>
    %110 = arith.addf %108, %109 : vector<8x128xf32>
    %111 = arith.negf %110 : vector<8x128xf32>
    %112 = math.exp %111 : vector<8x128xf32>
    %cst_29 = arith.constant 1.000000e+00 : f32
    %113 = vector.broadcast %cst_29 : f32 to vector<8x128xf32>
    %114 = arith.addf %113, %112 : vector<8x128xf32>
    %115 = arith.divf %113, %114 : vector<8x128xf32>
    %116 = vector.extract_strided_slice %107 {offsets = [0, 128], sizes = [8, 128], strides = [1, 1]} : vector<8x384xf32> to vector<8x128xf32>
    %117 = vector.extract_strided_slice %106 {offsets = [0, 128], sizes = [8, 128], strides = [1, 1]} : vector<8x384xf32> to vector<8x128xf32>
    %118 = arith.addf %116, %117 : vector<8x128xf32>
    %119 = arith.negf %118 : vector<8x128xf32>
    %120 = math.exp %119 : vector<8x128xf32>
    %cst_30 = arith.constant 1.000000e+00 : f32
    %121 = vector.broadcast %cst_30 : f32 to vector<8x128xf32>
    %122 = arith.addf %121, %120 : vector<8x128xf32>
    %123 = arith.divf %121, %122 : vector<8x128xf32>
    %124 = vector.extract_strided_slice %107 {offsets = [0, 256], sizes = [8, 128], strides = [1, 1]} : vector<8x384xf32> to vector<8x128xf32>
    %125 = vector.extract_strided_slice %106 {offsets = [0, 256], sizes = [8, 128], strides = [1, 1]} : vector<8x384xf32> to vector<8x128xf32>
    %126 = arith.mulf %115, %125 : vector<8x128xf32>
    %127 = arith.addf %124, %126 : vector<8x128xf32>
    %128 = math.tanh %127 : vector<8x128xf32>
    %cst_31 = arith.constant 1.000000e+00 : f32
    %129 = vector.broadcast %cst_31 : f32 to vector<8x128xf32>
    %130 = arith.subf %129, %123 : vector<8x128xf32>
    %131 = arith.mulf %130, %128 : vector<8x128xf32>
    %132 = arith.mulf %123, %102 : vector<8x128xf32>
    %133 = arith.addf %131, %132 : vector<8x128xf32>
    %134 = arith.truncf %133 : vector<8x128xf32> to vector<8x128xbf16>
    %c0_32 = arith.constant 0 : index
    %c0_33 = arith.constant 0 : index
    %135 = vector.load %arg5[%c0_32, %c0_33] : memref<128x384xbf16, #tpu.memory_space<vmem>>, vector<128x384xbf16>
    %cst_34 = arith.constant dense<0.000000e+00> : vector<8x384xf32>
    %136 = tpu.matmul %134, %135, %cst_34 {dimension_numbers = #tpu.dot_dimension_numbers<[1], [0], [0], [1], [0, 0, 1, 1], [], []>} : vector<8x128xbf16>, vector<128x384xbf16>, vector<8x384xf32> -> vector<8x384xf32>
    %137 = arith.addf %136, %2 : vector<8x384xf32>
    %138 = vector.extract_strided_slice %8 {offsets = [32, 0], sizes = [8, 384], strides = [1, 1]} : vector<64x384xf32> to vector<8x384xf32>
    %139 = vector.extract_strided_slice %138 {offsets = [0, 0], sizes = [8, 128], strides = [1, 1]} : vector<8x384xf32> to vector<8x128xf32>
    %140 = vector.extract_strided_slice %137 {offsets = [0, 0], sizes = [8, 128], strides = [1, 1]} : vector<8x384xf32> to vector<8x128xf32>
    %141 = arith.addf %139, %140 : vector<8x128xf32>
    %142 = arith.negf %141 : vector<8x128xf32>
    %143 = math.exp %142 : vector<8x128xf32>
    %cst_35 = arith.constant 1.000000e+00 : f32
    %144 = vector.broadcast %cst_35 : f32 to vector<8x128xf32>
    %145 = arith.addf %144, %143 : vector<8x128xf32>
    %146 = arith.divf %144, %145 : vector<8x128xf32>
    %147 = vector.extract_strided_slice %138 {offsets = [0, 128], sizes = [8, 128], strides = [1, 1]} : vector<8x384xf32> to vector<8x128xf32>
    %148 = vector.extract_strided_slice %137 {offsets = [0, 128], sizes = [8, 128], strides = [1, 1]} : vector<8x384xf32> to vector<8x128xf32>
    %149 = arith.addf %147, %148 : vector<8x128xf32>
    %150 = arith.negf %149 : vector<8x128xf32>
    %151 = math.exp %150 : vector<8x128xf32>
    %cst_36 = arith.constant 1.000000e+00 : f32
    %152 = vector.broadcast %cst_36 : f32 to vector<8x128xf32>
    %153 = arith.addf %152, %151 : vector<8x128xf32>
    %154 = arith.divf %152, %153 : vector<8x128xf32>
    %155 = vector.extract_strided_slice %138 {offsets = [0, 256], sizes = [8, 128], strides = [1, 1]} : vector<8x384xf32> to vector<8x128xf32>
    %156 = vector.extract_strided_slice %137 {offsets = [0, 256], sizes = [8, 128], strides = [1, 1]} : vector<8x384xf32> to vector<8x128xf32>
    %157 = arith.mulf %146, %156 : vector<8x128xf32>
    %158 = arith.addf %155, %157 : vector<8x128xf32>
    %159 = math.tanh %158 : vector<8x128xf32>
    %cst_37 = arith.constant 1.000000e+00 : f32
    %160 = vector.broadcast %cst_37 : f32 to vector<8x128xf32>
    %161 = arith.subf %160, %154 : vector<8x128xf32>
    %162 = arith.mulf %161, %159 : vector<8x128xf32>
    %163 = arith.mulf %154, %133 : vector<8x128xf32>
    %164 = arith.addf %162, %163 : vector<8x128xf32>
    %165 = arith.truncf %164 : vector<8x128xf32> to vector<8x128xbf16>
    %c0_38 = arith.constant 0 : index
    %c0_39 = arith.constant 0 : index
    %166 = vector.load %arg5[%c0_38, %c0_39] : memref<128x384xbf16, #tpu.memory_space<vmem>>, vector<128x384xbf16>
    %cst_40 = arith.constant dense<0.000000e+00> : vector<8x384xf32>
    %167 = tpu.matmul %165, %166, %cst_40 {dimension_numbers = #tpu.dot_dimension_numbers<[1], [0], [0], [1], [0, 0, 1, 1], [], []>} : vector<8x128xbf16>, vector<128x384xbf16>, vector<8x384xf32> -> vector<8x384xf32>
    %168 = arith.addf %167, %2 : vector<8x384xf32>
    %169 = vector.extract_strided_slice %8 {offsets = [40, 0], sizes = [8, 384], strides = [1, 1]} : vector<64x384xf32> to vector<8x384xf32>
    %170 = vector.extract_strided_slice %169 {offsets = [0, 0], sizes = [8, 128], strides = [1, 1]} : vector<8x384xf32> to vector<8x128xf32>
    %171 = vector.extract_strided_slice %168 {offsets = [0, 0], sizes = [8, 128], strides = [1, 1]} : vector<8x384xf32> to vector<8x128xf32>
    %172 = arith.addf %170, %171 : vector<8x128xf32>
    %173 = arith.negf %172 : vector<8x128xf32>
    %174 = math.exp %173 : vector<8x128xf32>
    %cst_41 = arith.constant 1.000000e+00 : f32
    %175 = vector.broadcast %cst_41 : f32 to vector<8x128xf32>
    %176 = arith.addf %175, %174 : vector<8x128xf32>
    %177 = arith.divf %175, %176 : vector<8x128xf32>
    %178 = vector.extract_strided_slice %169 {offsets = [0, 128], sizes = [8, 128], strides = [1, 1]} : vector<8x384xf32> to vector<8x128xf32>
    %179 = vector.extract_strided_slice %168 {offsets = [0, 128], sizes = [8, 128], strides = [1, 1]} : vector<8x384xf32> to vector<8x128xf32>
    %180 = arith.addf %178, %179 : vector<8x128xf32>
    %181 = arith.negf %180 : vector<8x128xf32>
    %182 = math.exp %181 : vector<8x128xf32>
    %cst_42 = arith.constant 1.000000e+00 : f32
    %183 = vector.broadcast %cst_42 : f32 to vector<8x128xf32>
    %184 = arith.addf %183, %182 : vector<8x128xf32>
    %185 = arith.divf %183, %184 : vector<8x128xf32>
    %186 = vector.extract_strided_slice %169 {offsets = [0, 256], sizes = [8, 128], strides = [1, 1]} : vector<8x384xf32> to vector<8x128xf32>
    %187 = vector.extract_strided_slice %168 {offsets = [0, 256], sizes = [8, 128], strides = [1, 1]} : vector<8x384xf32> to vector<8x128xf32>
    %188 = arith.mulf %177, %187 : vector<8x128xf32>
    %189 = arith.addf %186, %188 : vector<8x128xf32>
    %190 = math.tanh %189 : vector<8x128xf32>
    %cst_43 = arith.constant 1.000000e+00 : f32
    %191 = vector.broadcast %cst_43 : f32 to vector<8x128xf32>
    %192 = arith.subf %191, %185 : vector<8x128xf32>
    %193 = arith.mulf %192, %190 : vector<8x128xf32>
    %194 = arith.mulf %185, %164 : vector<8x128xf32>
    %195 = arith.addf %193, %194 : vector<8x128xf32>
    %196 = arith.truncf %195 : vector<8x128xf32> to vector<8x128xbf16>
    %c0_44 = arith.constant 0 : index
    %c0_45 = arith.constant 0 : index
    %197 = vector.load %arg5[%c0_44, %c0_45] : memref<128x384xbf16, #tpu.memory_space<vmem>>, vector<128x384xbf16>
    %cst_46 = arith.constant dense<0.000000e+00> : vector<8x384xf32>
    %198 = tpu.matmul %196, %197, %cst_46 {dimension_numbers = #tpu.dot_dimension_numbers<[1], [0], [0], [1], [0, 0, 1, 1], [], []>} : vector<8x128xbf16>, vector<128x384xbf16>, vector<8x384xf32> -> vector<8x384xf32>
    %199 = arith.addf %198, %2 : vector<8x384xf32>
    %200 = vector.extract_strided_slice %8 {offsets = [48, 0], sizes = [8, 384], strides = [1, 1]} : vector<64x384xf32> to vector<8x384xf32>
    %201 = vector.extract_strided_slice %200 {offsets = [0, 0], sizes = [8, 128], strides = [1, 1]} : vector<8x384xf32> to vector<8x128xf32>
    %202 = vector.extract_strided_slice %199 {offsets = [0, 0], sizes = [8, 128], strides = [1, 1]} : vector<8x384xf32> to vector<8x128xf32>
    %203 = arith.addf %201, %202 : vector<8x128xf32>
    %204 = arith.negf %203 : vector<8x128xf32>
    %205 = math.exp %204 : vector<8x128xf32>
    %cst_47 = arith.constant 1.000000e+00 : f32
    %206 = vector.broadcast %cst_47 : f32 to vector<8x128xf32>
    %207 = arith.addf %206, %205 : vector<8x128xf32>
    %208 = arith.divf %206, %207 : vector<8x128xf32>
    %209 = vector.extract_strided_slice %200 {offsets = [0, 128], sizes = [8, 128], strides = [1, 1]} : vector<8x384xf32> to vector<8x128xf32>
    %210 = vector.extract_strided_slice %199 {offsets = [0, 128], sizes = [8, 128], strides = [1, 1]} : vector<8x384xf32> to vector<8x128xf32>
    %211 = arith.addf %209, %210 : vector<8x128xf32>
    %212 = arith.negf %211 : vector<8x128xf32>
    %213 = math.exp %212 : vector<8x128xf32>
    %cst_48 = arith.constant 1.000000e+00 : f32
    %214 = vector.broadcast %cst_48 : f32 to vector<8x128xf32>
    %215 = arith.addf %214, %213 : vector<8x128xf32>
    %216 = arith.divf %214, %215 : vector<8x128xf32>
    %217 = vector.extract_strided_slice %200 {offsets = [0, 256], sizes = [8, 128], strides = [1, 1]} : vector<8x384xf32> to vector<8x128xf32>
    %218 = vector.extract_strided_slice %199 {offsets = [0, 256], sizes = [8, 128], strides = [1, 1]} : vector<8x384xf32> to vector<8x128xf32>
    %219 = arith.mulf %208, %218 : vector<8x128xf32>
    %220 = arith.addf %217, %219 : vector<8x128xf32>
    %221 = math.tanh %220 : vector<8x128xf32>
    %cst_49 = arith.constant 1.000000e+00 : f32
    %222 = vector.broadcast %cst_49 : f32 to vector<8x128xf32>
    %223 = arith.subf %222, %216 : vector<8x128xf32>
    %224 = arith.mulf %223, %221 : vector<8x128xf32>
    %225 = arith.mulf %216, %195 : vector<8x128xf32>
    %226 = arith.addf %224, %225 : vector<8x128xf32>
    %c0_50 = arith.constant 0 : index
    %c0_51 = arith.constant 0 : index
    %227 = vector.load %arg8[%c0_50, %c0_51] : memref<1x896xf32, #tpu.memory_space<vmem>>, vector<1x896xf32>
    %228 = vector.shape_cast %227 : vector<1x896xf32> to vector<1x896xf32>
    %229 = vector.broadcast %228 : vector<1x896xf32> to vector<8x896xf32>
    %230 = vector.extract_strided_slice %3 {offsets = [56, 0], sizes = [8, 16], strides = [1, 1]} : vector<64x16xbf16> to vector<8x16xbf16>
    %c0_52 = arith.constant 0 : index
    %c0_53 = arith.constant 0 : index
    %231 = vector.load %arg1[%c0_52, %c0_53] : memref<16x16xbf16, #tpu.memory_space<vmem>>, vector<16x16xbf16>
    %cst_54 = arith.constant dense<0.000000e+00> : vector<8x16xf32>
    %232 = tpu.matmul %230, %231, %cst_54 {dimension_numbers = #tpu.dot_dimension_numbers<[1], [0], [0], [1], [0, 0, 1, 1], [], []>} : vector<8x16xbf16>, vector<16x16xbf16>, vector<8x16xf32> -> vector<8x16xf32>
    %c0_55 = arith.constant 0 : index
    %c0_56 = arith.constant 0 : index
    %233 = vector.load %arg2[%c0_55, %c0_56] : memref<1x16xf32, #tpu.memory_space<vmem>>, vector<1x16xf32>
    %234 = vector.broadcast %233 : vector<1x16xf32> to vector<8x16xf32>
    %235 = arith.addf %232, %234 : vector<8x16xf32>
    %236 = vector.extract_strided_slice %8 {offsets = [56, 0], sizes = [8, 384], strides = [1, 1]} : vector<64x384xf32> to vector<8x384xf32>
    %237 = arith.truncf %226 : vector<8x128xf32> to vector<8x128xbf16>
    %c0_57 = arith.constant 0 : index
    %c0_58 = arith.constant 0 : index
    %238 = vector.load %arg7[%c0_57, %c0_58] : memref<128x896xbf16, #tpu.memory_space<vmem>>, vector<128x896xbf16>
    %cst_59 = arith.constant dense<0.000000e+00> : vector<8x896xf32>
    %239 = tpu.matmul %237, %238, %cst_59 {dimension_numbers = #tpu.dot_dimension_numbers<[1], [0], [0], [1], [0, 0, 1, 1], [], []>} : vector<8x128xbf16>, vector<128x896xbf16>, vector<8x896xf32> -> vector<8x896xf32>
    %240 = arith.addf %239, %229 : vector<8x896xf32>
    %241 = vector.extract_strided_slice %240 {offsets = [0, 0], sizes = [8, 384], strides = [1, 1]} : vector<8x896xf32> to vector<8x384xf32>
    %242 = vector.extract_strided_slice %236 {offsets = [0, 0], sizes = [8, 128], strides = [1, 1]} : vector<8x384xf32> to vector<8x128xf32>
    %243 = vector.extract_strided_slice %241 {offsets = [0, 0], sizes = [8, 128], strides = [1, 1]} : vector<8x384xf32> to vector<8x128xf32>
    %244 = arith.addf %242, %243 : vector<8x128xf32>
    %245 = arith.negf %244 : vector<8x128xf32>
    %246 = math.exp %245 : vector<8x128xf32>
    %cst_60 = arith.constant 1.000000e+00 : f32
    %247 = vector.broadcast %cst_60 : f32 to vector<8x128xf32>
    %248 = arith.addf %247, %246 : vector<8x128xf32>
    %249 = arith.divf %247, %248 : vector<8x128xf32>
    %250 = vector.extract_strided_slice %236 {offsets = [0, 128], sizes = [8, 128], strides = [1, 1]} : vector<8x384xf32> to vector<8x128xf32>
    %251 = vector.extract_strided_slice %241 {offsets = [0, 128], sizes = [8, 128], strides = [1, 1]} : vector<8x384xf32> to vector<8x128xf32>
    %252 = arith.addf %250, %251 : vector<8x128xf32>
    %253 = arith.negf %252 : vector<8x128xf32>
    %254 = math.exp %253 : vector<8x128xf32>
    %cst_61 = arith.constant 1.000000e+00 : f32
    %255 = vector.broadcast %cst_61 : f32 to vector<8x128xf32>
    %256 = arith.addf %255, %254 : vector<8x128xf32>
    %257 = arith.divf %255, %256 : vector<8x128xf32>
    %258 = vector.extract_strided_slice %236 {offsets = [0, 256], sizes = [8, 128], strides = [1, 1]} : vector<8x384xf32> to vector<8x128xf32>
    %259 = vector.extract_strided_slice %241 {offsets = [0, 256], sizes = [8, 128], strides = [1, 1]} : vector<8x384xf32> to vector<8x128xf32>
    %260 = arith.mulf %249, %259 : vector<8x128xf32>
    %261 = arith.addf %258, %260 : vector<8x128xf32>
    %262 = math.tanh %261 : vector<8x128xf32>
    %cst_62 = arith.constant 1.000000e+00 : f32
    %263 = vector.broadcast %cst_62 : f32 to vector<8x128xf32>
    %264 = arith.subf %263, %257 : vector<8x128xf32>
    %265 = arith.mulf %264, %262 : vector<8x128xf32>
    %266 = arith.mulf %257, %226 : vector<8x128xf32>
    %267 = arith.addf %265, %266 : vector<8x128xf32>
    %268 = arith.truncf %267 : vector<8x128xf32> to vector<8x128xbf16>
    %c0_63 = arith.constant 0 : index
    %c0_64 = arith.constant 0 : index
    %269 = vector.load %arg7[%c0_63, %c0_64] : memref<128x896xbf16, #tpu.memory_space<vmem>>, vector<128x896xbf16>
    %cst_65 = arith.constant dense<0.000000e+00> : vector<8x896xf32>
    %270 = tpu.matmul %268, %269, %cst_65 {dimension_numbers = #tpu.dot_dimension_numbers<[1], [0], [0], [1], [0, 0, 1, 1], [], []>} : vector<8x128xbf16>, vector<128x896xbf16>, vector<8x896xf32> -> vector<8x896xf32>
    %271 = arith.addf %270, %229 : vector<8x896xf32>
    %272 = vector.extract_strided_slice %271 {offsets = [0, 384], sizes = [8, 16], strides = [1, 1]} : vector<8x896xf32> to vector<8x16xf32>
    %273 = arith.addf %235, %272 : vector<8x16xf32>
    %274 = vector.extract_strided_slice %271 {offsets = [0, 512], sizes = [8, 384], strides = [1, 1]} : vector<8x896xf32> to vector<8x384xf32>
    %275 = arith.addf %236, %274 : vector<8x384xf32>
    %276 = vector.extract_strided_slice %271 {offsets = [0, 0], sizes = [8, 384], strides = [1, 1]} : vector<8x896xf32> to vector<8x384xf32>
    %277 = vector.extract_strided_slice %275 {offsets = [0, 0], sizes = [8, 128], strides = [1, 1]} : vector<8x384xf32> to vector<8x128xf32>
    %278 = vector.extract_strided_slice %276 {offsets = [0, 0], sizes = [8, 128], strides = [1, 1]} : vector<8x384xf32> to vector<8x128xf32>
    %279 = arith.addf %277, %278 : vector<8x128xf32>
    %280 = arith.negf %279 : vector<8x128xf32>
    %281 = math.exp %280 : vector<8x128xf32>
    %cst_66 = arith.constant 1.000000e+00 : f32
    %282 = vector.broadcast %cst_66 : f32 to vector<8x128xf32>
    %283 = arith.addf %282, %281 : vector<8x128xf32>
    %284 = arith.divf %282, %283 : vector<8x128xf32>
    %285 = vector.extract_strided_slice %275 {offsets = [0, 128], sizes = [8, 128], strides = [1, 1]} : vector<8x384xf32> to vector<8x128xf32>
    %286 = vector.extract_strided_slice %276 {offsets = [0, 128], sizes = [8, 128], strides = [1, 1]} : vector<8x384xf32> to vector<8x128xf32>
    %287 = arith.addf %285, %286 : vector<8x128xf32>
    %288 = arith.negf %287 : vector<8x128xf32>
    %289 = math.exp %288 : vector<8x128xf32>
    %cst_67 = arith.constant 1.000000e+00 : f32
    %290 = vector.broadcast %cst_67 : f32 to vector<8x128xf32>
    %291 = arith.addf %290, %289 : vector<8x128xf32>
    %292 = arith.divf %290, %291 : vector<8x128xf32>
    %293 = vector.extract_strided_slice %275 {offsets = [0, 256], sizes = [8, 128], strides = [1, 1]} : vector<8x384xf32> to vector<8x128xf32>
    %294 = vector.extract_strided_slice %276 {offsets = [0, 256], sizes = [8, 128], strides = [1, 1]} : vector<8x384xf32> to vector<8x128xf32>
    %295 = arith.mulf %284, %294 : vector<8x128xf32>
    %296 = arith.addf %293, %295 : vector<8x128xf32>
    %297 = math.tanh %296 : vector<8x128xf32>
    %cst_68 = arith.constant 1.000000e+00 : f32
    %298 = vector.broadcast %cst_68 : f32 to vector<8x128xf32>
    %299 = arith.subf %298, %292 : vector<8x128xf32>
    %300 = arith.mulf %299, %297 : vector<8x128xf32>
    %301 = arith.mulf %292, %267 : vector<8x128xf32>
    %302 = arith.addf %300, %301 : vector<8x128xf32>
    %303 = arith.truncf %302 : vector<8x128xf32> to vector<8x128xbf16>
    %c0_69 = arith.constant 0 : index
    %c0_70 = arith.constant 0 : index
    %304 = vector.load %arg7[%c0_69, %c0_70] : memref<128x896xbf16, #tpu.memory_space<vmem>>, vector<128x896xbf16>
    %cst_71 = arith.constant dense<0.000000e+00> : vector<8x896xf32>
    %305 = tpu.matmul %303, %304, %cst_71 {dimension_numbers = #tpu.dot_dimension_numbers<[1], [0], [0], [1], [0, 0, 1, 1], [], []>} : vector<8x128xbf16>, vector<128x896xbf16>, vector<8x896xf32> -> vector<8x896xf32>
    %306 = arith.addf %305, %229 : vector<8x896xf32>
    %307 = vector.extract_strided_slice %306 {offsets = [0, 384], sizes = [8, 16], strides = [1, 1]} : vector<8x896xf32> to vector<8x16xf32>
    %308 = arith.addf %273, %307 : vector<8x16xf32>
    %309 = vector.extract_strided_slice %306 {offsets = [0, 512], sizes = [8, 384], strides = [1, 1]} : vector<8x896xf32> to vector<8x384xf32>
    %310 = arith.addf %275, %309 : vector<8x384xf32>
    %311 = vector.extract_strided_slice %306 {offsets = [0, 0], sizes = [8, 384], strides = [1, 1]} : vector<8x896xf32> to vector<8x384xf32>
    %312 = vector.extract_strided_slice %310 {offsets = [0, 0], sizes = [8, 128], strides = [1, 1]} : vector<8x384xf32> to vector<8x128xf32>
    %313 = vector.extract_strided_slice %311 {offsets = [0, 0], sizes = [8, 128], strides = [1, 1]} : vector<8x384xf32> to vector<8x128xf32>
    %314 = arith.addf %312, %313 : vector<8x128xf32>
    %315 = arith.negf %314 : vector<8x128xf32>
    %316 = math.exp %315 : vector<8x128xf32>
    %cst_72 = arith.constant 1.000000e+00 : f32
    %317 = vector.broadcast %cst_72 : f32 to vector<8x128xf32>
    %318 = arith.addf %317, %316 : vector<8x128xf32>
    %319 = arith.divf %317, %318 : vector<8x128xf32>
    %320 = vector.extract_strided_slice %310 {offsets = [0, 128], sizes = [8, 128], strides = [1, 1]} : vector<8x384xf32> to vector<8x128xf32>
    %321 = vector.extract_strided_slice %311 {offsets = [0, 128], sizes = [8, 128], strides = [1, 1]} : vector<8x384xf32> to vector<8x128xf32>
    %322 = arith.addf %320, %321 : vector<8x128xf32>
    %323 = arith.negf %322 : vector<8x128xf32>
    %324 = math.exp %323 : vector<8x128xf32>
    %cst_73 = arith.constant 1.000000e+00 : f32
    %325 = vector.broadcast %cst_73 : f32 to vector<8x128xf32>
    %326 = arith.addf %325, %324 : vector<8x128xf32>
    %327 = arith.divf %325, %326 : vector<8x128xf32>
    %328 = vector.extract_strided_slice %310 {offsets = [0, 256], sizes = [8, 128], strides = [1, 1]} : vector<8x384xf32> to vector<8x128xf32>
    %329 = vector.extract_strided_slice %311 {offsets = [0, 256], sizes = [8, 128], strides = [1, 1]} : vector<8x384xf32> to vector<8x128xf32>
    %330 = arith.mulf %319, %329 : vector<8x128xf32>
    %331 = arith.addf %328, %330 : vector<8x128xf32>
    %332 = math.tanh %331 : vector<8x128xf32>
    %cst_74 = arith.constant 1.000000e+00 : f32
    %333 = vector.broadcast %cst_74 : f32 to vector<8x128xf32>
    %334 = arith.subf %333, %327 : vector<8x128xf32>
    %335 = arith.mulf %334, %332 : vector<8x128xf32>
    %336 = arith.mulf %327, %302 : vector<8x128xf32>
    %337 = arith.addf %335, %336 : vector<8x128xf32>
    %338 = arith.truncf %337 : vector<8x128xf32> to vector<8x128xbf16>
    %c0_75 = arith.constant 0 : index
    %c0_76 = arith.constant 0 : index
    %339 = vector.load %arg7[%c0_75, %c0_76] : memref<128x896xbf16, #tpu.memory_space<vmem>>, vector<128x896xbf16>
    %cst_77 = arith.constant dense<0.000000e+00> : vector<8x896xf32>
    %340 = tpu.matmul %338, %339, %cst_77 {dimension_numbers = #tpu.dot_dimension_numbers<[1], [0], [0], [1], [0, 0, 1, 1], [], []>} : vector<8x128xbf16>, vector<128x896xbf16>, vector<8x896xf32> -> vector<8x896xf32>
    %341 = arith.addf %340, %229 : vector<8x896xf32>
    %342 = vector.extract_strided_slice %341 {offsets = [0, 384], sizes = [8, 16], strides = [1, 1]} : vector<8x896xf32> to vector<8x16xf32>
    %343 = arith.addf %308, %342 : vector<8x16xf32>
    %344 = vector.extract_strided_slice %341 {offsets = [0, 512], sizes = [8, 384], strides = [1, 1]} : vector<8x896xf32> to vector<8x384xf32>
    %345 = arith.addf %310, %344 : vector<8x384xf32>
    %346 = vector.extract_strided_slice %341 {offsets = [0, 0], sizes = [8, 384], strides = [1, 1]} : vector<8x896xf32> to vector<8x384xf32>
    %347 = vector.extract_strided_slice %345 {offsets = [0, 0], sizes = [8, 128], strides = [1, 1]} : vector<8x384xf32> to vector<8x128xf32>
    %348 = vector.extract_strided_slice %346 {offsets = [0, 0], sizes = [8, 128], strides = [1, 1]} : vector<8x384xf32> to vector<8x128xf32>
    %349 = arith.addf %347, %348 : vector<8x128xf32>
    %350 = arith.negf %349 : vector<8x128xf32>
    %351 = math.exp %350 : vector<8x128xf32>
    %cst_78 = arith.constant 1.000000e+00 : f32
    %352 = vector.broadcast %cst_78 : f32 to vector<8x128xf32>
    %353 = arith.addf %352, %351 : vector<8x128xf32>
    %354 = arith.divf %352, %353 : vector<8x128xf32>
    %355 = vector.extract_strided_slice %345 {offsets = [0, 128], sizes = [8, 128], strides = [1, 1]} : vector<8x384xf32> to vector<8x128xf32>
    %356 = vector.extract_strided_slice %346 {offsets = [0, 128], sizes = [8, 128], strides = [1, 1]} : vector<8x384xf32> to vector<8x128xf32>
    %357 = arith.addf %355, %356 : vector<8x128xf32>
    %358 = arith.negf %357 : vector<8x128xf32>
    %359 = math.exp %358 : vector<8x128xf32>
    %cst_79 = arith.constant 1.000000e+00 : f32
    %360 = vector.broadcast %cst_79 : f32 to vector<8x128xf32>
    %361 = arith.addf %360, %359 : vector<8x128xf32>
    %362 = arith.divf %360, %361 : vector<8x128xf32>
    %363 = vector.extract_strided_slice %345 {offsets = [0, 256], sizes = [8, 128], strides = [1, 1]} : vector<8x384xf32> to vector<8x128xf32>
    %364 = vector.extract_strided_slice %346 {offsets = [0, 256], sizes = [8, 128], strides = [1, 1]} : vector<8x384xf32> to vector<8x128xf32>
    %365 = arith.mulf %354, %364 : vector<8x128xf32>
    %366 = arith.addf %363, %365 : vector<8x128xf32>
    %367 = math.tanh %366 : vector<8x128xf32>
    %cst_80 = arith.constant 1.000000e+00 : f32
    %368 = vector.broadcast %cst_80 : f32 to vector<8x128xf32>
    %369 = arith.subf %368, %362 : vector<8x128xf32>
    %370 = arith.mulf %369, %367 : vector<8x128xf32>
    %371 = arith.mulf %362, %337 : vector<8x128xf32>
    %372 = arith.addf %370, %371 : vector<8x128xf32>
    %373 = arith.truncf %372 : vector<8x128xf32> to vector<8x128xbf16>
    %c0_81 = arith.constant 0 : index
    %c0_82 = arith.constant 0 : index
    %374 = vector.load %arg7[%c0_81, %c0_82] : memref<128x896xbf16, #tpu.memory_space<vmem>>, vector<128x896xbf16>
    %cst_83 = arith.constant dense<0.000000e+00> : vector<8x896xf32>
    %375 = tpu.matmul %373, %374, %cst_83 {dimension_numbers = #tpu.dot_dimension_numbers<[1], [0], [0], [1], [0, 0, 1, 1], [], []>} : vector<8x128xbf16>, vector<128x896xbf16>, vector<8x896xf32> -> vector<8x896xf32>
    %376 = arith.addf %375, %229 : vector<8x896xf32>
    %377 = vector.extract_strided_slice %376 {offsets = [0, 384], sizes = [8, 16], strides = [1, 1]} : vector<8x896xf32> to vector<8x16xf32>
    %378 = arith.addf %343, %377 : vector<8x16xf32>
    %379 = vector.extract_strided_slice %376 {offsets = [0, 512], sizes = [8, 384], strides = [1, 1]} : vector<8x896xf32> to vector<8x384xf32>
    %380 = arith.addf %345, %379 : vector<8x384xf32>
    %381 = vector.extract_strided_slice %376 {offsets = [0, 0], sizes = [8, 384], strides = [1, 1]} : vector<8x896xf32> to vector<8x384xf32>
    %382 = vector.extract_strided_slice %380 {offsets = [0, 0], sizes = [8, 128], strides = [1, 1]} : vector<8x384xf32> to vector<8x128xf32>
    %383 = vector.extract_strided_slice %381 {offsets = [0, 0], sizes = [8, 128], strides = [1, 1]} : vector<8x384xf32> to vector<8x128xf32>
    %384 = arith.addf %382, %383 : vector<8x128xf32>
    %385 = arith.negf %384 : vector<8x128xf32>
    %386 = math.exp %385 : vector<8x128xf32>
    %cst_84 = arith.constant 1.000000e+00 : f32
    %387 = vector.broadcast %cst_84 : f32 to vector<8x128xf32>
    %388 = arith.addf %387, %386 : vector<8x128xf32>
    %389 = arith.divf %387, %388 : vector<8x128xf32>
    %390 = vector.extract_strided_slice %380 {offsets = [0, 128], sizes = [8, 128], strides = [1, 1]} : vector<8x384xf32> to vector<8x128xf32>
    %391 = vector.extract_strided_slice %381 {offsets = [0, 128], sizes = [8, 128], strides = [1, 1]} : vector<8x384xf32> to vector<8x128xf32>
    %392 = arith.addf %390, %391 : vector<8x128xf32>
    %393 = arith.negf %392 : vector<8x128xf32>
    %394 = math.exp %393 : vector<8x128xf32>
    %cst_85 = arith.constant 1.000000e+00 : f32
    %395 = vector.broadcast %cst_85 : f32 to vector<8x128xf32>
    %396 = arith.addf %395, %394 : vector<8x128xf32>
    %397 = arith.divf %395, %396 : vector<8x128xf32>
    %398 = vector.extract_strided_slice %380 {offsets = [0, 256], sizes = [8, 128], strides = [1, 1]} : vector<8x384xf32> to vector<8x128xf32>
    %399 = vector.extract_strided_slice %381 {offsets = [0, 256], sizes = [8, 128], strides = [1, 1]} : vector<8x384xf32> to vector<8x128xf32>
    %400 = arith.mulf %389, %399 : vector<8x128xf32>
    %401 = arith.addf %398, %400 : vector<8x128xf32>
    %402 = math.tanh %401 : vector<8x128xf32>
    %cst_86 = arith.constant 1.000000e+00 : f32
    %403 = vector.broadcast %cst_86 : f32 to vector<8x128xf32>
    %404 = arith.subf %403, %397 : vector<8x128xf32>
    %405 = arith.mulf %404, %402 : vector<8x128xf32>
    %406 = arith.mulf %397, %372 : vector<8x128xf32>
    %407 = arith.addf %405, %406 : vector<8x128xf32>
    %408 = arith.truncf %407 : vector<8x128xf32> to vector<8x128xbf16>
    %c0_87 = arith.constant 0 : index
    %c0_88 = arith.constant 0 : index
    %409 = vector.load %arg7[%c0_87, %c0_88] : memref<128x896xbf16, #tpu.memory_space<vmem>>, vector<128x896xbf16>
    %cst_89 = arith.constant dense<0.000000e+00> : vector<8x896xf32>
    %410 = tpu.matmul %408, %409, %cst_89 {dimension_numbers = #tpu.dot_dimension_numbers<[1], [0], [0], [1], [0, 0, 1, 1], [], []>} : vector<8x128xbf16>, vector<128x896xbf16>, vector<8x896xf32> -> vector<8x896xf32>
    %411 = arith.addf %410, %229 : vector<8x896xf32>
    %412 = vector.extract_strided_slice %411 {offsets = [0, 384], sizes = [8, 16], strides = [1, 1]} : vector<8x896xf32> to vector<8x16xf32>
    %413 = arith.addf %378, %412 : vector<8x16xf32>
    %414 = vector.extract_strided_slice %411 {offsets = [0, 512], sizes = [8, 384], strides = [1, 1]} : vector<8x896xf32> to vector<8x384xf32>
    %415 = arith.addf %380, %414 : vector<8x384xf32>
    %416 = vector.extract_strided_slice %411 {offsets = [0, 0], sizes = [8, 384], strides = [1, 1]} : vector<8x896xf32> to vector<8x384xf32>
    %417 = vector.extract_strided_slice %415 {offsets = [0, 0], sizes = [8, 128], strides = [1, 1]} : vector<8x384xf32> to vector<8x128xf32>
    %418 = vector.extract_strided_slice %416 {offsets = [0, 0], sizes = [8, 128], strides = [1, 1]} : vector<8x384xf32> to vector<8x128xf32>
    %419 = arith.addf %417, %418 : vector<8x128xf32>
    %420 = arith.negf %419 : vector<8x128xf32>
    %421 = math.exp %420 : vector<8x128xf32>
    %cst_90 = arith.constant 1.000000e+00 : f32
    %422 = vector.broadcast %cst_90 : f32 to vector<8x128xf32>
    %423 = arith.addf %422, %421 : vector<8x128xf32>
    %424 = arith.divf %422, %423 : vector<8x128xf32>
    %425 = vector.extract_strided_slice %415 {offsets = [0, 128], sizes = [8, 128], strides = [1, 1]} : vector<8x384xf32> to vector<8x128xf32>
    %426 = vector.extract_strided_slice %416 {offsets = [0, 128], sizes = [8, 128], strides = [1, 1]} : vector<8x384xf32> to vector<8x128xf32>
    %427 = arith.addf %425, %426 : vector<8x128xf32>
    %428 = arith.negf %427 : vector<8x128xf32>
    %429 = math.exp %428 : vector<8x128xf32>
    %cst_91 = arith.constant 1.000000e+00 : f32
    %430 = vector.broadcast %cst_91 : f32 to vector<8x128xf32>
    %431 = arith.addf %430, %429 : vector<8x128xf32>
    %432 = arith.divf %430, %431 : vector<8x128xf32>
    %433 = vector.extract_strided_slice %415 {offsets = [0, 256], sizes = [8, 128], strides = [1, 1]} : vector<8x384xf32> to vector<8x128xf32>
    %434 = vector.extract_strided_slice %416 {offsets = [0, 256], sizes = [8, 128], strides = [1, 1]} : vector<8x384xf32> to vector<8x128xf32>
    %435 = arith.mulf %424, %434 : vector<8x128xf32>
    %436 = arith.addf %433, %435 : vector<8x128xf32>
    %437 = math.tanh %436 : vector<8x128xf32>
    %cst_92 = arith.constant 1.000000e+00 : f32
    %438 = vector.broadcast %cst_92 : f32 to vector<8x128xf32>
    %439 = arith.subf %438, %432 : vector<8x128xf32>
    %440 = arith.mulf %439, %437 : vector<8x128xf32>
    %441 = arith.mulf %432, %407 : vector<8x128xf32>
    %442 = arith.addf %440, %441 : vector<8x128xf32>
    %443 = arith.truncf %442 : vector<8x128xf32> to vector<8x128xbf16>
    %c0_93 = arith.constant 0 : index
    %c0_94 = arith.constant 0 : index
    %444 = vector.load %arg7[%c0_93, %c0_94] : memref<128x896xbf16, #tpu.memory_space<vmem>>, vector<128x896xbf16>
    %cst_95 = arith.constant dense<0.000000e+00> : vector<8x896xf32>
    %445 = tpu.matmul %443, %444, %cst_95 {dimension_numbers = #tpu.dot_dimension_numbers<[1], [0], [0], [1], [0, 0, 1, 1], [], []>} : vector<8x128xbf16>, vector<128x896xbf16>, vector<8x896xf32> -> vector<8x896xf32>
    %446 = arith.addf %445, %229 : vector<8x896xf32>
    %447 = vector.extract_strided_slice %446 {offsets = [0, 384], sizes = [8, 16], strides = [1, 1]} : vector<8x896xf32> to vector<8x16xf32>
    %448 = arith.addf %413, %447 : vector<8x16xf32>
    %449 = vector.extract_strided_slice %446 {offsets = [0, 512], sizes = [8, 384], strides = [1, 1]} : vector<8x896xf32> to vector<8x384xf32>
    %450 = arith.addf %415, %449 : vector<8x384xf32>
    %451 = vector.extract_strided_slice %446 {offsets = [0, 0], sizes = [8, 384], strides = [1, 1]} : vector<8x896xf32> to vector<8x384xf32>
    %452 = vector.extract_strided_slice %450 {offsets = [0, 0], sizes = [8, 128], strides = [1, 1]} : vector<8x384xf32> to vector<8x128xf32>
    %453 = vector.extract_strided_slice %451 {offsets = [0, 0], sizes = [8, 128], strides = [1, 1]} : vector<8x384xf32> to vector<8x128xf32>
    %454 = arith.addf %452, %453 : vector<8x128xf32>
    %455 = arith.negf %454 : vector<8x128xf32>
    %456 = math.exp %455 : vector<8x128xf32>
    %cst_96 = arith.constant 1.000000e+00 : f32
    %457 = vector.broadcast %cst_96 : f32 to vector<8x128xf32>
    %458 = arith.addf %457, %456 : vector<8x128xf32>
    %459 = arith.divf %457, %458 : vector<8x128xf32>
    %460 = vector.extract_strided_slice %450 {offsets = [0, 128], sizes = [8, 128], strides = [1, 1]} : vector<8x384xf32> to vector<8x128xf32>
    %461 = vector.extract_strided_slice %451 {offsets = [0, 128], sizes = [8, 128], strides = [1, 1]} : vector<8x384xf32> to vector<8x128xf32>
    %462 = arith.addf %460, %461 : vector<8x128xf32>
    %463 = arith.negf %462 : vector<8x128xf32>
    %464 = math.exp %463 : vector<8x128xf32>
    %cst_97 = arith.constant 1.000000e+00 : f32
    %465 = vector.broadcast %cst_97 : f32 to vector<8x128xf32>
    %466 = arith.addf %465, %464 : vector<8x128xf32>
    %467 = arith.divf %465, %466 : vector<8x128xf32>
    %468 = vector.extract_strided_slice %450 {offsets = [0, 256], sizes = [8, 128], strides = [1, 1]} : vector<8x384xf32> to vector<8x128xf32>
    %469 = vector.extract_strided_slice %451 {offsets = [0, 256], sizes = [8, 128], strides = [1, 1]} : vector<8x384xf32> to vector<8x128xf32>
    %470 = arith.mulf %459, %469 : vector<8x128xf32>
    %471 = arith.addf %468, %470 : vector<8x128xf32>
    %472 = math.tanh %471 : vector<8x128xf32>
    %cst_98 = arith.constant 1.000000e+00 : f32
    %473 = vector.broadcast %cst_98 : f32 to vector<8x128xf32>
    %474 = arith.subf %473, %467 : vector<8x128xf32>
    %475 = arith.mulf %474, %472 : vector<8x128xf32>
    %476 = arith.mulf %467, %442 : vector<8x128xf32>
    %477 = arith.addf %475, %476 : vector<8x128xf32>
    %478 = arith.truncf %477 : vector<8x128xf32> to vector<8x128xbf16>
    %c0_99 = arith.constant 0 : index
    %c0_100 = arith.constant 0 : index
    %479 = vector.load %arg7[%c0_99, %c0_100] : memref<128x896xbf16, #tpu.memory_space<vmem>>, vector<128x896xbf16>
    %cst_101 = arith.constant dense<0.000000e+00> : vector<8x896xf32>
    %480 = tpu.matmul %478, %479, %cst_101 {dimension_numbers = #tpu.dot_dimension_numbers<[1], [0], [0], [1], [0, 0, 1, 1], [], []>} : vector<8x128xbf16>, vector<128x896xbf16>, vector<8x896xf32> -> vector<8x896xf32>
    %481 = arith.addf %480, %229 : vector<8x896xf32>
    %482 = vector.extract_strided_slice %481 {offsets = [0, 384], sizes = [8, 16], strides = [1, 1]} : vector<8x896xf32> to vector<8x16xf32>
    %483 = arith.addf %448, %482 : vector<8x16xf32>
    %484 = vector.extract_strided_slice %481 {offsets = [0, 512], sizes = [8, 384], strides = [1, 1]} : vector<8x896xf32> to vector<8x384xf32>
    %485 = arith.addf %450, %484 : vector<8x384xf32>
    %486 = vector.extract_strided_slice %481 {offsets = [0, 0], sizes = [8, 384], strides = [1, 1]} : vector<8x896xf32> to vector<8x384xf32>
    %487 = vector.extract_strided_slice %485 {offsets = [0, 0], sizes = [8, 128], strides = [1, 1]} : vector<8x384xf32> to vector<8x128xf32>
    %488 = vector.extract_strided_slice %486 {offsets = [0, 0], sizes = [8, 128], strides = [1, 1]} : vector<8x384xf32> to vector<8x128xf32>
    %489 = arith.addf %487, %488 : vector<8x128xf32>
    %490 = arith.negf %489 : vector<8x128xf32>
    %491 = math.exp %490 : vector<8x128xf32>
    %cst_102 = arith.constant 1.000000e+00 : f32
    %492 = vector.broadcast %cst_102 : f32 to vector<8x128xf32>
    %493 = arith.addf %492, %491 : vector<8x128xf32>
    %494 = arith.divf %492, %493 : vector<8x128xf32>
    %495 = vector.extract_strided_slice %485 {offsets = [0, 128], sizes = [8, 128], strides = [1, 1]} : vector<8x384xf32> to vector<8x128xf32>
    %496 = vector.extract_strided_slice %486 {offsets = [0, 128], sizes = [8, 128], strides = [1, 1]} : vector<8x384xf32> to vector<8x128xf32>
    %497 = arith.addf %495, %496 : vector<8x128xf32>
    %498 = arith.negf %497 : vector<8x128xf32>
    %499 = math.exp %498 : vector<8x128xf32>
    %cst_103 = arith.constant 1.000000e+00 : f32
    %500 = vector.broadcast %cst_103 : f32 to vector<8x128xf32>
    %501 = arith.addf %500, %499 : vector<8x128xf32>
    %502 = arith.divf %500, %501 : vector<8x128xf32>
    %503 = vector.extract_strided_slice %485 {offsets = [0, 256], sizes = [8, 128], strides = [1, 1]} : vector<8x384xf32> to vector<8x128xf32>
    %504 = vector.extract_strided_slice %486 {offsets = [0, 256], sizes = [8, 128], strides = [1, 1]} : vector<8x384xf32> to vector<8x128xf32>
    %505 = arith.mulf %494, %504 : vector<8x128xf32>
    %506 = arith.addf %503, %505 : vector<8x128xf32>
    %507 = math.tanh %506 : vector<8x128xf32>
    %cst_104 = arith.constant 1.000000e+00 : f32
    %508 = vector.broadcast %cst_104 : f32 to vector<8x128xf32>
    %509 = arith.subf %508, %502 : vector<8x128xf32>
    %510 = arith.mulf %509, %507 : vector<8x128xf32>
    %511 = arith.mulf %502, %477 : vector<8x128xf32>
    %512 = arith.addf %510, %511 : vector<8x128xf32>
    %513 = arith.truncf %512 : vector<8x128xf32> to vector<8x128xbf16>
    %c0_105 = arith.constant 0 : index
    %c0_106 = arith.constant 0 : index
    %514 = vector.load %arg7[%c0_105, %c0_106] : memref<128x896xbf16, #tpu.memory_space<vmem>>, vector<128x896xbf16>
    %cst_107 = arith.constant dense<0.000000e+00> : vector<8x896xf32>
    %515 = tpu.matmul %513, %514, %cst_107 {dimension_numbers = #tpu.dot_dimension_numbers<[1], [0], [0], [1], [0, 0, 1, 1], [], []>} : vector<8x128xbf16>, vector<128x896xbf16>, vector<8x896xf32> -> vector<8x896xf32>
    %516 = arith.addf %515, %229 : vector<8x896xf32>
    %517 = vector.extract_strided_slice %516 {offsets = [0, 384], sizes = [8, 16], strides = [1, 1]} : vector<8x896xf32> to vector<8x16xf32>
    %518 = arith.addf %483, %517 : vector<8x16xf32>
    %519 = tpu.concatenate %273, %308, %343, %378, %413, %448, %483, %518 in 1 : vector<8x16xf32>, vector<8x16xf32>, vector<8x16xf32>, vector<8x16xf32>, vector<8x16xf32>, vector<8x16xf32>, vector<8x16xf32>, vector<8x16xf32> -> vector<8x128xf32>
    %c0_108 = arith.constant 0 : index
    %c0_109 = arith.constant 0 : index
    %520 = vector.load %arg9[%c0_108, %c0_109] : memref<8x128xf32, #tpu.memory_space<vmem>>, vector<8x128xf32>
    tpu.vector_store %arg9[%c0_108, %c0_109], %519 {strides = array<i32>} : memref<8x128xf32, #tpu.memory_space<vmem>>, vector<8x128xf32>,
    return
  }
}

</mosaic_0001>

<bundles_post_ra>
// kernel: tpu_custom_call.1
= control target key start
LH: loop header
LB: loop body
LE: loop exit
PB: predicated region body
PF: predicated region fallthrough
CT: control target
= control target key end

     0   :  { %14 = vsyncpa [#allocation3], 0  ;;  %s5721_s0 = inlined_call_operand.vmem [shape: bf16[64,16], index: 0, kind: input, shape index: {}]   ;;  %s5722_s1 = inlined_call_operand.vmem [shape: bf16[16,16], index: 1, kind: input, shape index: {}]   ;;  %s5723_s2 = inlined_call_operand.hbm [shape: f32[1,16], index: 2, kind: input, shape index: {}]   ;;  %s5724_s3 = inlined_call_operand.vmem [shape: bf16[16,384], index: 3, kind: input, shape index: {}]   ;;  %s5725_s4 = inlined_call_operand.vmem [shape: f32[1,384], index: 4, kind: input, shape index: {}]   ;;  %s5726_s5 = inlined_call_operand.hbm [shape: bf16[128,384], index: 5, kind: input, shape index: {}]   ;;  %s5727_s6 = inlined_call_operand.vmem [shape: f32[1,384], index: 6, kind: input, shape index: {}]   ;;  %s5728_s7 = inlined_call_operand.hbm [shape: bf16[128,896], index: 7, kind: input, shape index: {}]   ;;  %s5729_s8 = inlined_call_operand.vmem [shape: f32[1,896], index: 8, kind: input, shape index: {}]   ;;  %s5730_s9 = inlined_call_operand.hbm [shape: f32[8,128], index: 9, kind: output, shape index: {}]  }
   0x1   :  { %15 = vsyncpa [#allocation6], 0 }
   0x2   :  { %16 = vsyncpa [#allocation4], 0  ;;  %s4168_s30 = smov [#allocation5]  }
   0x3   :  { %s40_s10 = sshll.u32 %s4168_s30, 4  ;;  %s41_s10 = int_to_ptr.vmem [resolvable:$true] %s40_s10 }
   0x4   :  { %s4090_s11 = scalar_lea.vmem %s41_s10, 3072  ;;  %p4095_p1 = scmp.lt.s32.totalorder %s41_s10, %s41_s10 }
   0x5   :  { %p4091_p0 = scmp.ne.s32.totalorder %s41_s10, %s4090_s11  ;;  %p4096_p2 = scmp.lt.s32.totalorder %s4090_s11, %s4090_s11 }
   0x7   :  { %p4097_p3 = por %p4096_p2, %p4095_p1 }
   0x9   :  { %p4098_p4 = pnand %p4097_p3, %p4091_p0 }
   0xb   :  { %4101 = shalt.err (!%p4098_p4)
}
   0xc   :  { %s4169_s12 = smov 192   ;;  %s4170_s13 = smov 12  }
   0xd   :  { %46 = dma.hbm_to_vmem [thread:$0]  %s5726_s5, 3072, %s41_s10, [#allocation6], %s4169_s12, %s4169_s12, %s4170_s13  }
   0xe   :  { %s4171_s16 = smov [#allocation2]   ;;  %s4172_s18 = smov [#allocation7]  }
   0xf   :  { %s27_s17 = sshll.u32 %s4171_s16, 4  ;;  %s54_s19 = sshll.u32 %s4172_s18, 4  ;;  %s28_s17 = int_to_ptr.vmem [resolvable:$true] %s27_s17  ;;  %s55_s19 = int_to_ptr.vmem [resolvable:$true] %s54_s19 }
  0x10   :  { %s4110_s20 = scalar_lea.vmem %s28_s17, 16  ;;  %s4114_s21 = scalar_lea.vmem %s28_s17, 32 }
  0x11   :  { %p4111_p5 = scmp.ne.s32.totalorder %s28_s17, %s4110_s20  ;;  %p4115_p6 = scmp.lt.s32.totalorder %s28_s17, %s28_s17 }
  0x12   :  { %p4116_p7 = scmp.lt.s32.totalorder %s4114_s21, %s4110_s20 }
  0x14   :  { %p4117_p8 = por %p4116_p7, %p4115_p6 }
  0x16   :  { %p4118_p9 = pnand %p4117_p8, %p4111_p5 }
  0x18   :  { %4121 = shalt.err (!%p4118_p9)
}
  0x19   :  { %30 = dma.hbm_to_vmem [thread:$0]  %s5723_s2, 16, %s28_s17, [#allocation3]  }
  0x1a   :  { %s4130_s24 = scalar_lea.vmem %s55_s19, 7168  ;;  %p4135_p11 = scmp.lt.s32.totalorder %s55_s19, %s55_s19 }
  0x1b   :  { %p4131_p10 = scmp.ne.s32.totalorder %s55_s19, %s4130_s24  ;;  %p4136_p12 = scmp.lt.s32.totalorder %s4130_s24, %s4130_s24 }
  0x1d   :  { %p4137_p13 = por %p4136_p12, %p4135_p11 }
  0x1f   :  { %p4138_p0 = pnand %p4137_p13, %p4131_p10 }
  0x21   :  { %4141 = shalt.err (!%p4138_p0)
}
  0x22   :  { %s4173_s5 = smov 448   ;;  %s4174_s25 = smov 28  }
  0x23   :  { %60 = dma.hbm_to_vmem [thread:$0]  %s5728_s7, 7168, %s55_s19, [#allocation6], %s4173_s5, %s4173_s5, %s4174_s25  }
  0x24   :  { %4162 = dma.done.wait [#allocation3], 16  }
  0x25   :  { %4163 = vsyncadd [#allocation3], 4294967280 }
  0x26   :  { %4164 = dma.done.wait [#allocation6], 10240  }
  0x27   :  { %4165 = vsyncadd [#allocation6], 4294957056  ;;  %v5731_v0 = vmov 0   ;;  %v3734_v1 = vld [vmem:[%s5724_s3 + $0x4] ss:$12 sps:$4 sm:$0xff]   ;;  %vm155_vm0 = vcmask 130048   ;;  %v75_v35 = vlaneseq }
  0x28   :  { %200 = vmatprep.mubr.bf16.mxu0 %v5731_v0  ;;  %v3736_v2 = vld [vmem:[%s5724_s3] ss:$12 sps:$4 sm:$0xff]   ;;  %182 = vmatprep.subr.bf16.mxu0 %v3734_v1  ;;  %v4275_v10 = vld [vmem:[#allocation5 + $0x78] ss:$12 sps:$4 sm:$0xff]   ;;  %v3751_v16 = vld [vmem:[%s5721_s0 + $0x10] sm:$0xff]   ;;  %v5733_v17 = vmov 0.0  }
  0x29   :  { %v3737_v3 = vld [vmem:[%s5721_s0] sm:$0xff]   ;;  %183 = vmatpush1.bf16.msra.mxu0 %v3736_v2  ;;  %v4255_v4 = vld [vmem:[#allocation5 + $0xac] ss:$12 sps:$4 sm:$0xff]   ;;  %v4257_v5 = vld [vmem:[#allocation5 + $0xa8] ss:$12 sps:$4 sm:$0xff]   ;;  %vm4177_vm1 = vmmov 0  }
  0x2a   :  { %v4259_v6 = vld [vmem:[#allocation5 + $0x94] ss:$12 sps:$4 sm:$0xff]   ;;  %3422 = vmatprep.mubr.msk.bf16.mxu1 %vm155_vm0, %v3737_v3  ;;  %466 = vmatprep.subr.bf16.mxu0 %v4255_v4  ;;  %v4265_v7 = vld [vmem:[#allocation5 + $0x90] ss:$12 sps:$4 sm:$0xff]   ;;  %v3744_v9 = vld [vmem:[%s5721_s0 + $0x8] sm:$0xff]   ;;  %v4403_v36 = vshrl.u32 %v75_v35, 7 }
  0x2b   :  { %v4269_v8 = vld [vmem:[#allocation5 + $0x7c] ss:$12 sps:$4 sm:$0xff]   ;;  %v4278_v11 = vld [vmem:[#allocation5 + $0x64] ss:$12 sps:$4 sm:$0xff]   ;;  %v4285_v13 = vld [vmem:[#allocation5 + $0x60] ss:$12 sps:$4 sm:$0xff]  }
  0x2c   :  { %3166 = vmatmul.mubr.msk.bf16.vlgmr.msra.gmra.mxu0 %vm155_vm0, %v3737_v3  ;;  %v3761_v12 = vld [vmem:[%s5724_s3 + $0x8] ss:$12 sps:$4 sm:$0xff]   ;;  %v4289_v14 = vld [vmem:[#allocation5 + $0x4c] ss:$12 sps:$4 sm:$0xff]   ;;  %5827 = vst [vmem:[#allocation12_spill] sm:$0xff] %v4403_v36  ;;  %v4406_v37 = vsub.s32 0, %v4403_v36 }
  0x2d   :  { %467 = vmatpush1.bf16.msra.mxu0 %v4257_v5  ;;  %210 = vmatprep.mubr.bf16.mxu0 %v5731_v0  ;;  %v4291_v15 = vld [vmem:[#allocation5 + $0xb0] ss:$12 sps:$4 sm:$0xff]   ;;  %v4298_v18 = vld [vmem:[#allocation5 + $0x48] ss:$12 sps:$4 sm:$0xff]   ;;  %v4307_v21 = vld [vmem:[#allocation5 + $0x98] ss:$12 sps:$4 sm:$0xff]  }
  0x2e   :  { %468 = vmatprep.subr.bf16.mxu0 %v4259_v6  ;;  %3420 = vmatprep.subr.bf16.mxu1 %v3761_v12  ;;  %v4301_v19 = vld [vmem:[#allocation5 + $0x34] ss:$12 sps:$4 sm:$0xff]   ;;  %v4304_v20 = vld [vmem:[#allocation5 + $0x30] ss:$12 sps:$4 sm:$0xff]   ;;  %v4325_v26 = vld [vmem:[#allocation5 + $0x18] ss:$12 sps:$4 sm:$0xff]  }
  0x2f   :  { %3421 = vmatpush3.bf16.msra.mxu1 %v3761_v12  ;;  %v96_v22 = vld [vmem:[%s5721_s0 + $0x18] sm:$0xf]  ;;  %v97_v23 = vld [vmem:[%s5721_s0 + $0x1c] sm:$0xf]  ;;  %v4323_v25 = vld [vmem:[#allocation5 + $0x80] ss:$12 sps:$4 sm:$0xff]  }
  0x30   :  { %3430 = vmatprep.subr.bf16.mxu1 %v5733_v17  ;;  %v4321_v24 = vld [vmem:[#allocation5 + $0x1c] ss:$12 sps:$4 sm:$0xff]   ;;  %v3162_v27 = vcombine.low %v96_v22, %v97_v23  ;;  %v4328_v28 = vld [vmem:[#allocation5 + $0x4] ss:$12 sps:$4 sm:$0xff]   ;;  %v4336_v30 = vld [vmem:[#allocation5] ss:$12 sps:$4 sm:$0xff]  }
  0x31   :  { %469 = vmatpush1.bf16.msra.mxu0 %v4265_v7  ;;  %v4332_v29 = vld [vmem:[#allocation5 + $0x68] ss:$12 sps:$4 sm:$0xff]   ;;  %v4345_v31 = vld [vmem:[#allocation5 + $0x50] ss:$12 sps:$4 sm:$0xff]   ;;  %v4351_v32 = vld [vmem:[#allocation5 + $0x38] ss:$12 sps:$4 sm:$0xff]  }
  0x32   :  { %470 = vmatprep.subr.bf16.mxu0 %v4269_v8  ;;  %3423 = vmatmul.mubr.msk.bf16.vlgmr.msra.gmra.mxu1 %vm155_vm0, %v3744_v9  ;;  %v4357_v33 = vld [vmem:[#allocation5 + $0x20] ss:$12 sps:$4 sm:$0xff]   ;;  %v4364_v34 = vld [vmem:[#allocation5 + $0x8] ss:$12 sps:$4 sm:$0xff]   ;;  %5828 = vst [vmem:[#allocation13_spill] sm:$0xff] %v4406_v37  ;;  %v4412_v40 = vsub.s32 1, %v4403_v36 }
  0x33   :  { %3431 = vmatpush3.bf16.msra.mxu1 %v4291_v15  ;;  %3426 = vmatprep.mubr.msk.bf16.mxu1 %vm155_vm0, %v3751_v16  ;;  %v102_v38 = vld [vmem:[%s5725_s4] sm:$0x7]  ;;  %v4421_v48 = vsub.s32 2, %v4403_v36  ;;  %s4179_s25 = smov 32   ;;  %s4180_s26 = smov 48   ;;  %vm3130_vm2 = vcmask 261120  }
  0x34   :  { %3167 = vmatmul.mubr.msk.bf16.gmra.mxu0 %vm155_vm0, %v3744_v9  ;;  %3432 = vmatprep.subr.bf16.mxu1 %v5733_v17  ;;  %5829 = vst [vmem:[#allocation14_spill] sm:$0xff] %v4412_v40  ;;  %v107_v42 = vrot.slane %v102_v38, %v4406_v37  ;;  %v111_v44 = vrot.slane %v102_v38, %v4412_v40  ;;  %s4181_s27 = smov 64   ;;  %s4182_s2 = smov 80   ;;  %vm3132_vm3 = vcmask 392192   ;;  %vm3134_vm4 = vcmask 523264  }
  0x35   :  { %471 = vmatpush1.bf16.msra.mxu0 %v4275_v10  ;;  %220 = vmatprep.mubr.bf16.mxu0 %v5731_v0  ;;  %v4428_v53 = vrot.slane %v102_v38, %v4421_v48  ;;  %s4183_s28 = smov 96   ;;  %s4184_s29 = smov 112   ;;  %vm3136_vm5 = vcmask 654336   ;;  %vm3138_vm6 = vcmask 785408   ;;  %vm3140_vm7 = vcmask 916480  }
  0x36   :  { %472 = vmatprep.subr.bf16.mxu0 %v4278_v11  ;;  %s4185_s30 = smov [#allocation8]  }
  0x37   :  { %3433 = vmatpush3.bf16.msra.mxu1 %v4307_v21  ;;  %s3149_s10 = sshll.u32 %s4185_s30, 4  ;;  %s3150_s10 = int_to_ptr.vmem [resolvable:$true] %s3149_s10 }
  0x38   :  { %3434 = vmatprep.subr.bf16.mxu1 %v5733_v17  ;;  %s4142_s11 = scalar_lea.vmem %s3150_s10, 128  ;;  %p4147_p2 = scmp.lt.s32.totalorder %s3150_s10, %s3150_s10 }
  0x39   :  { %473 = vmatpush1.bf16.msra.mxu0 %v4285_v13  ;;  %p4143_p1 = scmp.ne.s32.totalorder %s3150_s10, %s4142_s11  ;;  %p4148_p3 = scmp.lt.s32.totalorder %s4142_s11, %s4142_s11 }
  0x3a   :  { %474 = vmatprep.subr.bf16.mxu0 %v4289_v14  ;;  %3427 = vmatmul.mubr.msk.bf16.gmra.mxu1 %vm155_vm0, %v3162_v27 }
  0x3b   :  { %3435 = vmatpush3.bf16.msra.mxu1 %v4323_v25  ;;  %3446 = vmatprep.mubr.msk.bf16.mxu1 %vm4177_vm1, %v5733_v17  ;;  %p4149_p4 = por %p4148_p3, %p4147_p2 }
  0x3c   :  { %3168 = vmatmul.mubr.msk.bf16.gmra.mxu0 %vm155_vm0, %v3751_v16  ;;  %3436 = vmatprep.subr.bf16.mxu1 %v5733_v17 }
  0x3d   :  { %475 = vmatpush1.bf16.msra.mxu0 %v4298_v18  ;;  %230 = vmatprep.mubr.bf16.mxu0 %v5731_v0  ;;  %p4150_p5 = pnand %p4149_p4, %p4143_p1 }
  0x3e   :  { %476 = vmatprep.subr.bf16.mxu0 %v4301_v19 }
  0x3f   :  { %3437 = vmatpush3.bf16.msra.mxu1 %v4332_v29 }
  0x40   :  { %3438 = vmatprep.subr.bf16.mxu1 %v5733_v17 }
  0x41   :  { %477 = vmatpush1.bf16.msra.mxu0 %v4304_v20 }
  0x42   :  { %478 = vmatprep.subr.bf16.mxu0 %v4321_v24 }
  0x43   :  { %3439 = vmatpush3.bf16.msra.mxu1 %v4345_v31 }
  0x44   :  { %3169 = vmatmul.mubr.msk.bf16.gmra.mxu0 %vm155_vm0, %v3162_v27  ;;  %3440 = vmatprep.subr.bf16.mxu1 %v5733_v17 }
  0x45   :  { %479 = vmatpush1.bf16.msra.mxu0 %v4325_v26  ;;  %498 = vmatprep.mubr.bf16.mxu0 %v5731_v0 }
  0x46   :  { %480 = vmatprep.subr.bf16.mxu0 %v4328_v28 }
  0x47   :  { %3441 = vmatpush3.bf16.msra.mxu1 %v4351_v32 }
  0x48   :  { %3442 = vmatprep.subr.bf16.mxu1 %v5733_v17 }
  0x49   :  { %481 = vmatpush1.bf16.msra.mxu0 %v4336_v30 }
  0x4a   :  { %569 = vmatprep.subr.bf16.mxu0 %v4255_v4 }
  0x4b   :  { %3443 = vmatpush3.bf16.msra.mxu1 %v4357_v33 }
  0x4c   :  { %499 = vmatmul.mubr.bf16.vlgmr.msra.gmra.mxu0 %v5731_v0  ;;  %3444 = vmatprep.subr.bf16.mxu1 %v5733_v17 }
  0x4d   :  { %570 = vmatpush1.bf16.msra.mxu0 %v4257_v5  ;;  %601 = vmatprep.mubr.bf16.mxu0 %v5731_v0 }
  0x4e   :  { %571 = vmatprep.subr.bf16.mxu0 %v4259_v6 }
  0x4f   :  { %3445 = vmatpush3.bf16.msra.mxu1 %v4364_v34 }
  0x50   :  { %3450 = vmatprep.subr.bf16.mxu1 %v5733_v17 }
  0x51   :  { %572 = vmatpush1.bf16.msra.mxu0 %v4265_v7 }
  0x52   :  { %573 = vmatprep.subr.bf16.mxu0 %v4269_v8  ;;  %3447 = vmatmul.mubr.bf16.vlgmr.msra.gmra.mxu1 %v5731_v0 }
  0x53   :  { %3451 = vmatpush3.bf16.msra.mxu1 %v4291_v15  ;;  %3466 = vmatprep.mubr.msk.bf16.mxu1 %vm4177_vm1, %v5733_v17 }
  0x54   :  { %3452 = vmatprep.subr.bf16.mxu1 %v5733_v17 }
  0x55   :  { %574 = vmatpush1.bf16.msra.mxu0 %v4275_v10 }
  0x56   :  { %575 = vmatprep.subr.bf16.mxu0 %v4278_v11 }
  0x57   :  { %3453 = vmatpush3.bf16.msra.mxu1 %v4307_v21 }
  0x58   :  { %3454 = vmatprep.subr.bf16.mxu1 %v5733_v17 }
  0x59   :  { %576 = vmatpush1.bf16.msra.mxu0 %v4285_v13 }
  0x5a   :  { %577 = vmatprep.subr.bf16.mxu0 %v4289_v14 }
  0x5b   :  { %3455 = vmatpush3.bf16.msra.mxu1 %v4323_v25 }
  0x5c   :  { %3456 = vmatprep.subr.bf16.mxu1 %v5733_v17 }
  0x5d   :  { %578 = vmatpush1.bf16.msra.mxu0 %v4298_v18 }
  0x5e   :  { %579 = vmatprep.subr.bf16.mxu0 %v4301_v19 }
  0x5f   :  { %3457 = vmatpush3.bf16.msra.mxu1 %v4332_v29 }
  0x60   :  { %3458 = vmatprep.subr.bf16.mxu1 %v5733_v17 }
  0x61   :  { %580 = vmatpush1.bf16.msra.mxu0 %v4304_v20 }
  0x62   :  { %581 = vmatprep.subr.bf16.mxu0 %v4321_v24 }
  0x63   :  { %3459 = vmatpush3.bf16.msra.mxu1 %v4345_v31 }
  0x64   :  { %3460 = vmatprep.subr.bf16.mxu1 %v5733_v17 }
  0x65   :  { %582 = vmatpush1.bf16.msra.mxu0 %v4325_v26 }
  0x66   :  { %583 = vmatprep.subr.bf16.mxu0 %v4328_v28 }
  0x67   :  { %3461 = vmatpush3.bf16.msra.mxu1 %v4351_v32 }
  0x68   :  { %3462 = vmatprep.subr.bf16.mxu1 %v5733_v17 }
  0x69   :  { %584 = vmatpush1.bf16.msra.mxu0 %v4336_v30 }
  0x6a   :  { %672 = vmatprep.subr.bf16.mxu0 %v4255_v4 }
  0x6b   :  { %3463 = vmatpush3.bf16.msra.mxu1 %v4357_v33 }
  0x6c   :  { %3464 = vmatprep.subr.bf16.mxu1 %v5733_v17 }
  0x6f   :  { %3465 = vmatpush3.bf16.msra.mxu1 %v4364_v34 }
  0x70   :  { %3470 = vmatprep.subr.bf16.mxu1 %v5733_v17 }
  0xec   :  { %v202_v39 = vpop.f32.mrf.mxu0 }
  0xed   :  { %v203_v17 = vadd.f32 %v202_v39, %v107_v42 }
  0xee   :  { %v204_v41 = vpop.f32.mrf.mxu0 }
  0xf0   :  { %v206_v43 = vpop.f32.mrf.mxu0 }
  0xf1   :  { %v4416_v45 = vadd.f32 %v206_v43, %v107_v42 }
  0xf2   :  { %v208_v46 = vpop.f32.mrf.mxu0  ;;  %v3424_v57 = vpop.f32.mrf.mxu1 }
  0xf3   :  { %v4418_v47 = vadd.f32 %v208_v46, %v111_v44  ;;  %v4435_v59 = vadd.f32 %v3424_v57, %v4428_v53 }
  0xf4   :  { %v212_v49 = vpop.f32.mrf.mxu0  ;;  %v275_v61 = vpop.f32.mrf.mxu1 }
  0xf5   :  { %v4423_v50 = vadd.f32 %v212_v49, %v107_v42 }
  0xf6   :  { %v214_v51 = vpop.f32.mrf.mxu0  ;;  %v3425_v1 = vpop.f32.mrf.mxu1 }
  0xf7   :  { %v4425_v52 = vadd.f32 %v214_v51, %v111_v44  ;;  %v4442_v3 = vadd.f32 %v3425_v1, %v4428_v53 }
  0xf8   :  { %v216_v54 = vpop.f32.mrf.mxu0  ;;  %v278_v12 = vpop.f32.mrf.mxu1 }
  0xf9   :  { %v4430_v55 = vadd.f32 %v216_v54, %v107_v42  ;;  %v4447_v22 = vadd.f32 %v278_v12, %v4428_v53 }
  0xfa   :  { %v218_v56 = vpop.f32.mrf.mxu0  ;;  %v3428_v27 = vpop.f32.mrf.mxu1 }
  0xfb   :  { %v4432_v58 = vadd.f32 %v218_v56, %v111_v44  ;;  %v4452_v38 = vadd.f32 %v3428_v27, %v4428_v53  ;;  %v73_v56 = vld [vmem:[%s5727_s6] sm:$0x7] }
  0xfc   :  { %v222_v60 = vpop.f32.mrf.mxu0  ;;  %v291_v46 = vpop.f32.mrf.mxu1 }
  0xfd   :  { %v4437_v62 = vadd.f32 %v222_v60, %v107_v42  ;;  %5830 = vst [vmem:[#allocation15_spill] sm:$0xff] %v4452_v38  ;;  %v4457_v51 = vadd.f32 %v291_v46, %v4428_v53 }
  0xfe   :  { %v224_v63 = vpop.f32.mrf.mxu0  ;;  %v3429_v57 = vpop.f32.mrf.mxu1 }
  0xff   :  { %v4439_v2 = vadd.f32 %v224_v63, %v111_v44  ;;  %v4465_v63 = vadd.f32 %v3429_v57, %v4428_v53  ;;  %v4479_v57 = vrot.slane %v73_v56, %v4412_v40  ;;  %v4483_v40 = vrot.slane %v73_v56, %v4421_v48 }
 0x100   :  { %v226_v9 = vpop.f32.mrf.mxu0 }
 0x101   :  { %v4444_v16 = vadd.f32 %v226_v9, %v107_v42  ;;  %5833 = vst [vmem:[#allocation18_spill] sm:$0xff] %v4465_v63  ;;  %v294_v9 = vpop.f32.mrf.mxu1 }
 0x102   :  { %v228_v23 = vpop.f32.mrf.mxu0  ;;  %v4473_v27 = vadd.f32 %v294_v9, %v4428_v53 }
 0x103   :  { %v4449_v35 = vadd.f32 %v228_v23, %v111_v44  ;;  %v4470_v23 = vrot.slane %v73_v56, %v4406_v37 }
 0x104   :  { %v232_v43 = vpop.f32.mrf.mxu0  ;;  %5835 = vst [vmem:[#allocation20_spill] sm:$0xff] %v4473_v27 }
 0x105   :  { %v4454_v49 = vadd.f32 %v232_v43, %v107_v42 }
 0x106   :  { %v234_v54 = vpop.f32.mrf.mxu0 }
 0x107   :  { %5831 = vst [vmem:[#allocation16_spill] sm:$0xff] %v4454_v49  ;;  %v4462_v60 = vadd.f32 %v234_v54, %v111_v44 }
 0x108   :  { %v236_v1 = vpop.f32.mrf.mxu0 }
 0x109   :  { %5832 = vst [vmem:[#allocation17_spill] sm:$0xff] %v4462_v60  ;;  %v4467_v12 = vadd.f32 %v236_v1, %v107_v42  ;;  %v205_v60 = vadd.f32 %v204_v41, %v111_v44  ;;  %v276_v41 = vadd.f32 %v275_v61, %v4428_v53  ;;  %v5837_v53 = vmov 0.0  }
 0x10a   :  { %v238_v43 = vpop.f32.mrf.mxu0  ;;  %v5838_v61 = vmov 0  }
 0x10b   :  { %5834 = vst [vmem:[#allocation19_spill] sm:$0xff] %v4467_v12  ;;  %v4475_v46 = vadd.f32 %v238_v43, %v111_v44 }
 0x10c   :  { %v500_v0 = vpop.f32.mrf.mxu0 }
 0x10d   :  { %5836 = vst [vmem:[#allocation21_spill] sm:$0xff] %v4475_v46  ;;  %v501_v54 = vadd.f32 %v500_v0, %v4470_v23 }
 0x10e   :  { %v502_v36 = vpop.f32.mrf.mxu0 }
 0x10f   :  { %v547_v63 = vadd.f32 %v501_v54, %v203_v17  ;;  %v503_v37 = vadd.f32 %v502_v36, %v4479_v57 }
 0x110   :  { %v504_v1 = vpop.f32.mrf.mxu0 }
 0x111   :  { %v3198_v12 = vmul.f32 -1.442695, %v547_v63  ;;  %v554_v9 = vadd.f32 %v503_v37, %v205_v60 }
 0x112   :  { %v505_v38 = vpop.f32.mrf.mxu0  ;;  %v541_v43 = vpop.f32.mrf.mxu1 }
 0x113   :  { %3855 = vpow2.f32 %v3198_v12  ;;  %v3199_v49 = vmul.f32 -1.442695, %v554_v9  ;;  %v542_v36 = vadd.f32 %v541_v43, %v4483_v40 }
 0x114   :  { %v3448_v46 = vpop.f32.mrf.mxu1 }
 0x115   :  { %3857 = vpow2.f32 %v3199_v49 }
 0x116   :  { %v544_v39 = vpop.f32.mrf.mxu1 }
 0x118   :  { %v3449_v0 = vpop.f32.mrf.mxu1 }
 0x120   :  { %v3856_v42 = vpop.eup %3855 }
 0x121   :  { %v551_v27 = vadd.f32 1.0, %v3856_v42 }
 0x122   :  { %v3858_v17 = vpop.eup %3857 }
 0x123   :  { %3859 = vrcp.f32 %v551_v27  ;;  %v558_v63 = vadd.f32 1.0, %v3858_v17 }
 0x125   :  { %3861 = vrcp.f32 %v558_v63 }
 0x130   :  { %v3860_v38 = vpop.eup %3859 }
 0x131   :  { %v561_v37 = vmul.f32 %v3860_v38, %v542_v36 }
 0x132   :  { %v3862_v49 = vpop.eup %3861 }
 0x133   :  { %v562_v44 = vadd.f32 %v561_v37, %v276_v41  ;;  %v564_v60 = vsub.f32 1.0, %v3862_v49  ;;  %v566_v54 = vmul.f32 0.0, %v3862_v49 }
 0x135   :  { %3863 = vtanh.f32 %v562_v44 }
 0x142   :  { %v3864_v12 = vpop.eup %3863 }
 0x143   :  { %v565_v46 = vmul.f32 %v3864_v12, %v564_v60 }
 0x145   :  { %v4487_v27 = vadd.f32 %v566_v54, %v565_v46 }
 0x147   :  { %v568_v56 = vpack.c.bf16 %v4487_v27, %v4487_v27 }
 0x149   :  { %602 = vmatmul.mubr.bf16.vlgmr.msra.gmra.mxu0 %v568_v56  ;;  %3467 = vmatmul.mubr.bf16.vlgmr.msra.gmra.mxu1 %v568_v56 }
 0x14a   :  { %673 = vmatpush1.bf16.msra.mxu0 %v4257_v5  ;;  %3471 = vmatpush3.bf16.msra.mxu1 %v4291_v15 }
 0x14b   :  { %674 = vmatprep.subr.bf16.mxu0 %v4259_v6  ;;  %3472 = vmatprep.subr.bf16.mxu1 %v5837_v53 }
 0x14c   :  { %704 = vmatprep.mubr.bf16.mxu0 %v5838_v61  ;;  %3486 = vmatprep.mubr.msk.bf16.mxu1 %vm4177_vm1, %v5837_v53 }
 0x14e   :  { %675 = vmatpush1.bf16.msra.mxu0 %v4265_v7  ;;  %3473 = vmatpush3.bf16.msra.mxu1 %v4307_v21 }
 0x14f   :  { %676 = vmatprep.subr.bf16.mxu0 %v4269_v8  ;;  %3474 = vmatprep.subr.bf16.mxu1 %v5837_v53 }
 0x152   :  { %677 = vmatpush1.bf16.msra.mxu0 %v4275_v10  ;;  %3475 = vmatpush3.bf16.msra.mxu1 %v4323_v25 }
 0x153   :  { %678 = vmatprep.subr.bf16.mxu0 %v4278_v11  ;;  %3476 = vmatprep.subr.bf16.mxu1 %v5837_v53 }
 0x156   :  { %679 = vmatpush1.bf16.msra.mxu0 %v4285_v13  ;;  %3477 = vmatpush3.bf16.msra.mxu1 %v4332_v29 }
 0x157   :  { %680 = vmatprep.subr.bf16.mxu0 %v4289_v14  ;;  %3478 = vmatprep.subr.bf16.mxu1 %v5837_v53 }
 0x15a   :  { %681 = vmatpush1.bf16.msra.mxu0 %v4298_v18  ;;  %3479 = vmatpush3.bf16.msra.mxu1 %v4345_v31 }
 0x15b   :  { %682 = vmatprep.subr.bf16.mxu0 %v4301_v19  ;;  %3480 = vmatprep.subr.bf16.mxu1 %v5837_v53 }
 0x15e   :  { %683 = vmatpush1.bf16.msra.mxu0 %v4304_v20  ;;  %3481 = vmatpush3.bf16.msra.mxu1 %v4351_v32 }
 0x15f   :  { %684 = vmatprep.subr.bf16.mxu0 %v4321_v24  ;;  %3482 = vmatprep.subr.bf16.mxu1 %v5837_v53 }
 0x162   :  { %685 = vmatpush1.bf16.msra.mxu0 %v4325_v26  ;;  %3483 = vmatpush3.bf16.msra.mxu1 %v4357_v33 }
 0x163   :  { %686 = vmatprep.subr.bf16.mxu0 %v4328_v28  ;;  %3484 = vmatprep.subr.bf16.mxu1 %v5837_v53 }
 0x166   :  { %687 = vmatpush1.bf16.msra.mxu0 %v4336_v30  ;;  %3485 = vmatpush3.bf16.msra.mxu1 %v4364_v34 }
 0x167   :  { %775 = vmatprep.subr.bf16.mxu0 %v4255_v4  ;;  %3490 = vmatprep.subr.bf16.mxu1 %v5837_v53 }
 0x209   :  { %v603_v1 = vpop.f32.mrf.mxu0  ;;  %v644_v9 = vpop.f32.mrf.mxu1 }
 0x20a   :  { %v604_v43 = vadd.f32 %v603_v1, %v4470_v23  ;;  %v645_v56 = vadd.f32 %v644_v9, %v4483_v40 }
 0x20b   :  { %v605_v39 = vpop.f32.mrf.mxu0  ;;  %v3468_v42 = vpop.f32.mrf.mxu1 }
 0x20c   :  { %v650_v0 = vadd.f32 %v604_v43, %v4416_v45  ;;  %v606_v38 = vadd.f32 %v605_v39, %v4479_v57 }
 0x20d   :  { %v607_v17 = vpop.f32.mrf.mxu0  ;;  %v647_v63 = vpop.f32.mrf.mxu1 }
 0x20e   :  { %v3200_v36 = vmul.f32 -1.442695, %v650_v0  ;;  %v657_v44 = vadd.f32 %v606_v38, %v4418_v47 }
 0x20f   :  { %v608_v41 = vpop.f32.mrf.mxu0  ;;  %v3469_v37 = vpop.f32.mrf.mxu1 }
 0x210   :  { %3865 = vpow2.f32 %v3200_v36  ;;  %v3201_v49 = vmul.f32 -1.442695, %v657_v44 }
 0x212   :  { %3867 = vpow2.f32 %v3201_v49 }
 0x21d   :  { %v3866_v60 = vpop.eup %3865 }
 0x21e   :  { %v654_v12 = vadd.f32 1.0, %v3866_v60 }
 0x21f   :  { %v3868_v46 = vpop.eup %3867 }
 0x220   :  { %3869 = vrcp.f32 %v654_v12  ;;  %v661_v54 = vadd.f32 1.0, %v3868_v46 }
 0x222   :  { %3871 = vrcp.f32 %v661_v54 }
 0x22d   :  { %v3870_v45 = vpop.eup %3869 }
 0x22e   :  { %v664_v1 = vmul.f32 %v3870_v45, %v645_v56 }
 0x22f   :  { %v3872_v39 = vpop.eup %3871 }
 0x230   :  { %v665_v43 = vadd.f32 %v664_v1, %v4447_v22  ;;  %v667_v42 = vsub.f32 1.0, %v3872_v39  ;;  %v669_v47 = vmul.f32 %v3872_v39, %v4487_v27 }
 0x232   :  { %3873 = vtanh.f32 %v665_v43 }
 0x23f   :  { %v3874_v0 = vpop.eup %3873 }
 0x240   :  { %v668_v17 = vmul.f32 %v3874_v0, %v667_v42 }
 0x242   :  { %v4533_v63 = vadd.f32 %v669_v47, %v668_v17 }
 0x244   :  { %v671_v36 = vpack.c.bf16 %v4533_v63, %v4533_v63 }
 0x246   :  { %705 = vmatmul.mubr.bf16.vlgmr.msra.gmra.mxu0 %v671_v36  ;;  %3487 = vmatmul.mubr.bf16.vlgmr.msra.gmra.mxu1 %v671_v36 }
 0x247   :  { %776 = vmatpush1.bf16.msra.mxu0 %v4257_v5  ;;  %3491 = vmatpush3.bf16.msra.mxu1 %v4291_v15 }
 0x248   :  { %777 = vmatprep.subr.bf16.mxu0 %v4259_v6  ;;  %3492 = vmatprep.subr.bf16.mxu1 %v5837_v53 }
 0x249   :  { %807 = vmatprep.mubr.bf16.mxu0 %v5838_v61  ;;  %3506 = vmatprep.mubr.msk.bf16.mxu1 %vm4177_vm1, %v5837_v53 }
 0x24b   :  { %778 = vmatpush1.bf16.msra.mxu0 %v4265_v7  ;;  %3493 = vmatpush3.bf16.msra.mxu1 %v4307_v21 }
 0x24c   :  { %779 = vmatprep.subr.bf16.mxu0 %v4269_v8  ;;  %3494 = vmatprep.subr.bf16.mxu1 %v5837_v53 }
 0x24f   :  { %780 = vmatpush1.bf16.msra.mxu0 %v4275_v10  ;;  %3495 = vmatpush3.bf16.msra.mxu1 %v4323_v25 }
 0x250   :  { %781 = vmatprep.subr.bf16.mxu0 %v4278_v11  ;;  %3496 = vmatprep.subr.bf16.mxu1 %v5837_v53 }
 0x253   :  { %782 = vmatpush1.bf16.msra.mxu0 %v4285_v13  ;;  %3497 = vmatpush3.bf16.msra.mxu1 %v4332_v29 }
 0x254   :  { %783 = vmatprep.subr.bf16.mxu0 %v4289_v14  ;;  %3498 = vmatprep.subr.bf16.mxu1 %v5837_v53 }
 0x257   :  { %784 = vmatpush1.bf16.msra.mxu0 %v4298_v18  ;;  %3499 = vmatpush3.bf16.msra.mxu1 %v4345_v31 }
 0x258   :  { %785 = vmatprep.subr.bf16.mxu0 %v4301_v19  ;;  %3500 = vmatprep.subr.bf16.mxu1 %v5837_v53 }
 0x25b   :  { %786 = vmatpush1.bf16.msra.mxu0 %v4304_v20  ;;  %3501 = vmatpush3.bf16.msra.mxu1 %v4351_v32 }
 0x25c   :  { %787 = vmatprep.subr.bf16.mxu0 %v4321_v24  ;;  %3502 = vmatprep.subr.bf16.mxu1 %v5837_v53 }
 0x25f   :  { %788 = vmatpush1.bf16.msra.mxu0 %v4325_v26  ;;  %3503 = vmatpush3.bf16.msra.mxu1 %v4357_v33 }
 0x260   :  { %789 = vmatprep.subr.bf16.mxu0 %v4328_v28  ;;  %3504 = vmatprep.subr.bf16.mxu1 %v5837_v53 }
 0x263   :  { %790 = vmatpush1.bf16.msra.mxu0 %v4336_v30  ;;  %3505 = vmatpush3.bf16.msra.mxu1 %v4364_v34 }
 0x264   :  { %878 = vmatprep.subr.bf16.mxu0 %v4255_v4  ;;  %3510 = vmatprep.subr.bf16.mxu1 %v5837_v53 }
 0x306   :  { %v706_v22 = vpop.f32.mrf.mxu0  ;;  %v747_v27 = vpop.f32.mrf.mxu1 }
 0x307   :  { %v707_v9 = vadd.f32 %v706_v22, %v4470_v23  ;;  %v748_v0 = vadd.f32 %v747_v27, %v4483_v40 }
 0x308   :  { %v708_v38 = vpop.f32.mrf.mxu0  ;;  %v3488_v41 = vpop.f32.mrf.mxu1 }
 0x309   :  { %v753_v37 = vadd.f32 %v707_v9, %v4423_v50  ;;  %v709_v12 = vadd.f32 %v708_v38, %v4479_v57 }
 0x30a   :  { %v710_v44 = vpop.f32.mrf.mxu0  ;;  %v750_v49 = vpop.f32.mrf.mxu1 }
 0x30b   :  { %v3202_v60 = vmul.f32 -1.442695, %v753_v37  ;;  %v760_v56 = vadd.f32 %v709_v12, %v4425_v52 }
 0x30c   :  { %v711_v46 = vpop.f32.mrf.mxu0  ;;  %v3489_v54 = vpop.f32.mrf.mxu1 }
 0x30d   :  { %3875 = vpow2.f32 %v3202_v60  ;;  %v3203_v45 = vmul.f32 -1.442695, %v760_v56 }
 0x30f   :  { %3877 = vpow2.f32 %v3203_v45 }
 0x31a   :  { %v3876_v1 = vpop.eup %3875 }
 0x31b   :  { %v757_v43 = vadd.f32 1.0, %v3876_v1 }
 0x31c   :  { %v3878_v39 = vpop.eup %3877 }
 0x31d   :  { %3879 = vrcp.f32 %v757_v43  ;;  %v764_v42 = vadd.f32 1.0, %v3878_v39 }
 0x31f   :  { %3881 = vrcp.f32 %v764_v42 }
 0x32a   :  { %v3880_v50 = vpop.eup %3879 }
 0x32b   :  { %v767_v17 = vmul.f32 %v3880_v50, %v748_v0 }
 0x32c   :  { %v3882_v36 = vpop.eup %3881 }
 0x32d   :  { %v768_v47 = vadd.f32 %v767_v17, %v4435_v59  ;;  %v770_v22 = vsub.f32 1.0, %v3882_v36  ;;  %v772_v52 = vmul.f32 %v3882_v36, %v4533_v63 }
 0x32f   :  { %3883 = vtanh.f32 %v768_v47 }
 0x33c   :  { %v3884_v9 = vpop.eup %3883 }
 0x33d   :  { %v771_v38 = vmul.f32 %v3884_v9, %v770_v22 }
 0x33f   :  { %v4579_v41 = vadd.f32 %v772_v52, %v771_v38  ;;  %v4629_v38 = vld [vmem:[#allocation5 + $0xa8] ss:$12 sps:$4 sm:$0xff]   ;;  %v4640_v52 = vld [vmem:[#allocation5 + $0x90] ss:$12 sps:$4 sm:$0xff]  }
 0x341   :  { %v774_v37 = vpack.c.bf16 %v4579_v41, %v4579_v41 }
 0x343   :  { %808 = vmatmul.mubr.bf16.vlgmr.msra.gmra.mxu0 %v774_v37  ;;  %3507 = vmatmul.mubr.bf16.vlgmr.msra.gmra.mxu1 %v774_v37 }
 0x344   :  { %879 = vmatpush1.bf16.msra.mxu0 %v4257_v5  ;;  %3511 = vmatpush3.bf16.msra.mxu1 %v4291_v15 }
 0x345   :  { %880 = vmatprep.subr.bf16.mxu0 %v4259_v6  ;;  %3512 = vmatprep.subr.bf16.mxu1 %v5837_v53 }
 0x346   :  { %910 = vmatprep.mubr.bf16.mxu0 %v5838_v61  ;;  %3526 = vmatprep.mubr.msk.bf16.mxu1 %vm4177_vm1, %v5837_v53 }
 0x348   :  { %881 = vmatpush1.bf16.msra.mxu0 %v4265_v7  ;;  %3513 = vmatpush3.bf16.msra.mxu1 %v4307_v21 }
 0x349   :  { %882 = vmatprep.subr.bf16.mxu0 %v4269_v8  ;;  %3514 = vmatprep.subr.bf16.mxu1 %v5837_v53 }
 0x34c   :  { %883 = vmatpush1.bf16.msra.mxu0 %v4275_v10  ;;  %3515 = vmatpush3.bf16.msra.mxu1 %v4323_v25 }
 0x34d   :  { %884 = vmatprep.subr.bf16.mxu0 %v4278_v11  ;;  %3516 = vmatprep.subr.bf16.mxu1 %v5837_v53 }
 0x350   :  { %885 = vmatpush1.bf16.msra.mxu0 %v4285_v13  ;;  %3517 = vmatpush3.bf16.msra.mxu1 %v4332_v29 }
 0x351   :  { %886 = vmatprep.subr.bf16.mxu0 %v4289_v14  ;;  %3518 = vmatprep.subr.bf16.mxu1 %v5837_v53 }
 0x354   :  { %887 = vmatpush1.bf16.msra.mxu0 %v4298_v18  ;;  %3519 = vmatpush3.bf16.msra.mxu1 %v4345_v31 }
 0x355   :  { %888 = vmatprep.subr.bf16.mxu0 %v4301_v19  ;;  %3520 = vmatprep.subr.bf16.mxu1 %v5837_v53 }
 0x358   :  { %889 = vmatpush1.bf16.msra.mxu0 %v4304_v20  ;;  %3521 = vmatpush3.bf16.msra.mxu1 %v4351_v32 }
 0x359   :  { %890 = vmatprep.subr.bf16.mxu0 %v4321_v24  ;;  %3522 = vmatprep.subr.bf16.mxu1 %v5837_v53 }
 0x35c   :  { %891 = vmatpush1.bf16.msra.mxu0 %v4325_v26  ;;  %3523 = vmatpush3.bf16.msra.mxu1 %v4357_v33 }
 0x35d   :  { %892 = vmatprep.subr.bf16.mxu0 %v4328_v28  ;;  %3524 = vmatprep.subr.bf16.mxu1 %v5837_v53 }
 0x360   :  { %893 = vmatpush1.bf16.msra.mxu0 %v4336_v30  ;;  %3525 = vmatpush3.bf16.msra.mxu1 %v4364_v34 }
 0x361   :  { %981 = vmatprep.subr.bf16.mxu0 %v4255_v4  ;;  %3530 = vmatprep.subr.bf16.mxu1 %v5837_v53 }
 0x403   :  { %v809_v5 = vpop.f32.mrf.mxu0  ;;  %v850_v6 = vpop.f32.mrf.mxu1 }
 0x404   :  { %v810_v7 = vadd.f32 %v809_v5, %v4470_v23  ;;  %v851_v39 = vadd.f32 %v850_v6, %v4483_v40 }
 0x405   :  { %v811_v8 = vpop.f32.mrf.mxu0  ;;  %v3508_v59 = vpop.f32.mrf.mxu1 }
 0x406   :  { %v856_v63 = vadd.f32 %v810_v7, %v4430_v55  ;;  %v812_v60 = vadd.f32 %v811_v8, %v4479_v57 }
 0x407   :  { %v813_v27 = vpop.f32.mrf.mxu0  ;;  %v853_v44 = vpop.f32.mrf.mxu1 }
 0x408   :  { %v3204_v49 = vmul.f32 -1.442695, %v856_v63  ;;  %v863_v4 = vadd.f32 %v812_v60, %v4432_v58 }
 0x409   :  { %v814_v12 = vpop.f32.mrf.mxu0  ;;  %v3509_v46 = vpop.f32.mrf.mxu1 }
 0x40a   :  { %3885 = vpow2.f32 %v3204_v49  ;;  %v3205_v54 = vmul.f32 -1.442695, %v863_v4  ;;  %v4010_v4 = vld [vmem:[#allocation5 + $0xb0] ss:$12 sps:$4 sm:$0xff]  }
 0x40c   :  { %3887 = vpow2.f32 %v3205_v54  ;;  %v4012_v54 = vld [vmem:[#allocation5 + $0x78] ss:$12 sps:$4 sm:$0xff]  }
 0x417   :  { %v3886_v56 = vpop.eup %3885 }
 0x418   :  { %v860_v45 = vadd.f32 1.0, %v3886_v56  ;;  %v4013_v56 = vld [vmem:[#allocation5 + $0x80] ss:$12 sps:$4 sm:$0xff]  }
 0x419   :  { %v3888_v1 = vpop.eup %3887 }
 0x41a   :  { %3889 = vrcp.f32 %v860_v45  ;;  %v867_v43 = vadd.f32 1.0, %v3888_v1  ;;  %v4014_v45 = vld [vmem:[#allocation5 + $0x64] ss:$12 sps:$4 sm:$0xff]   ;;  %v4015_v1 = vld [vmem:[#allocation5 + $0x60] ss:$12 sps:$4 sm:$0xff]  }
 0x41c   :  { %3891 = vrcp.f32 %v867_v43  ;;  %v4016_v43 = vld [vmem:[#allocation5 + $0x68] ss:$12 sps:$4 sm:$0xff]  }
 0x427   :  { %v3890_v55 = vpop.eup %3889 }
 0x428   :  { %v870_v42 = vmul.f32 %v3890_v55, %v851_v39  ;;  %v4017_v39 = vld [vmem:[#allocation5 + $0x4c] ss:$12 sps:$4 sm:$0xff]   ;;  %v4018_v55 = vld [vmem:[#allocation5 + $0x48] ss:$12 sps:$4 sm:$0xff]  }
 0x429   :  { %v3892_v50 = vpop.eup %3891 }
 0x42a   :  { %v871_v0 = vadd.f32 %v870_v42, %v4442_v3  ;;  %v873_v17 = vsub.f32 1.0, %v3892_v50  ;;  %v875_v58 = vmul.f32 %v3892_v50, %v4579_v41  ;;  %v4633_v3 = vld [vmem:[#allocation5 + $0x94] ss:$12 sps:$4 sm:$0xff]   ;;  %v4644_v41 = vld [vmem:[#allocation5 + $0x7c] ss:$12 sps:$4 sm:$0xff]  }
 0x42b   :  { %v4019_v42 = vld [vmem:[#allocation5 + $0x34] ss:$12 sps:$4 sm:$0xff]   ;;  %v4021_v50 = vld [vmem:[#allocation5 + $0x1c] ss:$12 sps:$4 sm:$0xff]  }
 0x42c   :  { %3893 = vtanh.f32 %v871_v0  ;;  %v4020_v0 = vld [vmem:[#allocation5 + $0x30] ss:$12 sps:$4 sm:$0xff]  }
 0x439   :  { %v3894_v47 = vpop.eup %3893 }
 0x43a   :  { %v874_v36 = vmul.f32 %v3894_v47, %v873_v17  ;;  %v4022_v17 = vld [vmem:[#allocation5 + $0x18] ss:$12 sps:$4 sm:$0xff]  }
 0x43b   :  { %v4023_v47 = vld [vmem:[#allocation5 + $0x4] ss:$12 sps:$4 sm:$0xff]  }
 0x43c   :  { %v4625_v22 = vadd.f32 %v875_v58, %v874_v36 }
 0x43e   :  { %v877_v9 = vpack.c.bf16 %v4625_v22, %v4625_v22 }
 0x440   :  { %911 = vmatmul.mubr.bf16.vlgmr.msra.gmra.mxu0 %v877_v9  ;;  %3527 = vmatmul.mubr.bf16.vlgmr.msra.gmra.mxu1 %v877_v9 }
 0x441   :  { %982 = vmatpush1.bf16.msra.mxu0 %v4629_v38  ;;  %3531 = vmatpush3.bf16.msra.mxu1 %v4291_v15 }
 0x442   :  { %983 = vmatprep.subr.bf16.mxu0 %v4633_v3  ;;  %3532 = vmatprep.subr.bf16.mxu1 %v5837_v53 }
 0x443   :  { %1013 = vmatprep.mubr.bf16.mxu0 %v5838_v61  ;;  %3546 = vmatprep.mubr.msk.bf16.mxu1 %vm4177_vm1, %v5837_v53 }
 0x445   :  { %984 = vmatpush1.bf16.msra.mxu0 %v4640_v52  ;;  %3533 = vmatpush3.bf16.msra.mxu1 %v4307_v21 }
 0x446   :  { %985 = vmatprep.subr.bf16.mxu0 %v4644_v41  ;;  %3534 = vmatprep.subr.bf16.mxu1 %v5837_v53 }
 0x449   :  { %986 = vmatpush1.bf16.msra.mxu0 %v4275_v10  ;;  %3535 = vmatpush3.bf16.msra.mxu1 %v4323_v25  ;;  %v4009_v10 = vld [vmem:[#allocation5 + $0xac] ss:$12 sps:$4 sm:$0xff]  }
 0x44a   :  { %987 = vmatprep.subr.bf16.mxu0 %v4278_v11  ;;  %3536 = vmatprep.subr.bf16.mxu1 %v5837_v53 }
 0x44d   :  { %988 = vmatpush1.bf16.msra.mxu0 %v4285_v13  ;;  %3537 = vmatpush3.bf16.msra.mxu1 %v4332_v29 }
 0x44e   :  { %989 = vmatprep.subr.bf16.mxu0 %v4289_v14  ;;  %3538 = vmatprep.subr.bf16.mxu1 %v5837_v53 }
 0x451   :  { %990 = vmatpush1.bf16.msra.mxu0 %v4298_v18  ;;  %3539 = vmatpush3.bf16.msra.mxu1 %v4345_v31 }
 0x452   :  { %991 = vmatprep.subr.bf16.mxu0 %v4301_v19  ;;  %3540 = vmatprep.subr.bf16.mxu1 %v5837_v53 }
 0x455   :  { %992 = vmatpush1.bf16.msra.mxu0 %v4304_v20  ;;  %3541 = vmatpush3.bf16.msra.mxu1 %v4351_v32 }
 0x456   :  { %993 = vmatprep.subr.bf16.mxu0 %v4321_v24  ;;  %3542 = vmatprep.subr.bf16.mxu1 %v5837_v53 }
 0x459   :  { %994 = vmatpush1.bf16.msra.mxu0 %v4325_v26  ;;  %3543 = vmatpush3.bf16.msra.mxu1 %v4357_v33 }
 0x45a   :  { %995 = vmatprep.subr.bf16.mxu0 %v4328_v28  ;;  %3544 = vmatprep.subr.bf16.mxu1 %v5837_v53 }
 0x45d   :  { %996 = vmatpush1.bf16.msra.mxu0 %v4336_v30  ;;  %3545 = vmatpush3.bf16.msra.mxu1 %v4364_v34 }
 0x45e   :  { %1084 = vmatprep.subr.bf16.mxu0 %v4009_v10  ;;  %3550 = vmatprep.subr.bf16.mxu1 %v5837_v53 }
 0x500   :  { %v912_v11 = vpop.f32.mrf.mxu0  ;;  %v953_v13 = vpop.f32.mrf.mxu1 }
 0x501   :  { %v913_v14 = vadd.f32 %v912_v11, %v4470_v23  ;;  %v954_v8 = vadd.f32 %v953_v13, %v4483_v40 }
 0x502   :  { %v914_v15 = vpop.f32.mrf.mxu0  ;;  %v3528_v18 = vpop.f32.mrf.mxu1 }
 0x503   :  { %v959_v19 = vadd.f32 %v913_v14, %v4437_v62  ;;  %v915_v25 = vadd.f32 %v914_v15, %v4479_v57 }
 0x504   :  { %v916_v20 = vpop.f32.mrf.mxu0  ;;  %v956_v21 = vpop.f32.mrf.mxu1 }
 0x505   :  { %v3206_v24 = vmul.f32 -1.442695, %v959_v19  ;;  %v966_v29 = vadd.f32 %v915_v25, %v4439_v2 }
 0x506   :  { %v917_v26 = vpop.f32.mrf.mxu0  ;;  %v3529_v28 = vpop.f32.mrf.mxu1 }
 0x507   :  { %3895 = vpow2.f32 %v3206_v24  ;;  %v3207_v30 = vmul.f32 -1.442695, %v966_v29  ;;  %v5839_v24 = vld [vmem:[#allocation20_spill] sm:$0xff] }
 0x509   :  { %3897 = vpow2.f32 %v3207_v30 }
 0x514   :  { %v3896_v37 = vpop.eup %3895 }
 0x515   :  { %v963_v5 = vadd.f32 1.0, %v3896_v37 }
 0x516   :  { %v3898_v6 = vpop.eup %3897 }
 0x517   :  { %3899 = vrcp.f32 %v963_v5  ;;  %v970_v7 = vadd.f32 1.0, %v3898_v6  ;;  %v3774_v6 = vld [vmem:[%s5722_s1] sm:$0xff]  }
 0x519   :  { %3901 = vrcp.f32 %v970_v7  ;;  %v4718_v7 = vld [vmem:[#allocation7 + $0x18c] ss:$28 sps:$4 sm:$0xff]  }
 0x524   :  { %v3900_v62 = vpop.eup %3899 }
 0x525   :  { %v973_v59 = vmul.f32 %v3900_v62, %v954_v8  ;;  %v4720_v8 = vld [vmem:[#allocation7 + $0x194] ss:$28 sps:$4 sm:$0xff]   ;;  %v4722_v62 = vld [vmem:[#allocation7 + $0x188] ss:$28 sps:$4 sm:$0xff]  }
 0x526   :  { %v3902_v27 = vpop.eup %3901 }
 0x527   :  { %v974_v63 = vadd.f32 %v973_v59, %v4457_v51  ;;  %v976_v44 = vsub.f32 1.0, %v3902_v27  ;;  %v978_v2 = vmul.f32 %v3902_v27, %v4625_v22  ;;  %v4011_v51 = vld [vmem:[#allocation5 + $0x98] ss:$12 sps:$4 sm:$0xff]   ;;  %v4724_v59 = vld [vmem:[#allocation7 + $0x190] ss:$28 sps:$4 sm:$0xff]  }
 0x528   :  { %v4734_v27 = vld [vmem:[#allocation7 + $0x154] ss:$28 sps:$4 sm:$0xff]  }
 0x529   :  { %3903 = vtanh.f32 %v974_v63  ;;  %v4025_v63 = vld [vmem:[%s5721_s0 + $0x1c] sm:$0xf] }
 0x536   :  { %v3904_v49 = vpop.eup %3903 }
 0x537   :  { %v977_v60 = vmul.f32 %v3904_v49, %v976_v44  ;;  %v4736_v44 = vld [vmem:[#allocation7 + $0x15c] ss:$28 sps:$4 sm:$0xff]   ;;  %v4739_v49 = vld [vmem:[#allocation7 + $0x150] ss:$28 sps:$4 sm:$0xff]  }
 0x539   :  { %v4678_v12 = vadd.f32 %v978_v2, %v977_v60  ;;  %v4741_v60 = vld [vmem:[#allocation7 + $0x158] ss:$28 sps:$4 sm:$0xff]  }
 0x53a   :  { %v4747_v2 = vld [vmem:[#allocation7 + $0x11c] ss:$28 sps:$4 sm:$0xff]  }
 0x53b   :  { %v980_v46 = vpack.c.bf16 %v4678_v12, %v4678_v12 }
 0x53d   :  { %1014 = vmatmul.mubr.bf16.vlgmr.msra.gmra.mxu0 %v980_v46  ;;  %3547 = vmatmul.mubr.bf16.vlgmr.msra.gmra.mxu1 %v980_v46  ;;  %v4751_v46 = vld [vmem:[#allocation7 + $0x118] ss:$28 sps:$4 sm:$0xff]  }
 0x53e   :  { %1085 = vmatpush1.bf16.msra.mxu0 %v4629_v38  ;;  %3551 = vmatpush3.bf16.msra.mxu1 %v4010_v4  ;;  %v4753_v4 = vld [vmem:[#allocation7 + $0x120] ss:$28 sps:$4 sm:$0xff]  }
 0x53f   :  { %1086 = vmatprep.subr.bf16.mxu0 %v4633_v3  ;;  %3552 = vmatprep.subr.bf16.mxu1 %v5837_v53  ;;  %5840 = vst [vmem:[#allocation20_spill] sm:$0xff] %v4753_v4 }
 0x540   :  { %1116 = vmatprep.mubr.bf16.mxu0 %v5838_v61  ;;  %3566 = vmatprep.mubr.msk.bf16.mxu1 %vm4177_vm1, %v5837_v53 }
 0x542   :  { %1087 = vmatpush1.bf16.msra.mxu0 %v4640_v52  ;;  %3553 = vmatpush3.bf16.msra.mxu1 %v4011_v51  ;;  %v4759_v51 = vld [vmem:[#allocation7 + $0xe4] ss:$28 sps:$4 sm:$0xff]  }
 0x543   :  { %1088 = vmatprep.subr.bf16.mxu0 %v4644_v41  ;;  %3554 = vmatprep.subr.bf16.mxu1 %v5837_v53  ;;  %5841 = vst [vmem:[#allocation22_spill] sm:$0xff] %v4759_v51 }
 0x546   :  { %1089 = vmatpush1.bf16.msra.mxu0 %v4012_v54  ;;  %3555 = vmatpush3.bf16.msra.mxu1 %v4013_v56  ;;  %v4761_v54 = vld [vmem:[#allocation7 + $0xec] ss:$28 sps:$4 sm:$0xff]   ;;  %v4763_v56 = vld [vmem:[#allocation7 + $0xe0] ss:$28 sps:$4 sm:$0xff]  }
 0x547   :  { %1090 = vmatprep.subr.bf16.mxu0 %v4014_v45  ;;  %3556 = vmatprep.subr.bf16.mxu1 %v5837_v53  ;;  %5842 = vst [vmem:[#allocation23_spill] sm:$0xff] %v4761_v54  ;;  %5843 = vst [vmem:[#allocation24_spill] sm:$0xff] %v4763_v56  ;;  %v4765_v45 = vld [vmem:[#allocation7 + $0xe8] ss:$28 sps:$4 sm:$0xff]  }
 0x548   :  { %5844 = vst [vmem:[#allocation25_spill] sm:$0xff] %v4765_v45 }
 0x54a   :  { %1091 = vmatpush1.bf16.msra.mxu0 %v4015_v1  ;;  %3557 = vmatpush3.bf16.msra.mxu1 %v4016_v43  ;;  %v4769_v1 = vld [vmem:[#allocation7 + $0xac] ss:$28 sps:$4 sm:$0xff]   ;;  %v4771_v43 = vld [vmem:[#allocation7 + $0xb4] ss:$28 sps:$4 sm:$0xff]  }
 0x54b   :  { %1092 = vmatprep.subr.bf16.mxu0 %v4017_v39  ;;  %3558 = vmatprep.subr.bf16.mxu1 %v5837_v53  ;;  %5845 = vst [vmem:[#allocation26_spill] sm:$0xff] %v4769_v1  ;;  %5846 = vst [vmem:[#allocation27_spill] sm:$0xff] %v4771_v43  ;;  %v4774_v39 = vld [vmem:[#allocation7 + $0xa8] ss:$28 sps:$4 sm:$0xff]  }
 0x54c   :  { %5847 = vst [vmem:[#allocation28_spill] sm:$0xff] %v4774_v39 }
 0x54e   :  { %1093 = vmatpush1.bf16.msra.mxu0 %v4018_v55  ;;  %3559 = vmatpush3.bf16.msra.mxu1 %v4345_v31  ;;  %v4024_v31 = vld [vmem:[#allocation5] ss:$12 sps:$4 sm:$0xff]  }
 0x54f   :  { %1094 = vmatprep.subr.bf16.mxu0 %v4019_v42  ;;  %3560 = vmatprep.subr.bf16.mxu1 %v5837_v53  ;;  %v4778_v55 = vld [vmem:[#allocation7 + $0xb0] ss:$28 sps:$4 sm:$0xff]  }
 0x550   :  { %5848 = vst [vmem:[#allocation29_spill] sm:$0xff] %v4778_v55  ;;  %v4780_v42 = vld [vmem:[#allocation7 + $0x74] ss:$28 sps:$4 sm:$0xff]  }
 0x551   :  { %5849 = vst [vmem:[#allocation30_spill] sm:$0xff] %v4780_v42 }
 0x552   :  { %1095 = vmatpush1.bf16.msra.mxu0 %v4020_v0  ;;  %3561 = vmatpush3.bf16.msra.mxu1 %v4351_v32  ;;  %v4783_v0 = vld [vmem:[#allocation7 + $0x7c] ss:$28 sps:$4 sm:$0xff]  }
 0x553   :  { %1096 = vmatprep.subr.bf16.mxu0 %v4021_v50  ;;  %3562 = vmatprep.subr.bf16.mxu1 %v5837_v53  ;;  %5850 = vst [vmem:[#allocation31_spill] sm:$0xff] %v4783_v0  ;;  %v4786_v50 = vld [vmem:[#allocation7 + $0x70] ss:$28 sps:$4 sm:$0xff]  }
 0x554   :  { %5851 = vst [vmem:[#allocation32_spill] sm:$0xff] %v4786_v50 }
 0x556   :  { %1097 = vmatpush1.bf16.msra.mxu0 %v4022_v17  ;;  %3563 = vmatpush3.bf16.msra.mxu1 %v4357_v33  ;;  %v4790_v17 = vld [vmem:[#allocation7 + $0x78] ss:$28 sps:$4 sm:$0xff]  }
 0x557   :  { %1098 = vmatprep.subr.bf16.mxu0 %v4023_v47  ;;  %3564 = vmatprep.subr.bf16.mxu1 %v5837_v53  ;;  %5852 = vst [vmem:[#allocation33_spill] sm:$0xff] %v4790_v17  ;;  %v4792_v47 = vld [vmem:[#allocation7 + $0x3c] ss:$28 sps:$4 sm:$0xff]  }
 0x558   :  { %5853 = vst [vmem:[#allocation34_spill] sm:$0xff] %v4792_v47 }
 0x55a   :  { %1099 = vmatpush1.bf16.msra.mxu0 %v4024_v31  ;;  %3565 = vmatpush3.bf16.msra.mxu1 %v4364_v34  ;;  %v4795_v31 = vld [vmem:[#allocation7 + $0x44] ss:$28 sps:$4 sm:$0xff]  }
 0x55b   :  { %3570 = vmatprep.subr.bf16.mxu0 %v5837_v53  ;;  %1506 = vmatprep.subr.bf16.mxu1 %v4718_v7  ;;  %5854 = vst [vmem:[#allocation35_spill] sm:$0xff] %v4795_v31 }
 0x5fd   :  { %v1015_v36 = vpop.f32.mrf.mxu0  ;;  %v1056_v32 = vpop.f32.mrf.mxu1 }
 0x5fe   :  { %v1016_v58 = vadd.f32 %v1015_v36, %v4470_v23  ;;  %v1057_v20 = vadd.f32 %v1056_v32, %v4483_v40  ;;  %v4798_v36 = vld [vmem:[#allocation7 + $0x38] ss:$28 sps:$4 sm:$0xff]   ;;  %v4802_v32 = vld [vmem:[#allocation7 + $0x40] ss:$28 sps:$4 sm:$0xff]  }
 0x5ff   :  { %v1017_v22 = vpop.f32.mrf.mxu0  ;;  %v3548_v9 = vpop.f32.mrf.mxu1  ;;  %5855 = vst [vmem:[#allocation36_spill] sm:$0xff] %v4798_v36  ;;  %5856 = vst [vmem:[#allocation37_spill] sm:$0xff] %v4802_v32 }
 0x600   :  { %v1062_v38 = vadd.f32 %v1016_v58, %v4444_v16  ;;  %v1018_v41 = vadd.f32 %v1017_v22, %v4479_v57  ;;  %v4804_v58 = vld [vmem:[#allocation7 + $0x4] ss:$28 sps:$4 sm:$0xff]   ;;  %v4807_v22 = vld [vmem:[#allocation7 + $0xc] ss:$28 sps:$4 sm:$0xff]  }
 0x601   :  { %v1019_v3 = vpop.f32.mrf.mxu0  ;;  %v1059_v33 = vpop.f32.mrf.mxu1  ;;  %5857 = vst [vmem:[#allocation38_spill] sm:$0xff] %v4804_v58  ;;  %5858 = vst [vmem:[#allocation39_spill] sm:$0xff] %v4807_v22  ;;  %v4810_v9 = vld [vmem:[#allocation7] ss:$28 sps:$4 sm:$0xff]  }
 0x602   :  { %v3208_v52 = vmul.f32 -1.442695, %v1062_v38  ;;  %v1069_v34 = vadd.f32 %v1018_v41, %v4449_v35  ;;  %5859 = vst [vmem:[#allocation40_spill] sm:$0xff] %v4810_v9  ;;  %v4814_v38 = vld [vmem:[#allocation7 + $0x8] ss:$28 sps:$4 sm:$0xff]  }
 0x603   :  { %v1020_v10 = vpop.f32.mrf.mxu0  ;;  %v3549_v11 = vpop.f32.mrf.mxu1  ;;  %5860 = vst [vmem:[#allocation41_spill] sm:$0xff] %v4814_v38 }
 0x604   :  { %3905 = vpow2.f32 %v3208_v52  ;;  %v3209_v13 = vmul.f32 -1.442695, %v1069_v34  ;;  %v5861_v11 = vld [vmem:[#allocation16_spill] sm:$0xff] }
 0x606   :  { %3907 = vpow2.f32 %v3209_v13 }
 0x611   :  { %v3906_v14 = vpop.eup %3905 }
 0x612   :  { %v1066_v15 = vadd.f32 1.0, %v3906_v14 }
 0x613   :  { %v3908_v18 = vpop.eup %3907 }
 0x614   :  { %3909 = vrcp.f32 %v1066_v15  ;;  %v1073_v19 = vadd.f32 1.0, %v3908_v18 }
 0x616   :  { %3911 = vrcp.f32 %v1073_v19 }
 0x621   :  { %v3910_v16 = vpop.eup %3909 }
 0x622   :  { %v1076_v21 = vmul.f32 %v3910_v16, %v1057_v20  ;;  %v5862_v16 = vld [vmem:[#allocation17_spill] sm:$0xff] }
 0x623   :  { %v3912_v26 = vpop.eup %3911 }
 0x624   :  { %v1077_v25 = vadd.f32 %v1076_v21, %v5839_v24  ;;  %v1079_v28 = vsub.f32 1.0, %v3912_v26  ;;  %v1081_v35 = vmul.f32 %v3912_v26, %v4678_v12  ;;  %v4749_v12 = vld [vmem:[#allocation7 + $0x124] ss:$28 sps:$4 sm:$0xff]  }
 0x626   :  { %3913 = vtanh.f32 %v1077_v25 }
 0x633   :  { %v3914_v29 = vpop.eup %3913 }
 0x634   :  { %v1080_v30 = vmul.f32 %v3914_v29, %v1079_v28 }
 0x636   :  { %v4708_v37 = vadd.f32 %v1081_v35, %v1080_v30 }
 0x638   :  { %v1083_v5 = vpack.c.bf16 %v4708_v37, %v4708_v37 }
 0x63a   :  { %1117 = vmatmul.mubr.bf16.vlgmr.msra.gmra.mxu0 %v1083_v5  ;;  %3567 = vmatmul.mubr.bf16.vlgmr.msra.gmra.mxu1 %v1083_v5  ;;  %v5863_v5 = vld [vmem:[#allocation15_spill] sm:$0xff] }
 0x63b   :  { %3572 = vmatprep.mubr.msk.bf16.mxu0 %vm4177_vm1, %v5837_v53  ;;  %1538 = vmatprep.mubr.bf16.mxu1 %v5838_v61 }
 0x63c   :  { %3571 = vmatpush3.bf16.msra.mxu0 %v3774_v6  ;;  %1507 = vmatpush1.bf16.msra.mxu1 %v4722_v62 }
 0x63d   :  { %1547 = vmatprep.subr.bf16.mxu0 %v4720_v8  ;;  %1508 = vmatprep.subr.bf16.mxu1 %v4734_v27 }
 0x640   :  { %1509 = vmatpush1.bf16.msra.mxu1 %v4739_v49 }
 0x641   :  { %1510 = vmatprep.subr.bf16.mxu1 %v4747_v2 }
 0x642   :  { %3573 = vmatmul.mubr.msk.bf16.vlgmr.msra.gmra.mxu0 %vm155_vm0, %v4025_v63 }
 0x643   :  { %1548 = vmatpush1.bf16.msra.mxu0 %v4724_v59  ;;  %1579 = vmatprep.mubr.bf16.mxu0 %v5838_v61 }
 0x644   :  { %1549 = vmatprep.subr.bf16.mxu0 %v4736_v44  ;;  %1511 = vmatpush1.bf16.msra.mxu1 %v4751_v46 }
 0x645   :  { %1512 = vmatprep.subr.bf16.mxu1 %v4759_v51 }
 0x647   :  { %1550 = vmatpush1.bf16.msra.mxu0 %v4741_v60 }
 0x648   :  { %1551 = vmatprep.subr.bf16.mxu0 %v4749_v12  ;;  %1513 = vmatpush1.bf16.msra.mxu1 %v4763_v56 }
 0x649   :  { %1514 = vmatprep.subr.bf16.mxu1 %v4769_v1 }
 0x64b   :  { %1552 = vmatpush1.bf16.msra.mxu0 %v4753_v4 }
 0x64c   :  { %1553 = vmatprep.subr.bf16.mxu0 %v4761_v54  ;;  %1515 = vmatpush1.bf16.msra.mxu1 %v4774_v39 }
 0x64d   :  { %1516 = vmatprep.subr.bf16.mxu1 %v4780_v42 }
 0x64f   :  { %1554 = vmatpush1.bf16.msra.mxu0 %v4765_v45 }
 0x650   :  { %1555 = vmatprep.subr.bf16.mxu0 %v4771_v43  ;;  %1517 = vmatpush1.bf16.msra.mxu1 %v4786_v50 }
 0x651   :  { %1518 = vmatprep.subr.bf16.mxu1 %v4792_v47 }
 0x653   :  { %1556 = vmatpush1.bf16.msra.mxu0 %v4778_v55 }
 0x654   :  { %1557 = vmatprep.subr.bf16.mxu0 %v4783_v0  ;;  %1519 = vmatpush1.bf16.msra.mxu1 %v4798_v36 }
 0x655   :  { %1520 = vmatprep.subr.bf16.mxu1 %v4804_v58 }
 0x657   :  { %1558 = vmatpush1.bf16.msra.mxu0 %v4790_v17 }
 0x658   :  { %1559 = vmatprep.subr.bf16.mxu0 %v4795_v31  ;;  %1521 = vmatpush1.bf16.msra.mxu1 %v4810_v9 }
 0x659   :  { %1737 = vmatprep.subr.bf16.mxu1 %v4718_v7 }
 0x65b   :  { %1560 = vmatpush1.bf16.msra.mxu0 %v4802_v32 }
 0x65c   :  { %1561 = vmatprep.subr.bf16.mxu0 %v4807_v22 }
 0x65f   :  { %1562 = vmatpush1.bf16.msra.mxu0 %v4814_v38 }
 0x660   :  { %1778 = vmatprep.subr.bf16.mxu0 %v4720_v8 }
 0x6fa   :  { %v1118_v3 = vpop.f32.mrf.mxu0  ;;  %v1159_v33 = vpop.f32.mrf.mxu1 }
 0x6fb   :  { %v1119_v52 = vadd.f32 %v1118_v3, %v4470_v23  ;;  %v1160_v29 = vadd.f32 %v1159_v33, %v4483_v40 }
 0x6fc   :  { %v1120_v41 = vpop.f32.mrf.mxu0  ;;  %v3568_v10 = vpop.f32.mrf.mxu1 }
 0x6fd   :  { %v1165_v34 = vadd.f32 %v1119_v52, %v5861_v11  ;;  %v1121_v18 = vadd.f32 %v1120_v41, %v4479_v57 }
 0x6fe   :  { %v1122_v13 = vpop.f32.mrf.mxu0  ;;  %v1162_v14 = vpop.f32.mrf.mxu1 }
 0x6ff   :  { %v3210_v15 = vmul.f32 -1.442695, %v1165_v34  ;;  %v1172_v21 = vadd.f32 %v1121_v18, %v5862_v16  ;;  %v4867_v13 = vld [vmem:[#allocation7 + $0x19c] ss:$28 sps:$4 sm:$0xff]  }
 0x700   :  { %v1123_v19 = vpop.f32.mrf.mxu0  ;;  %v3569_v20 = vpop.f32.mrf.mxu1  ;;  %5864 = vst [vmem:[#allocation16_spill] sm:$0xff] %v4867_v13  ;;  %v4873_v14 = vld [vmem:[%s5729_s8] sm:$0xff]  ;;  %s4178_s8 = smov 16  }
 0x701   :  { %3915 = vpow2.f32 %v3210_v15  ;;  %v3211_v24 = vmul.f32 -1.442695, %v1172_v21  ;;  %v5865_v15 = vld [vmem:[#allocation13_spill] sm:$0xff]  ;;  %v5866_v21 = vld [vmem:[#allocation14_spill] sm:$0xff] }
 0x702   :  { %v4865_v40 = vpop.f32.mrf.mxu0  ;;  %v4877_v18 = vrot.slane %v4873_v14, %v5865_v15 }
 0x703   :  { %3917 = vpow2.f32 %v3211_v24  ;;  %v4882_v24 = vrot.slane %v4873_v14, %v5866_v21  ;;  %v5869_v21 = vld [vmem:[#allocation18_spill] sm:$0xff] }
 0x70e   :  { %v3916_v25 = vpop.eup %3915 }
 0x70f   :  { %v1169_v26 = vadd.f32 1.0, %v3916_v25 }
 0x710   :  { %v3918_v23 = vpop.eup %3917 }
 0x711   :  { %3919 = vrcp.f32 %v1169_v26  ;;  %v1176_v28 = vadd.f32 1.0, %v3918_v23  ;;  %v5867_v23 = vld [vmem:[#allocation19_spill] sm:$0xff] }
 0x713   :  { %3921 = vrcp.f32 %v1176_v28 }
 0x71e   :  { %v3920_v30 = vpop.eup %3919 }
 0x71f   :  { %v1179_v35 = vmul.f32 %v3920_v30, %v1160_v29 }
 0x720   :  { %v3922_v57 = vpop.eup %3921 }
 0x721   :  { %v1180_v6 = vadd.f32 %v1179_v35, %v5863_v5  ;;  %v1182_v63 = vsub.f32 1.0, %v3922_v57  ;;  %v1184_v41 = vmul.f32 %v3922_v57, %v4708_v37  ;;  %v3574_v37 = vpop.f32.mrf.mxu0 }
 0x723   :  { %3923 = vtanh.f32 %v1180_v6  ;;  %v1278_v33 = vpop.f32.mrf.mxu0 }
 0x724   :  { %v4889_v33 = vrot.slane %v4873_v14, %v4421_v48  ;;  %v4898_v48 = vld [vmem:[#allocation7 + $0x1a0] ss:$28 sps:$4 sm:$0xff]  }
 0x725   :  { %v3575_v34 = vpop.f32.mrf.mxu0 }
 0x730   :  { %v3924_v3 = vpop.eup %3923 }
 0x731   :  { %v1183_v52 = vmul.f32 %v3924_v3, %v1182_v63  ;;  %v5868_v63 = vld [vmem:[#allocation21_spill] sm:$0xff] }
 0x733   :  { %v4828_v10 = vadd.f32 %v1184_v41, %v1183_v52 }
 0x735   :  { %v1281_v11 = vpack.c.bf16 %v4828_v10, %v4828_v10 }
 0x737   :  { %1539 = vmatmul.mubr.bf16.vlgmr.msra.gmra.mxu1 %v1281_v11  ;;  %1580 = vmatmul.mubr.bf16.vlgmr.msra.gmra.mxu0 %v1281_v11 }
 0x738   :  { %1738 = vmatpush1.bf16.msra.mxu1 %v4722_v62  ;;  %1779 = vmatpush1.bf16.msra.mxu0 %v4724_v59 }
 0x739   :  { %1739 = vmatprep.subr.bf16.mxu1 %v4734_v27  ;;  %1780 = vmatprep.subr.bf16.mxu0 %v4736_v44 }
 0x73a   :  { %1769 = vmatprep.mubr.bf16.mxu1 %v5838_v61  ;;  %1810 = vmatprep.mubr.bf16.mxu0 %v5838_v61 }
 0x73c   :  { %1740 = vmatpush1.bf16.msra.mxu1 %v4739_v49  ;;  %1781 = vmatpush1.bf16.msra.mxu0 %v4741_v60 }
 0x73d   :  { %1741 = vmatprep.subr.bf16.mxu1 %v4747_v2  ;;  %1782 = vmatprep.subr.bf16.mxu0 %v4749_v12 }
 0x740   :  { %1742 = vmatpush1.bf16.msra.mxu1 %v4751_v46  ;;  %1783 = vmatpush1.bf16.msra.mxu0 %v4753_v4 }
 0x741   :  { %1743 = vmatprep.subr.bf16.mxu1 %v4759_v51  ;;  %1784 = vmatprep.subr.bf16.mxu0 %v4761_v54 }
 0x744   :  { %1744 = vmatpush1.bf16.msra.mxu1 %v4763_v56  ;;  %1785 = vmatpush1.bf16.msra.mxu0 %v4765_v45 }
 0x745   :  { %1745 = vmatprep.subr.bf16.mxu1 %v4769_v1  ;;  %1786 = vmatprep.subr.bf16.mxu0 %v4771_v43 }
 0x748   :  { %1746 = vmatpush1.bf16.msra.mxu1 %v4774_v39  ;;  %1787 = vmatpush1.bf16.msra.mxu0 %v4778_v55 }
 0x749   :  { %1747 = vmatprep.subr.bf16.mxu1 %v4780_v42  ;;  %1788 = vmatprep.subr.bf16.mxu0 %v4783_v0 }
 0x74c   :  { %1748 = vmatpush1.bf16.msra.mxu1 %v4786_v50  ;;  %1789 = vmatpush1.bf16.msra.mxu0 %v4790_v17 }
 0x74d   :  { %1749 = vmatprep.subr.bf16.mxu1 %v4792_v47  ;;  %1790 = vmatprep.subr.bf16.mxu0 %v4795_v31 }
 0x750   :  { %1750 = vmatpush1.bf16.msra.mxu1 %v4798_v36  ;;  %1791 = vmatpush1.bf16.msra.mxu0 %v4802_v32 }
 0x751   :  { %1751 = vmatprep.subr.bf16.mxu1 %v4804_v58  ;;  %1792 = vmatprep.subr.bf16.mxu0 %v4807_v22 }
 0x754   :  { %1752 = vmatpush1.bf16.msra.mxu1 %v4810_v9  ;;  %1793 = vmatpush1.bf16.msra.mxu0 %v4814_v38 }
 0x755   :  { %3576 = vmatprep.subr.bf16.mxu0 %v5837_v53  ;;  %1819 = vmatprep.subr.bf16.mxu1 %v4867_v13 }
 0x7f7   :  { %v1540_v19 = vpop.f32.mrf.mxu1  ;;  %v1581_v20 = vpop.f32.mrf.mxu0 }
 0x7f8   :  { %v1541_v16 = vadd.f32 %v1540_v19, %v4877_v18  ;;  %v1582_v15 = vadd.f32 %v1581_v20, %v4889_v33 }
 0x7f9   :  { %v1542_v25 = vpop.f32.mrf.mxu1  ;;  %v1583_v26 = vpop.f32.mrf.mxu0 }
 0x7fa   :  { %v1587_v28 = vadd.f32 %v1541_v16, %v5867_v23  ;;  %v1543_v5 = vadd.f32 %v1542_v25, %v4882_v24 }
 0x7fb   :  { %v1544_v29 = vpop.f32.mrf.mxu1  ;;  %v1584_v30 = vpop.f32.mrf.mxu0 }
 0x7fc   :  { %v3247_v35 = vmul.f32 -1.442695, %v1587_v28  ;;  %v1594_v3 = vadd.f32 %v1543_v5, %v5868_v63 }
 0x7fd   :  { %v1545_v6 = vpop.f32.mrf.mxu1  ;;  %v1585_v57 = vpop.f32.mrf.mxu0 }
 0x7fe   :  { %3925 = vpow2.f32 %v3247_v35  ;;  %v3248_v52 = vmul.f32 -1.442695, %v1594_v3  ;;  %v4896_v6 = vld [vmem:[#allocation7 + $0x198] ss:$28 sps:$4 sm:$0xff]   ;;  %v4902_v57 = vld [vmem:[#allocation7 + $0x164] ss:$28 sps:$4 sm:$0xff]  }
 0x7ff   :  { %v4906_v3 = vld [vmem:[#allocation7 + $0x160] ss:$28 sps:$4 sm:$0xff]  }
 0x800   :  { %3927 = vpow2.f32 %v3248_v52  ;;  %v4912_v52 = vld [vmem:[#allocation7 + $0x12c] ss:$28 sps:$4 sm:$0xff]  }
 0x80b   :  { %v3926_v41 = vpop.eup %3925 }
 0x80c   :  { %v1591_v11 = vadd.f32 1.0, %v3926_v41  ;;  %v4919_v41 = vld [vmem:[#allocation7 + $0x128] ss:$28 sps:$4 sm:$0xff]  }
 0x80d   :  { %v3928_v37 = vpop.eup %3927 }
 0x80e   :  { %3929 = vrcp.f32 %v1591_v11  ;;  %v1598_v34 = vadd.f32 1.0, %v3928_v37  ;;  %v4921_v11 = vld [vmem:[#allocation7 + $0x130] ss:$28 sps:$4 sm:$0xff]  }
 0x80f   :  { %v4925_v37 = vld [vmem:[#allocation7 + $0xf4] ss:$28 sps:$4 sm:$0xff]  }
 0x810   :  { %3931 = vrcp.f32 %v1598_v34  ;;  %v4929_v34 = vld [vmem:[#allocation7 + $0xf0] ss:$28 sps:$4 sm:$0xff]  }
 0x81b   :  { %v3930_v19 = vpop.eup %3929 }
 0x81c   :  { %v1601_v16 = vmul.f32 %v3930_v19, %v1582_v15  ;;  %v4931_v15 = vld [vmem:[#allocation7 + $0xf8] ss:$28 sps:$4 sm:$0xff]  }
 0x81d   :  { %v3932_v26 = vpop.eup %3931  ;;  %v4935_v19 = vld [vmem:[#allocation7 + $0xbc] ss:$28 sps:$4 sm:$0xff]  }
 0x81e   :  { %v1602_v25 = vadd.f32 %v1601_v16, %v5869_v21  ;;  %v1604_v28 = vsub.f32 1.0, %v3932_v26  ;;  %v1606_v35 = vmul.f32 %v3932_v26, %v4828_v10  ;;  %v4908_v10 = vld [vmem:[#allocation7 + $0x168] ss:$28 sps:$4 sm:$0xff]   ;;  %5870 = vst [vmem:[#allocation17_spill] sm:$0xff] %v4935_v19  ;;  %v4939_v16 = vld [vmem:[#allocation7 + $0xb8] ss:$28 sps:$4 sm:$0xff]  }
 0x81f   :  { %5871 = vst [vmem:[#allocation15_spill] sm:$0xff] %v4939_v16  ;;  %v4945_v26 = vld [vmem:[#allocation7 + $0x84] ss:$28 sps:$4 sm:$0xff]  }
 0x820   :  { %3933 = vtanh.f32 %v1602_v25  ;;  %v4941_v25 = vld [vmem:[#allocation7 + $0xc0] ss:$28 sps:$4 sm:$0xff]   ;;  %5873 = vst [vmem:[#allocation14_spill] sm:$0xff] %v4945_v26 }
 0x821   :  { %5872 = vst [vmem:[#allocation13_spill] sm:$0xff] %v4941_v25 }
 0x82d   :  { %v3934_v29 = vpop.eup %3933 }
 0x82e   :  { %v1605_v30 = vmul.f32 %v3934_v29, %v1604_v28  ;;  %v4949_v28 = vld [vmem:[#allocation7 + $0x80] ss:$28 sps:$4 sm:$0xff]   ;;  %v4951_v29 = vld [vmem:[#allocation7 + $0x88] ss:$28 sps:$4 sm:$0xff]  }
 0x830   :  { %v4894_v5 = vadd.f32 %v1606_v35, %v1605_v30  ;;  %v4955_v30 = vld [vmem:[#allocation7 + $0x4c] ss:$28 sps:$4 sm:$0xff]  }
 0x831   :  { %v4959_v35 = vld [vmem:[#allocation7 + $0x48] ss:$28 sps:$4 sm:$0xff]  }
 0x832   :  { %v1608_v20 = vpack.c.bf16 %v4894_v5, %v4894_v5 }
 0x834   :  { %1770 = vmatmul.mubr.bf16.vlgmr.msra.gmra.mxu1 %v1608_v20  ;;  %1811 = vmatmul.mubr.bf16.vlgmr.msra.gmra.mxu0 %v1608_v20 }
 0x835   :  { %1820 = vmatpush1.bf16.msra.mxu1 %v4896_v6  ;;  %3577 = vmatpush3.bf16.msra.mxu0 %v4898_v48 }
 0x836   :  { %1821 = vmatprep.subr.bf16.mxu1 %v4902_v57  ;;  %3578 = vmatprep.subr.bf16.mxu0 %v5837_v53 }
 0x837   :  { %1851 = vmatprep.mubr.bf16.mxu1 %v5838_v61  ;;  %3592 = vmatprep.mubr.msk.bf16.mxu0 %vm4177_vm1, %v5837_v53 }
 0x839   :  { %1822 = vmatpush1.bf16.msra.mxu1 %v4906_v3  ;;  %3579 = vmatpush3.bf16.msra.mxu0 %v4908_v10 }
 0x83a   :  { %1823 = vmatprep.subr.bf16.mxu1 %v4912_v52  ;;  %3580 = vmatprep.subr.bf16.mxu0 %v5837_v53 }
 0x83d   :  { %1824 = vmatpush1.bf16.msra.mxu1 %v4919_v41  ;;  %3581 = vmatpush3.bf16.msra.mxu0 %v4921_v11 }
 0x83e   :  { %1825 = vmatprep.subr.bf16.mxu1 %v4925_v37  ;;  %3582 = vmatprep.subr.bf16.mxu0 %v5837_v53 }
 0x841   :  { %1826 = vmatpush1.bf16.msra.mxu1 %v4929_v34  ;;  %3583 = vmatpush3.bf16.msra.mxu0 %v4931_v15 }
 0x842   :  { %1827 = vmatprep.subr.bf16.mxu1 %v4935_v19  ;;  %3584 = vmatprep.subr.bf16.mxu0 %v5837_v53  ;;  %v4961_v19 = vld [vmem:[#allocation7 + $0x50] ss:$28 sps:$4 sm:$0xff]  }
 0x845   :  { %1828 = vmatpush1.bf16.msra.mxu1 %v4939_v16  ;;  %3585 = vmatpush3.bf16.msra.mxu0 %v4941_v25  ;;  %v4965_v25 = vld [vmem:[#allocation7 + $0x14] ss:$28 sps:$4 sm:$0xff]  }
 0x846   :  { %1829 = vmatprep.subr.bf16.mxu1 %v4945_v26  ;;  %3586 = vmatprep.subr.bf16.mxu0 %v5837_v53  ;;  %v4969_v26 = vld [vmem:[#allocation7 + $0x10] ss:$28 sps:$4 sm:$0xff]   ;;  %v4971_v16 = vld [vmem:[#allocation7 + $0x18] ss:$28 sps:$4 sm:$0xff]  }
 0x849   :  { %1830 = vmatpush1.bf16.msra.mxu1 %v4949_v28  ;;  %3587 = vmatpush3.bf16.msra.mxu0 %v4951_v29 }
 0x84a   :  { %1831 = vmatprep.subr.bf16.mxu1 %v4955_v30  ;;  %3588 = vmatprep.subr.bf16.mxu0 %v5837_v53 }
 0x84d   :  { %1832 = vmatpush1.bf16.msra.mxu1 %v4959_v35  ;;  %3589 = vmatpush3.bf16.msra.mxu0 %v4961_v19 }
 0x84e   :  { %1833 = vmatprep.subr.bf16.mxu1 %v4965_v25  ;;  %3590 = vmatprep.subr.bf16.mxu0 %v5837_v53 }
 0x851   :  { %1834 = vmatpush1.bf16.msra.mxu1 %v4969_v26  ;;  %3591 = vmatpush3.bf16.msra.mxu0 %v4971_v16 }
 0x852   :  { %1926 = vmatprep.subr.bf16.mxu1 %v4718_v7  ;;  %1967 = vmatprep.subr.bf16.mxu0 %v4720_v8 }
 0x854   :  { %1852 = vmatmul.mubr.bf16.vlgmr.msra.gmra.mxu1 %v1608_v20  ;;  %3593 = vmatmul.mubr.bf16.vlgmr.msra.gmra.mxu0 %v1608_v20  ;;  %v5874_v20 = vld [vmem:[#allocation12_spill] sm:$0xff] }
 0x855   :  { %1927 = vmatpush1.bf16.msra.mxu1 %v4722_v62  ;;  %1968 = vmatpush1.bf16.msra.mxu0 %v4724_v59 }
 0x856   :  { %1928 = vmatprep.subr.bf16.mxu1 %v4734_v27  ;;  %1969 = vmatprep.subr.bf16.mxu0 %v4736_v44 }
 0x857   :  { %1958 = vmatprep.mubr.bf16.mxu1 %v5838_v61  ;;  %1999 = vmatprep.mubr.bf16.mxu0 %v5838_v61 }
 0x859   :  { %1929 = vmatpush1.bf16.msra.mxu1 %v4739_v49  ;;  %1970 = vmatpush1.bf16.msra.mxu0 %v4741_v60 }
 0x85a   :  { %1930 = vmatprep.subr.bf16.mxu1 %v4747_v2  ;;  %1971 = vmatprep.subr.bf16.mxu0 %v4749_v12 }
 0x85d   :  { %1931 = vmatpush1.bf16.msra.mxu1 %v4751_v46  ;;  %1972 = vmatpush1.bf16.msra.mxu0 %v4753_v4 }
 0x85e   :  { %1932 = vmatprep.subr.bf16.mxu1 %v4759_v51  ;;  %1973 = vmatprep.subr.bf16.mxu0 %v4761_v54 }
 0x861   :  { %1933 = vmatpush1.bf16.msra.mxu1 %v4763_v56  ;;  %1974 = vmatpush1.bf16.msra.mxu0 %v4765_v45 }
 0x862   :  { %1934 = vmatprep.subr.bf16.mxu1 %v4769_v1  ;;  %1975 = vmatprep.subr.bf16.mxu0 %v4771_v43 }
 0x865   :  { %1935 = vmatpush1.bf16.msra.mxu1 %v4774_v39  ;;  %1976 = vmatpush1.bf16.msra.mxu0 %v4778_v55  ;;  %v1206_v39 = vsub.s32 4, %v5874_v20 }
 0x866   :  { %1936 = vmatprep.subr.bf16.mxu1 %v4780_v42  ;;  %1977 = vmatprep.subr.bf16.mxu0 %v4783_v0 }
 0x867   :  { %v5024_v43 = vrot.slane %v4873_v14, %v1206_v39 }
 0x869   :  { %1937 = vmatpush1.bf16.msra.mxu1 %v4786_v50  ;;  %1978 = vmatpush1.bf16.msra.mxu0 %v4790_v17 }
 0x86a   :  { %1938 = vmatprep.subr.bf16.mxu1 %v4792_v47  ;;  %1979 = vmatprep.subr.bf16.mxu0 %v4795_v31  ;;  %v1202_v47 = vsub.s32 3, %v5874_v20 }
 0x86c   :  { %v5015_v31 = vrot.slane %v4873_v14, %v1202_v47  ;;  %v1210_v47 = vsub.s32 5, %v5874_v20 }
 0x86d   :  { %1939 = vmatpush1.bf16.msra.mxu1 %v4798_v36  ;;  %1980 = vmatpush1.bf16.msra.mxu0 %v4802_v32  ;;  %v3212_v36 = vld [vmem:[#allocation2] ss:$0 sm:$0xff] }
 0x86e   :  { %1940 = vmatprep.subr.bf16.mxu1 %v4804_v58  ;;  %1981 = vmatprep.subr.bf16.mxu0 %v4807_v22  ;;  %5875 = vst [vmem:[#allocation19_spill] sm:$0xff] %v5015_v31  ;;  %v1276_v22 = vadd.f32 %v3212_v36, %v4865_v40  ;;  %v5027_v1 = vrot.slane %v4873_v14, %v1210_v47 }
 0x871   :  { %1941 = vmatpush1.bf16.msra.mxu1 %v4810_v9  ;;  %1982 = vmatpush1.bf16.msra.mxu0 %v4814_v38 }
 0x872   :  { %2008 = vmatprep.subr.bf16.mxu1 %v4867_v13  ;;  %3596 = vmatprep.subr.bf16.mxu0 %v5837_v53 }
 0x8f4   :  { %v1771_v17 = vpop.f32.mrf.mxu1  ;;  %v1812_v32 = vpop.f32.mrf.mxu0 }
 0x8f6   :  { %v1773_v50 = vpop.f32.mrf.mxu1  ;;  %v1814_v58 = vpop.f32.mrf.mxu0 }
 0x8f7   :  { %v1815_v9 = vadd.f32 %v1814_v58, %v5015_v31 }
 0x8f8   :  { %v1775_v0 = vpop.f32.mrf.mxu1  ;;  %v1816_v38 = vpop.f32.mrf.mxu0 }
 0x8f9   :  { %v5019_v42 = vadd.f32 %v1815_v9, %v1276_v22  ;;  %v1772_v22 = vadd.f32 %v1771_v17, %v4877_v18 }
 0x8fa   :  { %v1776_v13 = vpop.f32.mrf.mxu1  ;;  %v1817_v55 = vpop.f32.mrf.mxu0 }
 0x8fb   :  { %5876 = vst [vmem:[#allocation21_spill] sm:$0xff] %v5019_v42 }
 0x914   :  { %v1853_v45 = vpop.f32.mrf.mxu1  ;;  %v1894_v36 = vpop.f32.mrf.mxu0 }
 0x915   :  { %v1854_v58 = vadd.f32 %v1853_v45, %v5024_v43  ;;  %v1774_v45 = vadd.f32 %v1773_v50, %v4882_v24 }
 0x916   :  { %v1855_v0 = vpop.f32.mrf.mxu1  ;;  %v3594_v38 = vpop.f32.mrf.mxu0 }
 0x917   :  { %v5032_v55 = vadd.f32 %v1854_v58, %v5867_v23  ;;  %v1856_v9 = vadd.f32 %v1855_v0, %v5027_v1  ;;  %v1214_v0 = vsub.s32 6, %v5874_v20 }
 0x918   :  { %v1857_v40 = vpop.f32.mrf.mxu1  ;;  %v1897_v13 = vpop.f32.mrf.mxu0 }
 0x919   :  { %v1904_v39 = vadd.f32 %v5032_v55, %v1772_v22  ;;  %v5037_v56 = vadd.f32 %v1856_v9, %v5868_v63  ;;  %v5043_v22 = vrot.slane %v4873_v14, %v1214_v0  ;;  %v1813_v9 = vadd.f32 %v1812_v32, %v4889_v33  ;;  %v5882_v0 = vld [vmem:[#allocation25_spill] sm:$0xff] }
 0x91a   :  { %v1858_v42 = vpop.f32.mrf.mxu1  ;;  %v3595_v47 = vpop.f32.mrf.mxu0 }
 0x91b   :  { %v3273_v31 = vmul.f32 -1.442695, %v1904_v39  ;;  %v1911_v17 = vadd.f32 %v5037_v56, %v1774_v45  ;;  %v1895_v40 = vadd.f32 %v1894_v36, %v5043_v22  ;;  %v5879_v36 = vld [vmem:[#allocation13_spill] sm:$0xff] }
 0x91d   :  { %3935 = vpow2.f32 %v3273_v31  ;;  %v3274_v38 = vmul.f32 -1.442695, %v1911_v17  ;;  %v5048_v31 = vadd.f32 %v1895_v40, %v5869_v21  ;;  %v5877_v21 = vld [vmem:[#allocation17_spill] sm:$0xff]  ;;  %v5884_v40 = vld [vmem:[#allocation27_spill] sm:$0xff] }
 0x91f   :  { %3937 = vpow2.f32 %v3274_v38 }
 0x92a   :  { %v3936_v23 = vpop.eup %3935 }
 0x92b   :  { %v1908_v58 = vadd.f32 1.0, %v3936_v23  ;;  %v5880_v23 = vld [vmem:[#allocation14_spill] sm:$0xff] }
 0x92c   :  { %v3938_v42 = vpop.eup %3937 }
 0x92d   :  { %3939 = vrcp.f32 %v1908_v58  ;;  %v1915_v63 = vadd.f32 1.0, %v3938_v42  ;;  %v5881_v58 = vld [vmem:[#allocation24_spill] sm:$0xff]  ;;  %v5883_v42 = vld [vmem:[#allocation26_spill] sm:$0xff] }
 0x92f   :  { %3941 = vrcp.f32 %v1915_v63  ;;  %v5885_v63 = vld [vmem:[#allocation28_spill] sm:$0xff] }
 0x93a   :  { %v3940_v50 = vpop.eup %3939 }
 0x93b   :  { %v1918_v13 = vmul.f32 %v3940_v50, %v1813_v9  ;;  %v5886_v9 = vld [vmem:[#allocation29_spill] sm:$0xff]  ;;  %v5887_v50 = vld [vmem:[#allocation30_spill] sm:$0xff] }
 0x93c   :  { %v3942_v47 = vpop.eup %3941 }
 0x93d   :  { %v1919_v39 = vadd.f32 %v1918_v13, %v5048_v31  ;;  %v1921_v20 = vsub.f32 1.0, %v3942_v47  ;;  %v1923_v17 = vmul.f32 %v3942_v47, %v4894_v5  ;;  %v5878_v5 = vld [vmem:[#allocation15_spill] sm:$0xff]  ;;  %v5890_v47 = vld [vmem:[#allocation33_spill] sm:$0xff] }
 0x93e   :  { %v5888_v13 = vld [vmem:[#allocation31_spill] sm:$0xff] }
 0x93f   :  { %3943 = vtanh.f32 %v1919_v39  ;;  %v5889_v39 = vld [vmem:[#allocation32_spill] sm:$0xff] }
 0x94c   :  { %v3944_v45 = vpop.eup %3943 }
 0x94d   :  { %v1922_v14 = vmul.f32 %v3944_v45, %v1921_v20  ;;  %v5891_v20 = vld [vmem:[#allocation34_spill] sm:$0xff]  ;;  %v5892_v45 = vld [vmem:[#allocation35_spill] sm:$0xff] }
 0x94f   :  { %v5052_v38 = vadd.f32 %v1923_v17, %v1922_v14  ;;  %v5893_v14 = vld [vmem:[#allocation36_spill] sm:$0xff]  ;;  %v5894_v17 = vld [vmem:[#allocation37_spill] sm:$0xff] }
 0x951   :  { %v1925_v32 = vpack.c.bf16 %v5052_v38, %v5052_v38 }
 0x953   :  { %1959 = vmatmul.mubr.bf16.vlgmr.msra.gmra.mxu1 %v1925_v32  ;;  %2000 = vmatmul.mubr.bf16.vlgmr.msra.gmra.mxu0 %v1925_v32 }
 0x954   :  { %2009 = vmatpush1.bf16.msra.mxu1 %v4896_v6  ;;  %3597 = vmatpush3.bf16.msra.mxu0 %v4898_v48 }
 0x955   :  { %2010 = vmatprep.subr.bf16.mxu1 %v4902_v57  ;;  %3598 = vmatprep.subr.bf16.mxu0 %v5837_v53 }
 0x956   :  { %2040 = vmatprep.mubr.bf16.mxu1 %v5838_v61  ;;  %3612 = vmatprep.mubr.msk.bf16.mxu0 %vm4177_vm1, %v5837_v53 }
 0x958   :  { %2011 = vmatpush1.bf16.msra.mxu1 %v4906_v3  ;;  %3599 = vmatpush3.bf16.msra.mxu0 %v4908_v10 }
 0x959   :  { %2012 = vmatprep.subr.bf16.mxu1 %v4912_v52  ;;  %3600 = vmatprep.subr.bf16.mxu0 %v5837_v53 }
 0x95c   :  { %2013 = vmatpush1.bf16.msra.mxu1 %v4919_v41  ;;  %3601 = vmatpush3.bf16.msra.mxu0 %v4921_v11 }
 0x95d   :  { %2014 = vmatprep.subr.bf16.mxu1 %v4925_v37  ;;  %3602 = vmatprep.subr.bf16.mxu0 %v5837_v53 }
 0x960   :  { %2015 = vmatpush1.bf16.msra.mxu1 %v4929_v34  ;;  %3603 = vmatpush3.bf16.msra.mxu0 %v4931_v15 }
 0x961   :  { %2016 = vmatprep.subr.bf16.mxu1 %v5877_v21  ;;  %3604 = vmatprep.subr.bf16.mxu0 %v5837_v53 }
 0x964   :  { %2017 = vmatpush1.bf16.msra.mxu1 %v5878_v5  ;;  %3605 = vmatpush3.bf16.msra.mxu0 %v5879_v36 }
 0x965   :  { %2018 = vmatprep.subr.bf16.mxu1 %v5880_v23  ;;  %3606 = vmatprep.subr.bf16.mxu0 %v5837_v53 }
 0x968   :  { %2019 = vmatpush1.bf16.msra.mxu1 %v4949_v28  ;;  %3607 = vmatpush3.bf16.msra.mxu0 %v4951_v29 }
 0x969   :  { %2020 = vmatprep.subr.bf16.mxu1 %v4955_v30  ;;  %3608 = vmatprep.subr.bf16.mxu0 %v5837_v53 }
 0x96c   :  { %2021 = vmatpush1.bf16.msra.mxu1 %v4959_v35  ;;  %3609 = vmatpush3.bf16.msra.mxu0 %v4961_v19 }
 0x96d   :  { %2022 = vmatprep.subr.bf16.mxu1 %v4965_v25  ;;  %3610 = vmatprep.subr.bf16.mxu0 %v5837_v53 }
 0x970   :  { %2023 = vmatpush1.bf16.msra.mxu1 %v4969_v26  ;;  %3611 = vmatpush3.bf16.msra.mxu0 %v4971_v16 }
 0x971   :  { %2115 = vmatprep.subr.bf16.mxu1 %v4718_v7  ;;  %2156 = vmatprep.subr.bf16.mxu0 %v4720_v8 }
 0x973   :  { %2041 = vmatmul.mubr.bf16.vlgmr.msra.gmra.mxu1 %v1925_v32  ;;  %3613 = vmatmul.mubr.bf16.vlgmr.msra.gmra.mxu0 %v1925_v32  ;;  %v5895_v32 = vld [vmem:[#allocation38_spill] sm:$0xff] }
 0x974   :  { %2116 = vmatpush1.bf16.msra.mxu1 %v4722_v62  ;;  %2157 = vmatpush1.bf16.msra.mxu0 %v4724_v59 }
 0x975   :  { %2117 = vmatprep.subr.bf16.mxu1 %v4734_v27  ;;  %2158 = vmatprep.subr.bf16.mxu0 %v4736_v44 }
 0x976   :  { %2147 = vmatprep.mubr.bf16.mxu1 %v5838_v61  ;;  %2188 = vmatprep.mubr.bf16.mxu0 %v5838_v61 }
 0x978   :  { %2118 = vmatpush1.bf16.msra.mxu1 %v4739_v49  ;;  %2159 = vmatpush1.bf16.msra.mxu0 %v4741_v60 }
 0x979   :  { %2119 = vmatprep.subr.bf16.mxu1 %v4747_v2  ;;  %2160 = vmatprep.subr.bf16.mxu0 %v4749_v12 }
 0x97c   :  { %2120 = vmatpush1.bf16.msra.mxu1 %v4751_v46  ;;  %2161 = vmatpush1.bf16.msra.mxu0 %v4753_v4 }
 0x97d   :  { %2121 = vmatprep.subr.bf16.mxu1 %v4759_v51  ;;  %2162 = vmatprep.subr.bf16.mxu0 %v4761_v54 }
 0x980   :  { %2122 = vmatpush1.bf16.msra.mxu1 %v5881_v58  ;;  %2163 = vmatpush1.bf16.msra.mxu0 %v5882_v0  ;;  %v5901_v0 = vld [vmem:[#allocation21_spill] sm:$0xff] }
 0x981   :  { %2123 = vmatprep.subr.bf16.mxu1 %v5883_v42  ;;  %2164 = vmatprep.subr.bf16.mxu0 %v5884_v40  ;;  %v5900_v40 = vld [vmem:[#allocation19_spill] sm:$0xff] }
 0x984   :  { %2124 = vmatpush1.bf16.msra.mxu1 %v5885_v63  ;;  %2165 = vmatpush1.bf16.msra.mxu0 %v5886_v9  ;;  %v5896_v63 = vld [vmem:[#allocation39_spill] sm:$0xff]  ;;  %v5897_v9 = vld [vmem:[#allocation40_spill] sm:$0xff] }
 0x985   :  { %2125 = vmatprep.subr.bf16.mxu1 %v5887_v50  ;;  %2166 = vmatprep.subr.bf16.mxu0 %v5888_v13  ;;  %v5898_v50 = vld [vmem:[#allocation41_spill] sm:$0xff]  ;;  %v5899_v13 = vld [vmem:[#allocation16_spill] sm:$0xff] }
 0x988   :  { %2126 = vmatpush1.bf16.msra.mxu1 %v5889_v39  ;;  %2167 = vmatpush1.bf16.msra.mxu0 %v5890_v47 }
 0x989   :  { %2127 = vmatprep.subr.bf16.mxu1 %v5891_v20  ;;  %2168 = vmatprep.subr.bf16.mxu0 %v5892_v45 }
 0x98c   :  { %2128 = vmatpush1.bf16.msra.mxu1 %v5893_v14  ;;  %2169 = vmatpush1.bf16.msra.mxu0 %v5894_v17 }
 0x98d   :  { %2129 = vmatprep.subr.bf16.mxu1 %v5895_v32  ;;  %2170 = vmatprep.subr.bf16.mxu0 %v5896_v63 }
 0x990   :  { %2130 = vmatpush1.bf16.msra.mxu1 %v5897_v9  ;;  %2171 = vmatpush1.bf16.msra.mxu0 %v5898_v50 }
 0x991   :  { %2197 = vmatprep.subr.bf16.mxu1 %v5899_v13  ;;  %3616 = vmatprep.subr.bf16.mxu0 %v5837_v53 }
 0xa13   :  { %v1960_v47 = vpop.f32.mrf.mxu1  ;;  %v2001_v20 = vpop.f32.mrf.mxu0 }
 0xa14   :  { %v1961_v4 = vadd.f32 %v1960_v47, %v4877_v18 }
 0xa15   :  { %v1962_v39 = vpop.f32.mrf.mxu1  ;;  %v2003_v45 = vpop.f32.mrf.mxu0 }
 0xa16   :  { %v2004_v14 = vadd.f32 %v2003_v45, %v5900_v40 }
 0xa17   :  { %v1964_v42 = vpop.f32.mrf.mxu1  ;;  %v2005_v17 = vpop.f32.mrf.mxu0 }
 0xa18   :  { %v5127_v32 = vadd.f32 %v2004_v14, %v5901_v0 }
 0xa19   :  { %v1965_v63 = vpop.f32.mrf.mxu1  ;;  %v2006_v58 = vpop.f32.mrf.mxu0 }
 0xa1a   :  { %5902 = vst [vmem:[#allocation18_spill] sm:$0xff] %v5127_v32  ;;  %3102 = vrot.lane.b32.xlu0 %v5127_v32, %s4178_s8 }
 0xa33   :  { %v2042_v50 = vpop.f32.mrf.mxu1  ;;  %v2083_v13 = vpop.f32.mrf.mxu0 }
 0xa34   :  { %v2043_v9 = vadd.f32 %v2042_v50, %v5024_v43  ;;  %v1963_v50 = vadd.f32 %v1962_v39, %v4882_v24 }
 0xa35   :  { %v2044_v54 = vpop.f32.mrf.mxu1  ;;  %v3614_v51 = vpop.f32.mrf.mxu0 }
 0xa36   :  { %v5133_v45 = vadd.f32 %v2043_v9, %v5032_v55  ;;  %v2045_v42 = vadd.f32 %v2044_v54, %v5027_v1 }
 0xa37   :  { %v2046_v14 = vpop.f32.mrf.mxu1  ;;  %v2086_v17 = vpop.f32.mrf.mxu0 }
 0xa38   :  { %v2093_v58 = vadd.f32 %v5133_v45, %v1961_v4  ;;  %v5138_v40 = vadd.f32 %v2045_v42, %v5037_v56  ;;  %v2084_v14 = vadd.f32 %v2083_v13, %v5043_v22 }
 0xa39   :  { %v2047_v63 = vpop.f32.mrf.mxu1  ;;  %v3615_v0 = vpop.f32.mrf.mxu0 }
 0xa3a   :  { %v3275_v32 = vmul.f32 -1.442695, %v2093_v58  ;;  %v2100_v51 = vadd.f32 %v5138_v40, %v1963_v50  ;;  %v2002_v0 = vadd.f32 %v2001_v20, %v4889_v33  ;;  %v5145_v56 = vadd.f32 %v2084_v14, %v5048_v31  ;;  %v5914_v31 = vld [vmem:[#allocation32_spill] sm:$0xff]  ;;  %v5916_v20 = vld [vmem:[#allocation34_spill] sm:$0xff] }
 0xa3b   :  { %v5920_v14 = vld [vmem:[#allocation38_spill] sm:$0xff] }
 0xa3c   :  { %3945 = vpow2.f32 %v3275_v32  ;;  %v3276_v47 = vmul.f32 -1.442695, %v2100_v51 }
 0xa3e   :  { %3947 = vpow2.f32 %v3276_v47 }
 0xa49   :  { %v3946_v55 = vpop.eup %3945 }
 0xa4a   :  { %v2097_v9 = vadd.f32 1.0, %v3946_v55  ;;  %v5917_v55 = vld [vmem:[#allocation35_spill] sm:$0xff] }
 0xa4b   :  { %v3948_v54 = vpop.eup %3947 }
 0xa4c   :  { %3949 = vrcp.f32 %v2097_v9  ;;  %v2104_v4 = vadd.f32 1.0, %v3948_v54  ;;  %v5918_v9 = vld [vmem:[#allocation36_spill] sm:$0xff]  ;;  %v5919_v54 = vld [vmem:[#allocation37_spill] sm:$0xff] }
 0xa4e   :  { %3951 = vrcp.f32 %v2104_v4  ;;  %v5921_v4 = vld [vmem:[#allocation39_spill] sm:$0xff] }
 0xa59   :  { %v3950_v17 = vpop.eup %3949 }
 0xa5a   :  { %v2107_v42 = vmul.f32 %v3950_v17, %v2002_v0  ;;  %v5922_v0 = vld [vmem:[#allocation40_spill] sm:$0xff]  ;;  %v5923_v17 = vld [vmem:[#allocation41_spill] sm:$0xff] }
 0xa5b   :  { %v3952_v32 = vpop.eup %3951 }
 0xa5c   :  { %v2108_v39 = vadd.f32 %v2107_v42, %v5145_v56  ;;  %v2110_v58 = vsub.f32 1.0, %v3952_v32  ;;  %v2112_v51 = vmul.f32 %v3952_v32, %v5052_v38  ;;  %v5915_v38 = vld [vmem:[#allocation33_spill] sm:$0xff]  ;;  %v5924_v42 = vld [vmem:[#allocation16_spill] sm:$0xff] }
 0xa5e   :  { %3953 = vtanh.f32 %v2108_v39 }
 0xa6b   :  { %v3954_v63 = vpop.eup %3953 }
 0xa6c   :  { %v2111_v50 = vmul.f32 %v3954_v63, %v2110_v58 }
 0xa6e   :  { %v5149_v47 = vadd.f32 %v2112_v51, %v2111_v50  ;;  %v5925_v50 = vld [vmem:[#allocation19_spill] sm:$0xff] }
 0xa70   :  { %v2114_v13 = vpack.c.bf16 %v5149_v47, %v5149_v47 }
 0xa72   :  { %2148 = vmatmul.mubr.bf16.vlgmr.msra.gmra.mxu1 %v2114_v13  ;;  %2189 = vmatmul.mubr.bf16.vlgmr.msra.gmra.mxu0 %v2114_v13 }
 0xa73   :  { %2198 = vmatpush1.bf16.msra.mxu1 %v4896_v6  ;;  %3617 = vmatpush3.bf16.msra.mxu0 %v4898_v48 }
 0xa74   :  { %2199 = vmatprep.subr.bf16.mxu1 %v4902_v57  ;;  %3618 = vmatprep.subr.bf16.mxu0 %v5837_v53 }
 0xa75   :  { %2229 = vmatprep.mubr.bf16.mxu1 %v5838_v61  ;;  %3632 = vmatprep.mubr.msk.bf16.mxu0 %vm4177_vm1, %v5837_v53 }
 0xa77   :  { %2200 = vmatpush1.bf16.msra.mxu1 %v4906_v3  ;;  %3619 = vmatpush3.bf16.msra.mxu0 %v4908_v10 }
 0xa78   :  { %2201 = vmatprep.subr.bf16.mxu1 %v4912_v52  ;;  %3620 = vmatprep.subr.bf16.mxu0 %v5837_v53 }
 0xa7b   :  { %2202 = vmatpush1.bf16.msra.mxu1 %v4919_v41  ;;  %3621 = vmatpush3.bf16.msra.mxu0 %v4921_v11 }
 0xa7c   :  { %2203 = vmatprep.subr.bf16.mxu1 %v4925_v37  ;;  %3622 = vmatprep.subr.bf16.mxu0 %v5837_v53 }
 0xa7f   :  { %2204 = vmatpush1.bf16.msra.mxu1 %v4929_v34  ;;  %3623 = vmatpush3.bf16.msra.mxu0 %v4931_v15 }
 0xa80   :  { %2205 = vmatprep.subr.bf16.mxu1 %v5877_v21  ;;  %3624 = vmatprep.subr.bf16.mxu0 %v5837_v53 }
 0xa83   :  { %2206 = vmatpush1.bf16.msra.mxu1 %v5878_v5  ;;  %3625 = vmatpush3.bf16.msra.mxu0 %v5879_v36 }
 0xa84   :  { %2207 = vmatprep.subr.bf16.mxu1 %v5880_v23  ;;  %3626 = vmatprep.subr.bf16.mxu0 %v5837_v53 }
 0xa87   :  { %2208 = vmatpush1.bf16.msra.mxu1 %v4949_v28  ;;  %3627 = vmatpush3.bf16.msra.mxu0 %v4951_v29 }
 0xa88   :  { %2209 = vmatprep.subr.bf16.mxu1 %v4955_v30  ;;  %3628 = vmatprep.subr.bf16.mxu0 %v5837_v53 }
 0xa8b   :  { %2210 = vmatpush1.bf16.msra.mxu1 %v4959_v35  ;;  %3629 = vmatpush3.bf16.msra.mxu0 %v4961_v19 }
 0xa8c   :  { %2211 = vmatprep.subr.bf16.mxu1 %v4965_v25  ;;  %3630 = vmatprep.subr.bf16.mxu0 %v5837_v53 }
 0xa8f   :  { %2212 = vmatpush1.bf16.msra.mxu1 %v4969_v26  ;;  %3631 = vmatpush3.bf16.msra.mxu0 %v4971_v16 }
 0xa90   :  { %2304 = vmatprep.subr.bf16.mxu1 %v4718_v7  ;;  %2345 = vmatprep.subr.bf16.mxu0 %v4720_v8  ;;  %v5903_v7 = vld [vmem:[#allocation20_spill] sm:$0xff]  ;;  %v5904_v8 = vld [vmem:[#allocation22_spill] sm:$0xff] }
 0xa92   :  { %2230 = vmatmul.mubr.bf16.vlgmr.msra.gmra.mxu1 %v2114_v13  ;;  %3633 = vmatmul.mubr.bf16.vlgmr.msra.gmra.mxu0 %v2114_v13 }
 0xa93   :  { %2305 = vmatpush1.bf16.msra.mxu1 %v4722_v62  ;;  %2346 = vmatpush1.bf16.msra.mxu0 %v4724_v59  ;;  %v5905_v62 = vld [vmem:[#allocation23_spill] sm:$0xff]  ;;  %v5906_v59 = vld [vmem:[#allocation24_spill] sm:$0xff] }
 0xa94   :  { %2306 = vmatprep.subr.bf16.mxu1 %v4734_v27  ;;  %2347 = vmatprep.subr.bf16.mxu0 %v4736_v44  ;;  %v5907_v27 = vld [vmem:[#allocation25_spill] sm:$0xff]  ;;  %v5908_v44 = vld [vmem:[#allocation26_spill] sm:$0xff] }
 0xa95   :  { %2336 = vmatprep.mubr.bf16.mxu1 %v5838_v61  ;;  %2377 = vmatprep.mubr.bf16.mxu0 %v5838_v61 }
 0xa97   :  { %2307 = vmatpush1.bf16.msra.mxu1 %v4739_v49  ;;  %2348 = vmatpush1.bf16.msra.mxu0 %v4741_v60  ;;  %v5909_v49 = vld [vmem:[#allocation27_spill] sm:$0xff]  ;;  %v5910_v60 = vld [vmem:[#allocation28_spill] sm:$0xff] }
 0xa98   :  { %2308 = vmatprep.subr.bf16.mxu1 %v4747_v2  ;;  %2349 = vmatprep.subr.bf16.mxu0 %v4749_v12  ;;  %v5911_v2 = vld [vmem:[#allocation29_spill] sm:$0xff]  ;;  %v5912_v12 = vld [vmem:[#allocation30_spill] sm:$0xff] }
 0xa9b   :  { %2309 = vmatpush1.bf16.msra.mxu1 %v4751_v46  ;;  %2350 = vmatpush1.bf16.msra.mxu0 %v5903_v7  ;;  %v5913_v46 = vld [vmem:[#allocation31_spill] sm:$0xff] }
 0xa9c   :  { %2310 = vmatprep.subr.bf16.mxu1 %v5904_v8  ;;  %2351 = vmatprep.subr.bf16.mxu0 %v5905_v62  ;;  %v5926_v8 = vld [vmem:[#allocation18_spill] sm:$0xff] }
 0xa9f   :  { %2311 = vmatpush1.bf16.msra.mxu1 %v5906_v59  ;;  %2352 = vmatpush1.bf16.msra.mxu0 %v5907_v27 }
 0xaa0   :  { %2312 = vmatprep.subr.bf16.mxu1 %v5908_v44  ;;  %2353 = vmatprep.subr.bf16.mxu0 %v5909_v49 }
 0xaa3   :  { %2313 = vmatpush1.bf16.msra.mxu1 %v5910_v60  ;;  %2354 = vmatpush1.bf16.msra.mxu0 %v5911_v2 }
 0xaa4   :  { %2314 = vmatprep.subr.bf16.mxu1 %v5912_v12  ;;  %2355 = vmatprep.subr.bf16.mxu0 %v5913_v46 }
 0xaa7   :  { %2315 = vmatpush1.bf16.msra.mxu1 %v5914_v31  ;;  %2356 = vmatpush1.bf16.msra.mxu0 %v5915_v38 }
 0xaa8   :  { %2316 = vmatprep.subr.bf16.mxu1 %v5916_v20  ;;  %2357 = vmatprep.subr.bf16.mxu0 %v5917_v55 }
 0xaab   :  { %2317 = vmatpush1.bf16.msra.mxu1 %v5918_v9  ;;  %2358 = vmatpush1.bf16.msra.mxu0 %v5919_v54 }
 0xaac   :  { %2318 = vmatprep.subr.bf16.mxu1 %v5920_v14  ;;  %2359 = vmatprep.subr.bf16.mxu0 %v5921_v4 }
 0xaaf   :  { %2319 = vmatpush1.bf16.msra.mxu1 %v5922_v0  ;;  %2360 = vmatpush1.bf16.msra.mxu0 %v5923_v17 }
 0xab0   :  { %2386 = vmatprep.subr.bf16.mxu1 %v5924_v42  ;;  %3636 = vmatprep.subr.bf16.mxu0 %v5837_v53 }
 0xb32   :  { %v2149_v39 = vpop.f32.mrf.mxu1  ;;  %v2190_v32 = vpop.f32.mrf.mxu0 }
 0xb33   :  { %v2150_v46 = vadd.f32 %v2149_v39, %v4877_v18 }
 0xb34   :  { %v2151_v58 = vpop.f32.mrf.mxu1  ;;  %v2192_v63 = vpop.f32.mrf.mxu0 }
 0xb35   :  { %v2193_v51 = vadd.f32 %v2192_v63, %v5925_v50  ;;  %v2152_v17 = vadd.f32 %v2151_v58, %v4882_v24 }
 0xb36   :  { %v2153_v13 = vpop.f32.mrf.mxu1  ;;  %v2194_v7 = vpop.f32.mrf.mxu0 }
 0xb37   :  { %v5224_v62 = vadd.f32 %v2193_v51, %v5926_v8  ;;  %v2191_v8 = vadd.f32 %v2190_v32, %v4889_v33 }
 0xb38   :  { %v2154_v59 = vpop.f32.mrf.mxu1  ;;  %v2195_v27 = vpop.f32.mrf.mxu0 }
 0xb39   :  { %3106 = vrot.lane.b32.xlu0 %v5224_v62, %s4179_s25 }
 0xb52   :  { %v2231_v44 = vpop.f32.mrf.mxu1  ;;  %v2272_v49 = vpop.f32.mrf.mxu0 }
 0xb53   :  { %v2232_v60 = vadd.f32 %v2231_v44, %v5024_v43  ;;  %v2273_v13 = vadd.f32 %v2272_v49, %v5043_v22  ;;  %v5345_v49 = vld [vmem:[#allocation7 + $0x74] ss:$28 sps:$4 sm:$0xff]  }
 0xb54   :  { %v2233_v2 = vpop.f32.mrf.mxu1  ;;  %v3634_v12 = vpop.f32.mrf.mxu0  ;;  %5930 = vst [vmem:[#allocation13_spill] sm:$0xff] %v5345_v49 }
 0xb55   :  { %v5230_v31 = vadd.f32 %v2232_v60, %v5133_v45  ;;  %v2234_v38 = vadd.f32 %v2233_v2, %v5027_v1 }
 0xb56   :  { %v2235_v20 = vpop.f32.mrf.mxu1  ;;  %v2275_v55 = vpop.f32.mrf.mxu0 }
 0xb57   :  { %v2282_v9 = vadd.f32 %v5230_v31, %v2150_v46  ;;  %v5235_v0 = vadd.f32 %v2234_v38, %v5138_v40  ;;  %v5242_v40 = vadd.f32 %v2273_v13, %v5145_v56  ;;  %v5339_v56 = vld [vmem:[#allocation7 + $0xa8] ss:$28 sps:$4 sm:$0xff]   ;;  %v5348_v20 = vld [vmem:[#allocation7 + $0x7c] ss:$28 sps:$4 sm:$0xff]   ;;  %v5351_v55 = vld [vmem:[#allocation7 + $0x70] ss:$28 sps:$4 sm:$0xff]  }
 0xb58   :  { %v2236_v54 = vpop.f32.mrf.mxu1  ;;  %v3635_v14 = vpop.f32.mrf.mxu0  ;;  %5928 = vst [vmem:[#allocation17_spill] sm:$0xff] %v5339_v56  ;;  %5931 = vst [vmem:[#allocation14_spill] sm:$0xff] %v5348_v20 }
 0xb59   :  { %v3277_v4 = vmul.f32 -1.442695, %v2282_v9  ;;  %v2289_v42 = vadd.f32 %v5235_v0, %v2152_v17  ;;  %5932 = vst [vmem:[#allocation20_spill] sm:$0xff] %v5351_v55  ;;  %v5354_v9 = vld [vmem:[#allocation7 + $0x78] ss:$28 sps:$4 sm:$0xff]  }
 0xb5a   :  { %5933 = vst [vmem:[#allocation22_spill] sm:$0xff] %v5354_v9  ;;  %v5357_v54 = vld [vmem:[#allocation7 + $0x3c] ss:$28 sps:$4 sm:$0xff]   ;;  %v5360_v14 = vld [vmem:[#allocation7 + $0x44] ss:$28 sps:$4 sm:$0xff]  }
 0xb5b   :  { %3955 = vpow2.f32 %v3277_v4  ;;  %v3278_v39 = vmul.f32 -1.442695, %v2289_v42  ;;  %5934 = vst [vmem:[#allocation23_spill] sm:$0xff] %v5357_v54  ;;  %5935 = vst [vmem:[#allocation24_spill] sm:$0xff] %v5360_v14  ;;  %v5363_v4 = vld [vmem:[#allocation7 + $0x38] ss:$28 sps:$4 sm:$0xff]  }
 0xb5c   :  { %5936 = vst [vmem:[#allocation25_spill] sm:$0xff] %v5363_v4  ;;  %v5366_v17 = vld [vmem:[#allocation7 + $0x40] ss:$28 sps:$4 sm:$0xff]  }
 0xb5d   :  { %3957 = vpow2.f32 %v3278_v39  ;;  %5937 = vst [vmem:[#allocation26_spill] sm:$0xff] %v5366_v17  ;;  %v5369_v42 = vld [vmem:[#allocation7 + $0x4] ss:$28 sps:$4 sm:$0xff]   ;;  %v5372_v39 = vld [vmem:[#allocation7 + $0xc] ss:$28 sps:$4 sm:$0xff]  }
 0xb5e   :  { %5938 = vst [vmem:[#allocation27_spill] sm:$0xff] %v5369_v42  ;;  %5939 = vst [vmem:[#allocation28_spill] sm:$0xff] %v5372_v39 }
 0xb68   :  { %v3956_v45 = vpop.eup %3955 }
 0xb69   :  { %v2286_v63 = vadd.f32 1.0, %v3956_v45  ;;  %v5375_v45 = vld [vmem:[#allocation7] ss:$28 sps:$4 sm:$0xff]  }
 0xb6a   :  { %v3958_v51 = vpop.eup %3957  ;;  %5940 = vst [vmem:[#allocation29_spill] sm:$0xff] %v5375_v45 }
 0xb6b   :  { %3959 = vrcp.f32 %v2286_v63  ;;  %v2293_v7 = vadd.f32 1.0, %v3958_v51  ;;  %v5378_v63 = vld [vmem:[#allocation7 + $0x8] ss:$28 sps:$4 sm:$0xff]   ;;  %v5381_v51 = vld [vmem:[#allocation7 + $0x19c] ss:$28 sps:$4 sm:$0xff]  }
 0xb6c   :  { %5941 = vst [vmem:[#allocation30_spill] sm:$0xff] %v5378_v63  ;;  %5942 = vst [vmem:[#allocation31_spill] sm:$0xff] %v5381_v51 }
 0xb6d   :  { %3961 = vrcp.f32 %v2293_v7 }
 0xb78   :  { %v3960_v59 = vpop.eup %3959 }
 0xb79   :  { %v2296_v27 = vmul.f32 %v3960_v59, %v2191_v8 }
 0xb7a   :  { %v3962_v44 = vpop.eup %3961 }
 0xb7b   :  { %v2297_v58 = vadd.f32 %v2296_v27, %v5242_v40  ;;  %v2299_v60 = vsub.f32 1.0, %v3962_v44  ;;  %v2301_v46 = vmul.f32 %v3962_v44, %v5149_v47  ;;  %v5342_v47 = vld [vmem:[#allocation7 + $0xb0] ss:$28 sps:$4 sm:$0xff]  }
 0xb7c   :  { %5929 = vst [vmem:[#allocation15_spill] sm:$0xff] %v5342_v47 }
 0xb7d   :  { %3963 = vtanh.f32 %v2297_v58 }
 0xb8a   :  { %v3964_v2 = vpop.eup %3963 }
 0xb8b   :  { %v2300_v12 = vmul.f32 %v3964_v2, %v2299_v60 }
 0xb8d   :  { %v5246_v38 = vadd.f32 %v2301_v46, %v2300_v12 }
 0xb8f   :  { %v2303_v32 = vpack.c.bf16 %v5246_v38, %v5246_v38 }
 0xb91   :  { %2337 = vmatmul.mubr.bf16.vlgmr.msra.gmra.mxu1 %v2303_v32  ;;  %2378 = vmatmul.mubr.bf16.vlgmr.msra.gmra.mxu0 %v2303_v32 }
 0xb92   :  { %2387 = vmatpush1.bf16.msra.mxu1 %v4896_v6  ;;  %3637 = vmatpush3.bf16.msra.mxu0 %v4898_v48  ;;  %v5283_v6 = vld [vmem:[#allocation7 + $0x18c] ss:$28 sps:$4 sm:$0xff]   ;;  %v5286_v48 = vld [vmem:[#allocation7 + $0x194] ss:$28 sps:$4 sm:$0xff]  }
 0xb93   :  { %2388 = vmatprep.subr.bf16.mxu1 %v4902_v57  ;;  %3638 = vmatprep.subr.bf16.mxu0 %v5837_v53  ;;  %v5289_v57 = vld [vmem:[#allocation7 + $0x188] ss:$28 sps:$4 sm:$0xff]  }
 0xb94   :  { %2418 = vmatprep.mubr.bf16.mxu1 %v5838_v61  ;;  %3652 = vmatprep.mubr.msk.bf16.mxu0 %vm4177_vm1, %v5837_v53 }
 0xb96   :  { %2389 = vmatpush1.bf16.msra.mxu1 %v4906_v3  ;;  %3639 = vmatpush3.bf16.msra.mxu0 %v4908_v10  ;;  %v5292_v3 = vld [vmem:[#allocation7 + $0x190] ss:$28 sps:$4 sm:$0xff]  }
 0xb97   :  { %2390 = vmatprep.subr.bf16.mxu1 %v4912_v52  ;;  %3640 = vmatprep.subr.bf16.mxu0 %v5837_v53  ;;  %v5295_v10 = vld [vmem:[#allocation7 + $0x154] ss:$28 sps:$4 sm:$0xff]   ;;  %v5298_v52 = vld [vmem:[#allocation7 + $0x15c] ss:$28 sps:$4 sm:$0xff]  }
 0xb9a   :  { %2391 = vmatpush1.bf16.msra.mxu1 %v4919_v41  ;;  %3641 = vmatpush3.bf16.msra.mxu0 %v4921_v11  ;;  %v5303_v41 = vld [vmem:[#allocation7 + $0x150] ss:$28 sps:$4 sm:$0xff]   ;;  %v5306_v11 = vld [vmem:[#allocation7 + $0x158] ss:$28 sps:$4 sm:$0xff]  }
 0xb9b   :  { %2392 = vmatprep.subr.bf16.mxu1 %v4925_v37  ;;  %3642 = vmatprep.subr.bf16.mxu0 %v5837_v53  ;;  %v5309_v37 = vld [vmem:[#allocation7 + $0x11c] ss:$28 sps:$4 sm:$0xff]  }
 0xb9e   :  { %2393 = vmatpush1.bf16.msra.mxu1 %v4929_v34  ;;  %3643 = vmatpush3.bf16.msra.mxu0 %v4931_v15  ;;  %v5312_v34 = vld [vmem:[#allocation7 + $0x124] ss:$28 sps:$4 sm:$0xff]   ;;  %v5315_v15 = vld [vmem:[#allocation7 + $0x118] ss:$28 sps:$4 sm:$0xff]  }
 0xb9f   :  { %2394 = vmatprep.subr.bf16.mxu1 %v5877_v21  ;;  %3644 = vmatprep.subr.bf16.mxu0 %v5837_v53  ;;  %v5327_v21 = vld [vmem:[#allocation7 + $0xe0] ss:$28 sps:$4 sm:$0xff]  }
 0xba2   :  { %2395 = vmatpush1.bf16.msra.mxu1 %v5878_v5  ;;  %3645 = vmatpush3.bf16.msra.mxu0 %v5879_v36  ;;  %v5330_v5 = vld [vmem:[#allocation7 + $0xe8] ss:$28 sps:$4 sm:$0xff]  }
 0xba3   :  { %2396 = vmatprep.subr.bf16.mxu1 %v5880_v23  ;;  %3646 = vmatprep.subr.bf16.mxu0 %v5837_v53  ;;  %v5333_v36 = vld [vmem:[#allocation7 + $0xac] ss:$28 sps:$4 sm:$0xff]   ;;  %v5336_v23 = vld [vmem:[#allocation7 + $0xb4] ss:$28 sps:$4 sm:$0xff]  }
 0xba4   :  { %5927 = vst [vmem:[#allocation12_spill] sm:$0xff] %v5336_v23 }
 0xba6   :  { %2397 = vmatpush1.bf16.msra.mxu1 %v4949_v28  ;;  %3647 = vmatpush3.bf16.msra.mxu0 %v4951_v29  ;;  %v5318_v28 = vld [vmem:[#allocation7 + $0x120] ss:$28 sps:$4 sm:$0xff]  }
 0xba7   :  { %2398 = vmatprep.subr.bf16.mxu1 %v4955_v30  ;;  %3648 = vmatprep.subr.bf16.mxu0 %v5837_v53  ;;  %v5321_v29 = vld [vmem:[#allocation7 + $0xe4] ss:$28 sps:$4 sm:$0xff]   ;;  %v5324_v30 = vld [vmem:[#allocation7 + $0xec] ss:$28 sps:$4 sm:$0xff]  }
 0xbaa   :  { %2399 = vmatpush1.bf16.msra.mxu1 %v4959_v35  ;;  %3649 = vmatpush3.bf16.msra.mxu0 %v4961_v19 }
 0xbab   :  { %2400 = vmatprep.subr.bf16.mxu1 %v4965_v25  ;;  %3650 = vmatprep.subr.bf16.mxu0 %v5837_v53 }
 0xbae   :  { %2401 = vmatpush1.bf16.msra.mxu1 %v4969_v26  ;;  %3651 = vmatpush3.bf16.msra.mxu0 %v4971_v16 }
 0xbaf   :  { %2493 = vmatprep.subr.bf16.mxu1 %v5283_v6  ;;  %2534 = vmatprep.subr.bf16.mxu0 %v5286_v48 }
 0xbb1   :  { %2419 = vmatmul.mubr.bf16.vlgmr.msra.gmra.mxu1 %v2303_v32  ;;  %3653 = vmatmul.mubr.bf16.vlgmr.msra.gmra.mxu0 %v2303_v32 }
 0xbb2   :  { %2494 = vmatpush1.bf16.msra.mxu1 %v5289_v57  ;;  %2535 = vmatpush1.bf16.msra.mxu0 %v5292_v3 }
 0xbb3   :  { %2495 = vmatprep.subr.bf16.mxu1 %v5295_v10  ;;  %2536 = vmatprep.subr.bf16.mxu0 %v5298_v52 }
 0xbb4   :  { %2525 = vmatprep.mubr.bf16.mxu1 %v5838_v61  ;;  %2566 = vmatprep.mubr.bf16.mxu0 %v5838_v61 }
 0xbb6   :  { %2496 = vmatpush1.bf16.msra.mxu1 %v5303_v41  ;;  %2537 = vmatpush1.bf16.msra.mxu0 %v5306_v11 }
 0xbb7   :  { %2497 = vmatprep.subr.bf16.mxu1 %v5309_v37  ;;  %2538 = vmatprep.subr.bf16.mxu0 %v5312_v34 }
 0xbba   :  { %2498 = vmatpush1.bf16.msra.mxu1 %v5315_v15  ;;  %2539 = vmatpush1.bf16.msra.mxu0 %v5318_v28 }
 0xbbb   :  { %2499 = vmatprep.subr.bf16.mxu1 %v5321_v29  ;;  %2540 = vmatprep.subr.bf16.mxu0 %v5324_v30 }
 0xbbe   :  { %2500 = vmatpush1.bf16.msra.mxu1 %v5327_v21  ;;  %2541 = vmatpush1.bf16.msra.mxu0 %v5330_v5 }
 0xbbf   :  { %2501 = vmatprep.subr.bf16.mxu1 %v5333_v36  ;;  %2542 = vmatprep.subr.bf16.mxu0 %v5336_v23 }
 0xbc2   :  { %2502 = vmatpush1.bf16.msra.mxu1 %v5339_v56  ;;  %2543 = vmatpush1.bf16.msra.mxu0 %v5342_v47 }
 0xbc3   :  { %2503 = vmatprep.subr.bf16.mxu1 %v5345_v49  ;;  %2544 = vmatprep.subr.bf16.mxu0 %v5348_v20 }
 0xbc6   :  { %2504 = vmatpush1.bf16.msra.mxu1 %v5351_v55  ;;  %2545 = vmatpush1.bf16.msra.mxu0 %v5354_v9 }
 0xbc7   :  { %2505 = vmatprep.subr.bf16.mxu1 %v5357_v54  ;;  %2546 = vmatprep.subr.bf16.mxu0 %v5360_v14 }
 0xbca   :  { %2506 = vmatpush1.bf16.msra.mxu1 %v5363_v4  ;;  %2547 = vmatpush1.bf16.msra.mxu0 %v5366_v17 }
 0xbcb   :  { %2507 = vmatprep.subr.bf16.mxu1 %v5369_v42  ;;  %2548 = vmatprep.subr.bf16.mxu0 %v5372_v39 }
 0xbce   :  { %2508 = vmatpush1.bf16.msra.mxu1 %v5375_v45  ;;  %2549 = vmatpush1.bf16.msra.mxu0 %v5378_v63 }
 0xbcf   :  { %2575 = vmatprep.subr.bf16.mxu1 %v5381_v51  ;;  %3656 = vmatprep.subr.bf16.mxu0 %v5837_v53 }
 0xc51   :  { %v2338_v13 = vpop.f32.mrf.mxu1  ;;  %v2379_v7 = vpop.f32.mrf.mxu0 }
 0xc52   :  { %v2339_v39 = vadd.f32 %v2338_v13, %v4877_v18 }
 0xc53   :  { %v2340_v8 = vpop.f32.mrf.mxu1  ;;  %v2381_v59 = vpop.f32.mrf.mxu0 }
 0xc54   :  { %v2382_v27 = vadd.f32 %v2381_v59, %v5925_v50 }
 0xc55   :  { %v2342_v58 = vpop.f32.mrf.mxu1  ;;  %v2383_v44 = vpop.f32.mrf.mxu0 }
 0xc56   :  { %v5387_v60 = vadd.f32 %v2382_v27, %v5224_v62 }
 0xc57   :  { %v2343_v2 = vpop.f32.mrf.mxu1  ;;  %v2384_v12 = vpop.f32.mrf.mxu0 }
 0xc58   :  { %5943 = vst [vmem:[#allocation32_spill] sm:$0xff] %v5387_v60  ;;  %3110 = vrot.lane.b32.xlu1 %v5387_v60, %s4180_s26 }
 0xc71   :  { %v2420_v46 = vpop.f32.mrf.mxu1  ;;  %v2461_v32 = vpop.f32.mrf.mxu0 }
 0xc72   :  { %v2421_v51 = vadd.f32 %v2420_v46, %v5024_v43  ;;  %v2341_v46 = vadd.f32 %v2340_v8, %v4882_v24 }
 0xc73   :  { %v2422_v63 = vpop.f32.mrf.mxu1  ;;  %v3654_v45 = vpop.f32.mrf.mxu0 }
 0xc74   :  { %v5393_v59 = vadd.f32 %v2421_v51, %v5230_v31  ;;  %v2423_v58 = vadd.f32 %v2422_v63, %v5027_v1 }
 0xc75   :  { %v2424_v62 = vpop.f32.mrf.mxu1  ;;  %v2464_v27 = vpop.f32.mrf.mxu0 }
 0xc76   :  { %v2471_v44 = vadd.f32 %v5393_v59, %v2339_v39  ;;  %v5398_v50 = vadd.f32 %v2423_v58, %v5235_v0  ;;  %v2462_v62 = vadd.f32 %v2461_v32, %v5043_v22  ;;  %v2380_v27 = vadd.f32 %v2379_v7, %v4889_v33  ;;  %v5416_v32 = vld [vmem:[#allocation7 + $0x1a0] ss:$28 sps:$4 sm:$0xff]  }
 0xc77   :  { %v2425_v2 = vpop.f32.mrf.mxu1  ;;  %v3655_v12 = vpop.f32.mrf.mxu0 }
 0xc78   :  { %v3279_v60 = vmul.f32 -1.442695, %v2471_v44  ;;  %v2478_v45 = vadd.f32 %v5398_v50, %v2341_v46  ;;  %v5405_v0 = vadd.f32 %v2462_v62, %v5242_v40  ;;  %v5413_v40 = vld [vmem:[#allocation7 + $0x198] ss:$28 sps:$4 sm:$0xff]   ;;  %v5436_v62 = vld [vmem:[#allocation7 + $0x128] ss:$28 sps:$4 sm:$0xff]  }
 0xc7a   :  { %3965 = vpow2.f32 %v3279_v60  ;;  %v3280_v13 = vmul.f32 -1.442695, %v2478_v45 }
 0xc7c   :  { %3967 = vpow2.f32 %v3280_v13 }
 0xc87   :  { %v3966_v31 = vpop.eup %3965 }
 0xc88   :  { %v2475_v51 = vadd.f32 1.0, %v3966_v31  ;;  %v5419_v31 = vld [vmem:[#allocation7 + $0x164] ss:$28 sps:$4 sm:$0xff]  }
 0xc89   :  { %v3968_v63 = vpop.eup %3967 }
 0xc8a   :  { %3969 = vrcp.f32 %v2475_v51  ;;  %v2482_v39 = vadd.f32 1.0, %v3968_v63  ;;  %v5429_v51 = vld [vmem:[#allocation7 + $0x168] ss:$28 sps:$4 sm:$0xff]  }
 0xc8b   :  { %v5432_v63 = vld [vmem:[#allocation7 + $0x12c] ss:$28 sps:$4 sm:$0xff]  }
 0xc8c   :  { %3971 = vrcp.f32 %v2482_v39  ;;  %v5439_v39 = vld [vmem:[#allocation7 + $0x130] ss:$28 sps:$4 sm:$0xff]  }
 0xc97   :  { %v3970_v44 = vpop.eup %3969 }
 0xc98   :  { %v2485_v58 = vmul.f32 %v3970_v44, %v2380_v27  ;;  %v5442_v27 = vld [vmem:[#allocation7 + $0xf4] ss:$28 sps:$4 sm:$0xff]  }
 0xc99   :  { %v3972_v60 = vpop.eup %3971  ;;  %v5446_v44 = vld [vmem:[#allocation7 + $0xf0] ss:$28 sps:$4 sm:$0xff]  }
 0xc9a   :  { %v2486_v8 = vadd.f32 %v2485_v58, %v5405_v0  ;;  %v2488_v2 = vsub.f32 1.0, %v3972_v60  ;;  %v2490_v45 = vmul.f32 %v3972_v60, %v5246_v38  ;;  %v5426_v38 = vld [vmem:[#allocation7 + $0x160] ss:$28 sps:$4 sm:$0xff]   ;;  %v5449_v58 = vld [vmem:[#allocation7 + $0xf8] ss:$28 sps:$4 sm:$0xff]  }
 0xc9b   :  { %v5456_v60 = vld [vmem:[#allocation7 + $0xb8] ss:$28 sps:$4 sm:$0xff]  }
 0xc9c   :  { %3973 = vtanh.f32 %v2486_v8  ;;  %v5452_v8 = vld [vmem:[#allocation7 + $0xbc] ss:$28 sps:$4 sm:$0xff]  }
 0xc9d   :  { %5944 = vst [vmem:[#allocation33_spill] sm:$0xff] %v5452_v8 }
 0xca9   :  { %v3974_v12 = vpop.eup %3973 }
 0xcaa   :  { %v2489_v46 = vmul.f32 %v3974_v12, %v2488_v2  ;;  %v5459_v2 = vld [vmem:[#allocation7 + $0xc0] ss:$28 sps:$4 sm:$0xff]  }
 0xcab   :  { %v5462_v12 = vld [vmem:[#allocation7 + $0x84] ss:$28 sps:$4 sm:$0xff]  }
 0xcac   :  { %v5409_v13 = vadd.f32 %v2490_v45, %v2489_v46  ;;  %v5466_v46 = vld [vmem:[#allocation7 + $0x80] ss:$28 sps:$4 sm:$0xff]   ;;  %v5469_v45 = vld [vmem:[#allocation7 + $0x88] ss:$28 sps:$4 sm:$0xff]  }
 0xcae   :  { %v2492_v7 = vpack.c.bf16 %v5409_v13, %v5409_v13 }
 0xcb0   :  { %2526 = vmatmul.mubr.bf16.vlgmr.msra.gmra.mxu1 %v2492_v7  ;;  %2567 = vmatmul.mubr.bf16.vlgmr.msra.gmra.mxu0 %v2492_v7 }
 0xcb1   :  { %2576 = vmatpush1.bf16.msra.mxu1 %v5413_v40  ;;  %3657 = vmatpush3.bf16.msra.mxu0 %v5416_v32 }
 0xcb2   :  { %2577 = vmatprep.subr.bf16.mxu1 %v5419_v31  ;;  %3658 = vmatprep.subr.bf16.mxu0 %v5837_v53 }
 0xcb3   :  { %2607 = vmatprep.mubr.bf16.mxu1 %v5838_v61  ;;  %3672 = vmatprep.mubr.msk.bf16.mxu0 %vm4177_vm1, %v5837_v53 }
 0xcb5   :  { %2578 = vmatpush1.bf16.msra.mxu1 %v5426_v38  ;;  %3659 = vmatpush3.bf16.msra.mxu0 %v5429_v51 }
 0xcb6   :  { %2579 = vmatprep.subr.bf16.mxu1 %v5432_v63  ;;  %3660 = vmatprep.subr.bf16.mxu0 %v5837_v53 }
 0xcb9   :  { %2580 = vmatpush1.bf16.msra.mxu1 %v5436_v62  ;;  %3661 = vmatpush3.bf16.msra.mxu0 %v5439_v39 }
 0xcba   :  { %2581 = vmatprep.subr.bf16.mxu1 %v5442_v27  ;;  %3662 = vmatprep.subr.bf16.mxu0 %v5837_v53 }
 0xcbd   :  { %2582 = vmatpush1.bf16.msra.mxu1 %v5446_v44  ;;  %3663 = vmatpush3.bf16.msra.mxu0 %v5449_v58 }
 0xcbe   :  { %2583 = vmatprep.subr.bf16.mxu1 %v5452_v8  ;;  %3664 = vmatprep.subr.bf16.mxu0 %v5837_v53  ;;  %v5472_v8 = vld [vmem:[#allocation7 + $0x4c] ss:$28 sps:$4 sm:$0xff]  }
 0xcc1   :  { %2584 = vmatpush1.bf16.msra.mxu1 %v5456_v60  ;;  %3665 = vmatpush3.bf16.msra.mxu0 %v5459_v2 }
 0xcc2   :  { %2585 = vmatprep.subr.bf16.mxu1 %v5462_v12  ;;  %3666 = vmatprep.subr.bf16.mxu0 %v5837_v53 }
 0xcc5   :  { %2586 = vmatpush1.bf16.msra.mxu1 %v5466_v46  ;;  %3667 = vmatpush3.bf16.msra.mxu0 %v5469_v45 }
 0xcc6   :  { %2587 = vmatprep.subr.bf16.mxu1 %v5472_v8  ;;  %3668 = vmatprep.subr.bf16.mxu0 %v5837_v53 }
 0xcc9   :  { %2588 = vmatpush1.bf16.msra.mxu1 %v4959_v35  ;;  %3669 = vmatpush3.bf16.msra.mxu0 %v4961_v19  ;;  %v5945_v19 = vld [vmem:[#allocation28_spill] sm:$0xff] }
 0xcca   :  { %2589 = vmatprep.subr.bf16.mxu1 %v4965_v25  ;;  %3670 = vmatprep.subr.bf16.mxu0 %v5837_v53  ;;  %v5947_v25 = vld [vmem:[#allocation30_spill] sm:$0xff] }
 0xccd   :  { %2590 = vmatpush1.bf16.msra.mxu1 %v4969_v26  ;;  %3671 = vmatpush3.bf16.msra.mxu0 %v4971_v16  ;;  %v5946_v16 = vld [vmem:[#allocation29_spill] sm:$0xff]  ;;  %v5948_v26 = vld [vmem:[#allocation31_spill] sm:$0xff] }
 0xcce   :  { %2682 = vmatprep.subr.bf16.mxu1 %v5283_v6  ;;  %2723 = vmatprep.subr.bf16.mxu0 %v5286_v48 }
 0xcd0   :  { %2608 = vmatmul.mubr.bf16.vlgmr.msra.gmra.mxu1 %v2492_v7  ;;  %3673 = vmatmul.mubr.bf16.vlgmr.msra.gmra.mxu0 %v2492_v7 }
 0xcd1   :  { %2683 = vmatpush1.bf16.msra.mxu1 %v5289_v57  ;;  %2724 = vmatpush1.bf16.msra.mxu0 %v5292_v3 }
 0xcd2   :  { %2684 = vmatprep.subr.bf16.mxu1 %v5295_v10  ;;  %2725 = vmatprep.subr.bf16.mxu0 %v5298_v52 }
 0xcd3   :  { %2714 = vmatprep.mubr.bf16.mxu1 %v5838_v61  ;;  %2755 = vmatprep.mubr.bf16.mxu0 %v5838_v61 }
 0xcd5   :  { %2685 = vmatpush1.bf16.msra.mxu1 %v5303_v41  ;;  %2726 = vmatpush1.bf16.msra.mxu0 %v5306_v11 }
 0xcd6   :  { %2686 = vmatprep.subr.bf16.mxu1 %v5309_v37  ;;  %2727 = vmatprep.subr.bf16.mxu0 %v5312_v34 }
 0xcd9   :  { %2687 = vmatpush1.bf16.msra.mxu1 %v5315_v15  ;;  %2728 = vmatpush1.bf16.msra.mxu0 %v5318_v28 }
 0xcda   :  { %2688 = vmatprep.subr.bf16.mxu1 %v5321_v29  ;;  %2729 = vmatprep.subr.bf16.mxu0 %v5324_v30 }
 0xcdd   :  { %2689 = vmatpush1.bf16.msra.mxu1 %v5327_v21  ;;  %2730 = vmatpush1.bf16.msra.mxu0 %v5330_v5 }
 0xcde   :  { %2690 = vmatprep.subr.bf16.mxu1 %v5333_v36  ;;  %2731 = vmatprep.subr.bf16.mxu0 %v5336_v23 }
 0xce1   :  { %2691 = vmatpush1.bf16.msra.mxu1 %v5339_v56  ;;  %2732 = vmatpush1.bf16.msra.mxu0 %v5342_v47 }
 0xce2   :  { %2692 = vmatprep.subr.bf16.mxu1 %v5345_v49  ;;  %2733 = vmatprep.subr.bf16.mxu0 %v5348_v20  ;;  %v5950_v20 = vld [vmem:[#allocation32_spill] sm:$0xff] }
 0xce5   :  { %2693 = vmatpush1.bf16.msra.mxu1 %v5351_v55  ;;  %2734 = vmatpush1.bf16.msra.mxu0 %v5354_v9  ;;  %v5949_v9 = vld [vmem:[#allocation19_spill] sm:$0xff] }
 0xce6   :  { %2694 = vmatprep.subr.bf16.mxu1 %v5357_v54  ;;  %2735 = vmatprep.subr.bf16.mxu0 %v5360_v14 }
 0xce9   :  { %2695 = vmatpush1.bf16.msra.mxu1 %v5363_v4  ;;  %2736 = vmatpush1.bf16.msra.mxu0 %v5366_v17 }
 0xcea   :  { %2696 = vmatprep.subr.bf16.mxu1 %v5369_v42  ;;  %2737 = vmatprep.subr.bf16.mxu0 %v5945_v19 }
 0xced   :  { %2697 = vmatpush1.bf16.msra.mxu1 %v5946_v16  ;;  %2738 = vmatpush1.bf16.msra.mxu0 %v5947_v25 }
 0xcee   :  { %2764 = vmatprep.subr.bf16.mxu1 %v5948_v26  ;;  %3676 = vmatprep.subr.bf16.mxu0 %v5837_v53 }
 0xd70   :  { %v2527_v35 = vpop.f32.mrf.mxu1  ;;  %v2568_v7 = vpop.f32.mrf.mxu0 }
 0xd71   :  { %v2528_v23 = vadd.f32 %v2527_v35, %v4877_v18 }
 0xd72   :  { %v2529_v54 = vpop.f32.mrf.mxu1  ;;  %v2570_v14 = vpop.f32.mrf.mxu0 }
 0xd73   :  { %v2571_v4 = vadd.f32 %v2570_v14, %v5949_v9 }
 0xd74   :  { %v2531_v55 = vpop.f32.mrf.mxu1  ;;  %v2572_v17 = vpop.f32.mrf.mxu0 }
 0xd75   :  { %v5520_v42 = vadd.f32 %v2571_v4, %v5950_v20 }
 0xd76   :  { %v2532_v19 = vpop.f32.mrf.mxu1  ;;  %v2573_v49 = vpop.f32.mrf.mxu0 }
 0xd77   :  { %5951 = vst [vmem:[#allocation34_spill] sm:$0xff] %v5520_v42  ;;  %3114 = vrot.lane.b32.xlu1 %v5520_v42, %s4181_s27 }
 0xd90   :  { %v2609_v25 = vpop.f32.mrf.mxu1  ;;  %v2650_v26 = vpop.f32.mrf.mxu0 }
 0xd91   :  { %v2610_v16 = vadd.f32 %v2609_v25, %v5024_v43  ;;  %v2530_v25 = vadd.f32 %v2529_v54, %v4882_v24 }
 0xd92   :  { %v2611_v47 = vpop.f32.mrf.mxu1  ;;  %v3674_v56 = vpop.f32.mrf.mxu0 }
 0xd93   :  { %v5526_v14 = vadd.f32 %v2610_v16, %v5393_v59  ;;  %v2612_v55 = vadd.f32 %v2611_v47, %v5027_v1 }
 0xd94   :  { %v2613_v20 = vpop.f32.mrf.mxu1  ;;  %v2653_v4 = vpop.f32.mrf.mxu0 }
 0xd95   :  { %v2660_v49 = vadd.f32 %v5526_v14, %v2528_v23  ;;  %v5531_v9 = vadd.f32 %v2612_v55, %v5398_v50  ;;  %v2651_v20 = vadd.f32 %v2650_v26, %v5043_v22  ;;  %v2569_v4 = vadd.f32 %v2568_v7, %v4889_v33  ;;  %v5576_v7 = vld [vmem:[#allocation7 + $0x50] ss:$28 sps:$4 sm:$0xff]  }
 0xd96   :  { %v2614_v17 = vpop.f32.mrf.mxu1  ;;  %v3675_v19 = vpop.f32.mrf.mxu0 }
 0xd97   :  { %v3281_v42 = vmul.f32 -1.442695, %v2660_v49  ;;  %v2667_v56 = vadd.f32 %v5531_v9, %v2530_v25  ;;  %v5538_v50 = vadd.f32 %v2651_v20, %v5405_v0  ;;  %v5952_v0 = vld [vmem:[#allocation33_spill] sm:$0xff]  ;;  %v5960_v20 = vld [vmem:[#allocation23_spill] sm:$0xff] }
 0xd99   :  { %3975 = vpow2.f32 %v3281_v42  ;;  %v3282_v35 = vmul.f32 -1.442695, %v2667_v56 }
 0xd9b   :  { %3977 = vpow2.f32 %v3282_v35 }
 0xda6   :  { %v3976_v59 = vpop.eup %3975 }
 0xda7   :  { %v2664_v16 = vadd.f32 1.0, %v3976_v59  ;;  %v5579_v59 = vld [vmem:[#allocation7 + $0x14] ss:$28 sps:$4 sm:$0xff]  }
 0xda8   :  { %v3978_v47 = vpop.eup %3977 }
 0xda9   :  { %3979 = vrcp.f32 %v2664_v16  ;;  %v2671_v23 = vadd.f32 1.0, %v3978_v47  ;;  %v5583_v16 = vld [vmem:[#allocation7 + $0x10] ss:$28 sps:$4 sm:$0xff]   ;;  %v5586_v47 = vld [vmem:[#allocation7 + $0x18] ss:$28 sps:$4 sm:$0xff]  }
 0xdab   :  { %3981 = vrcp.f32 %v2671_v23  ;;  %v5962_v23 = vld [vmem:[#allocation25_spill] sm:$0xff] }
 0xdb6   :  { %v3980_v49 = vpop.eup %3979 }
 0xdb7   :  { %v2674_v55 = vmul.f32 %v3980_v49, %v2569_v4  ;;  %v5964_v4 = vld [vmem:[#allocation27_spill] sm:$0xff]  ;;  %v5965_v49 = vld [vmem:[#allocation28_spill] sm:$0xff] }
 0xdb8   :  { %v3982_v42 = vpop.eup %3981 }
 0xdb9   :  { %v2675_v54 = vadd.f32 %v2674_v55, %v5538_v50  ;;  %v2677_v17 = vsub.f32 1.0, %v3982_v42  ;;  %v2679_v56 = vmul.f32 %v3982_v42, %v5409_v13  ;;  %v5573_v13 = vld [vmem:[#allocation7 + $0x48] ss:$28 sps:$4 sm:$0xff]   ;;  %v5966_v55 = vld [vmem:[#allocation29_spill] sm:$0xff] }
 0xdba   :  { %v5968_v42 = vld [vmem:[#allocation31_spill] sm:$0xff] }
 0xdbb   :  { %3983 = vtanh.f32 %v2675_v54  ;;  %v5967_v54 = vld [vmem:[#allocation30_spill] sm:$0xff] }
 0xdc8   :  { %v3984_v19 = vpop.eup %3983 }
 0xdc9   :  { %v2678_v25 = vmul.f32 %v3984_v19, %v2677_v17 }
 0xdcb   :  { %v5542_v35 = vadd.f32 %v2679_v56, %v2678_v25 }
 0xdcd   :  { %v2681_v26 = vpack.c.bf16 %v5542_v35, %v5542_v35 }
 0xdcf   :  { %2715 = vmatmul.mubr.bf16.vlgmr.msra.gmra.mxu1 %v2681_v26  ;;  %2756 = vmatmul.mubr.bf16.vlgmr.msra.gmra.mxu0 %v2681_v26 }
 0xdd0   :  { %2765 = vmatpush1.bf16.msra.mxu1 %v5413_v40  ;;  %3677 = vmatpush3.bf16.msra.mxu0 %v5416_v32 }
 0xdd1   :  { %2766 = vmatprep.subr.bf16.mxu1 %v5419_v31  ;;  %3678 = vmatprep.subr.bf16.mxu0 %v5837_v53 }
 0xdd2   :  { %2796 = vmatprep.mubr.bf16.mxu1 %v5838_v61  ;;  %3692 = vmatprep.mubr.msk.bf16.mxu0 %vm4177_vm1, %v5837_v53 }
 0xdd4   :  { %2767 = vmatpush1.bf16.msra.mxu1 %v5426_v38  ;;  %3679 = vmatpush3.bf16.msra.mxu0 %v5429_v51 }
 0xdd5   :  { %2768 = vmatprep.subr.bf16.mxu1 %v5432_v63  ;;  %3680 = vmatprep.subr.bf16.mxu0 %v5837_v53 }
 0xdd8   :  { %2769 = vmatpush1.bf16.msra.mxu1 %v5436_v62  ;;  %3681 = vmatpush3.bf16.msra.mxu0 %v5439_v39 }
 0xdd9   :  { %2770 = vmatprep.subr.bf16.mxu1 %v5442_v27  ;;  %3682 = vmatprep.subr.bf16.mxu0 %v5837_v53 }
 0xddc   :  { %2771 = vmatpush1.bf16.msra.mxu1 %v5446_v44  ;;  %3683 = vmatpush3.bf16.msra.mxu0 %v5449_v58 }
 0xddd   :  { %2772 = vmatprep.subr.bf16.mxu1 %v5952_v0  ;;  %3684 = vmatprep.subr.bf16.mxu0 %v5837_v53 }
 0xde0   :  { %2773 = vmatpush1.bf16.msra.mxu1 %v5456_v60  ;;  %3685 = vmatpush3.bf16.msra.mxu0 %v5459_v2 }
 0xde1   :  { %2774 = vmatprep.subr.bf16.mxu1 %v5462_v12  ;;  %3686 = vmatprep.subr.bf16.mxu0 %v5837_v53 }
 0xde4   :  { %2775 = vmatpush1.bf16.msra.mxu1 %v5466_v46  ;;  %3687 = vmatpush3.bf16.msra.mxu0 %v5469_v45 }
 0xde5   :  { %2776 = vmatprep.subr.bf16.mxu1 %v5472_v8  ;;  %3688 = vmatprep.subr.bf16.mxu0 %v5837_v53 }
 0xde8   :  { %2777 = vmatpush1.bf16.msra.mxu1 %v5573_v13  ;;  %3689 = vmatpush3.bf16.msra.mxu0 %v5576_v7 }
 0xde9   :  { %2778 = vmatprep.subr.bf16.mxu1 %v5579_v59  ;;  %3690 = vmatprep.subr.bf16.mxu0 %v5837_v53 }
 0xdec   :  { %2779 = vmatpush1.bf16.msra.mxu1 %v5583_v16  ;;  %3691 = vmatpush3.bf16.msra.mxu0 %v5586_v47 }
 0xded   :  { %2871 = vmatprep.subr.bf16.mxu1 %v5283_v6  ;;  %2912 = vmatprep.subr.bf16.mxu0 %v5286_v48  ;;  %v5953_v6 = vld [vmem:[#allocation12_spill] sm:$0xff] }
 0xdef   :  { %2797 = vmatmul.mubr.bf16.vlgmr.msra.gmra.mxu1 %v2681_v26  ;;  %3693 = vmatmul.mubr.bf16.vlgmr.msra.gmra.mxu0 %v2681_v26  ;;  %v5969_v26 = vld [vmem:[#allocation19_spill] sm:$0xff] }
 0xdf0   :  { %2872 = vmatpush1.bf16.msra.mxu1 %v5289_v57  ;;  %2913 = vmatpush1.bf16.msra.mxu0 %v5292_v3  ;;  %v5954_v57 = vld [vmem:[#allocation17_spill] sm:$0xff] }
 0xdf1   :  { %2873 = vmatprep.subr.bf16.mxu1 %v5295_v10  ;;  %2914 = vmatprep.subr.bf16.mxu0 %v5298_v52  ;;  %v5955_v10 = vld [vmem:[#allocation15_spill] sm:$0xff] }
 0xdf2   :  { %2903 = vmatprep.mubr.bf16.mxu1 %v5838_v61  ;;  %2944 = vmatprep.mubr.bf16.mxu0 %v5838_v61 }
 0xdf4   :  { %2874 = vmatpush1.bf16.msra.mxu1 %v5303_v41  ;;  %2915 = vmatpush1.bf16.msra.mxu0 %v5306_v11  ;;  %v5956_v41 = vld [vmem:[#allocation13_spill] sm:$0xff] }
 0xdf5   :  { %2875 = vmatprep.subr.bf16.mxu1 %v5309_v37  ;;  %2916 = vmatprep.subr.bf16.mxu0 %v5312_v34  ;;  %v5957_v37 = vld [vmem:[#allocation14_spill] sm:$0xff] }
 0xdf8   :  { %2876 = vmatpush1.bf16.msra.mxu1 %v5315_v15  ;;  %2917 = vmatpush1.bf16.msra.mxu0 %v5318_v28  ;;  %v5958_v15 = vld [vmem:[#allocation20_spill] sm:$0xff] }
 0xdf9   :  { %2877 = vmatprep.subr.bf16.mxu1 %v5321_v29  ;;  %2918 = vmatprep.subr.bf16.mxu0 %v5324_v30  ;;  %v5959_v29 = vld [vmem:[#allocation22_spill] sm:$0xff] }
 0xdfc   :  { %2878 = vmatpush1.bf16.msra.mxu1 %v5327_v21  ;;  %2919 = vmatpush1.bf16.msra.mxu0 %v5330_v5  ;;  %v5961_v21 = vld [vmem:[#allocation24_spill] sm:$0xff] }
 0xdfd   :  { %2879 = vmatprep.subr.bf16.mxu1 %v5333_v36  ;;  %2920 = vmatprep.subr.bf16.mxu0 %v5953_v6  ;;  %v5963_v36 = vld [vmem:[#allocation26_spill] sm:$0xff] }
 0xe00   :  { %2880 = vmatpush1.bf16.msra.mxu1 %v5954_v57  ;;  %2921 = vmatpush1.bf16.msra.mxu0 %v5955_v10 }
 0xe01   :  { %2881 = vmatprep.subr.bf16.mxu1 %v5956_v41  ;;  %2922 = vmatprep.subr.bf16.mxu0 %v5957_v37 }
 0xe04   :  { %2882 = vmatpush1.bf16.msra.mxu1 %v5958_v15  ;;  %2923 = vmatpush1.bf16.msra.mxu0 %v5959_v29 }
 0xe05   :  { %2883 = vmatprep.subr.bf16.mxu1 %v5960_v20  ;;  %2924 = vmatprep.subr.bf16.mxu0 %v5961_v21  ;;  %v5970_v20 = vld [vmem:[#allocation34_spill] sm:$0xff] }
 0xe08   :  { %2884 = vmatpush1.bf16.msra.mxu1 %v5962_v23  ;;  %2925 = vmatpush1.bf16.msra.mxu0 %v5963_v36 }
 0xe09   :  { %2885 = vmatprep.subr.bf16.mxu1 %v5964_v4  ;;  %2926 = vmatprep.subr.bf16.mxu0 %v5965_v49 }
 0xe0c   :  { %2886 = vmatpush1.bf16.msra.mxu1 %v5966_v55  ;;  %2927 = vmatpush1.bf16.msra.mxu0 %v5967_v54 }
 0xe0d   :  { %2953 = vmatprep.subr.bf16.mxu1 %v5968_v42  ;;  %3696 = vmatprep.subr.bf16.mxu0 %v5837_v53 }
 0xe8f   :  { %v2716_v17 = vpop.f32.mrf.mxu1  ;;  %v2757_v19 = vpop.f32.mrf.mxu0 }
 0xe90   :  { %v2717_v29 = vadd.f32 %v2716_v17, %v4877_v18 }
 0xe91   :  { %v2718_v25 = vpop.f32.mrf.mxu1  ;;  %v2759_v56 = vpop.f32.mrf.mxu0 }
 0xe92   :  { %v2760_v57 = vadd.f32 %v2759_v56, %v5969_v26 }
 0xe93   :  { %v2720_v41 = vpop.f32.mrf.mxu1  ;;  %v2761_v15 = vpop.f32.mrf.mxu0 }
 0xe94   :  { %v5627_v23 = vadd.f32 %v2760_v57, %v5970_v20 }
 0xe95   :  { %v2721_v4 = vpop.f32.mrf.mxu1  ;;  %v2762_v49 = vpop.f32.mrf.mxu0 }
 0xe96   :  { %5971 = vst [vmem:[#allocation35_spill] sm:$0xff] %v5627_v23  ;;  %3118 = vrot.lane.b32.xlu0 %v5627_v23, %s4182_s2 }
 0xeaf   :  { %v2798_v55 = vpop.f32.mrf.mxu1  ;;  %v2839_v42 = vpop.f32.mrf.mxu0 }
 0xeb0   :  { %v2799_v54 = vadd.f32 %v2798_v55, %v5024_v43  ;;  %v2719_v55 = vadd.f32 %v2718_v25, %v4882_v24 }
 0xeb1   :  { %v2800_v36 = vpop.f32.mrf.mxu1  ;;  %v3694_v21 = vpop.f32.mrf.mxu0 }
 0xeb2   :  { %v5633_v56 = vadd.f32 %v2799_v54, %v5526_v14  ;;  %v2801_v41 = vadd.f32 %v2800_v36, %v5027_v1 }
 0xeb3   :  { %v2802_v57 = vpop.f32.mrf.mxu1  ;;  %v2842_v15 = vpop.f32.mrf.mxu0 }
 0xeb4   :  { %v2849_v49 = vadd.f32 %v5633_v56, %v2717_v29  ;;  %v5638_v26 = vadd.f32 %v2801_v41, %v5531_v9  ;;  %v2840_v57 = vadd.f32 %v2839_v42, %v5043_v22  ;;  %v2758_v15 = vadd.f32 %v2757_v19, %v4889_v33 }
 0xeb5   :  { %v2803_v20 = vpop.f32.mrf.mxu1  ;;  %v3695_v4 = vpop.f32.mrf.mxu0 }
 0xeb6   :  { %v3283_v23 = vmul.f32 -1.442695, %v2849_v49  ;;  %v2856_v21 = vadd.f32 %v5638_v26, %v2719_v55  ;;  %v5645_v9 = vadd.f32 %v2840_v57, %v5538_v50 }
 0xeb8   :  { %3985 = vpow2.f32 %v3283_v23  ;;  %v3284_v17 = vmul.f32 -1.442695, %v2856_v21 }
 0xeba   :  { %3987 = vpow2.f32 %v3284_v17 }
 0xec5   :  { %v3986_v14 = vpop.eup %3985 }
 0xec6   :  { %v2853_v54 = vadd.f32 1.0, %v3986_v14 }
 0xec7   :  { %v3988_v36 = vpop.eup %3987 }
 0xec8   :  { %3989 = vrcp.f32 %v2853_v54  ;;  %v2860_v29 = vadd.f32 1.0, %v3988_v36 }
 0xeca   :  { %3991 = vrcp.f32 %v2860_v29 }
 0xed5   :  { %v3990_v49 = vpop.eup %3989 }
 0xed6   :  { %v2863_v41 = vmul.f32 %v3990_v49, %v2758_v15 }
 0xed7   :  { %v3992_v23 = vpop.eup %3991 }
 0xed8   :  { %v2864_v25 = vadd.f32 %v2863_v41, %v5645_v9  ;;  %v2866_v20 = vsub.f32 1.0, %v3992_v23  ;;  %v2868_v21 = vmul.f32 %v3992_v23, %v5542_v35 }
 0xeda   :  { %3993 = vtanh.f32 %v2864_v25 }
 0xee7   :  { %v3994_v4 = vpop.eup %3993 }
 0xee8   :  { %v2867_v55 = vmul.f32 %v3994_v4, %v2866_v20  ;;  %v3103_v20 = vpop.permute.xlu0 %3102  ;;  %v3111_v4 = vpop.permute.xlu1 %3110 }
 0xeea   :  { %v5649_v17 = vadd.f32 %v2868_v21, %v2867_v55 }
 0xeec   :  { %v2870_v19 = vpack.c.bf16 %v5649_v17, %v5649_v17  ;;  %v3107_v55 = vpop.permute.xlu0 %3106  ;;  %v3115_v21 = vpop.permute.xlu1 %3114 }
 0xeee   :  { %2904 = vmatmul.mubr.bf16.vlgmr.msra.gmra.mxu1 %v2870_v19  ;;  %2945 = vmatmul.mubr.bf16.vlgmr.msra.gmra.mxu0 %v2870_v19 }
 0xeef   :  { %2954 = vmatpush1.bf16.msra.mxu1 %v5413_v40  ;;  %3697 = vmatpush3.bf16.msra.mxu0 %v5416_v32 }
 0xef0   :  { %2955 = vmatprep.subr.bf16.mxu1 %v5419_v31  ;;  %3698 = vmatprep.subr.bf16.mxu0 %v5837_v53 }
 0xef1   :  { %2985 = vmatprep.mubr.bf16.mxu1 %v5838_v61  ;;  %3712 = vmatprep.mubr.msk.bf16.mxu0 %vm4177_vm1, %v5837_v53 }
 0xef3   :  { %2956 = vmatpush1.bf16.msra.mxu1 %v5426_v38  ;;  %3699 = vmatpush3.bf16.msra.mxu0 %v5429_v51  ;;  %v5978_v38 = vld [vmem:[#allocation35_spill] sm:$0xff] }
 0xef4   :  { %2957 = vmatprep.subr.bf16.mxu1 %v5432_v63  ;;  %3700 = vmatprep.subr.bf16.mxu0 %v5837_v53 }
 0xef7   :  { %2958 = vmatpush1.bf16.msra.mxu1 %v5436_v62  ;;  %3701 = vmatpush3.bf16.msra.mxu0 %v5439_v39 }
 0xef8   :  { %2959 = vmatprep.subr.bf16.mxu1 %v5442_v27  ;;  %3702 = vmatprep.subr.bf16.mxu0 %v5837_v53 }
 0xefb   :  { %2960 = vmatpush1.bf16.msra.mxu1 %v5446_v44  ;;  %3703 = vmatpush3.bf16.msra.mxu0 %v5449_v58 }
 0xefc   :  { %2961 = vmatprep.subr.bf16.mxu1 %v5952_v0  ;;  %3704 = vmatprep.subr.bf16.mxu0 %v5837_v53 }
 0xeff   :  { %2962 = vmatpush1.bf16.msra.mxu1 %v5456_v60  ;;  %3705 = vmatpush3.bf16.msra.mxu0 %v5459_v2 }
 0xf00   :  { %2963 = vmatprep.subr.bf16.mxu1 %v5462_v12  ;;  %3706 = vmatprep.subr.bf16.mxu0 %v5837_v53 }
 0xf03   :  { %2964 = vmatpush1.bf16.msra.mxu1 %v5466_v46  ;;  %3707 = vmatpush3.bf16.msra.mxu0 %v5469_v45 }
 0xf04   :  { %2965 = vmatprep.subr.bf16.mxu1 %v5472_v8  ;;  %3708 = vmatprep.subr.bf16.mxu0 %v5837_v53 }
 0xf07   :  { %2966 = vmatpush1.bf16.msra.mxu1 %v5573_v13  ;;  %3709 = vmatpush3.bf16.msra.mxu0 %v5576_v7 }
 0xf08   :  { %2967 = vmatprep.subr.bf16.mxu1 %v5579_v59  ;;  %3710 = vmatprep.subr.bf16.mxu0 %v5837_v53  ;;  %v5972_v53 = vld [vmem:[#allocation22_spill] sm:$0xff] }
 0xf0b   :  { %2968 = vmatpush1.bf16.msra.mxu1 %v5583_v16  ;;  %3711 = vmatpush3.bf16.msra.mxu0 %v5586_v47 }
 0xf0c   :  { %3060 = vmatprep.subr.bf16.mxu1 %v5286_v48  ;;  %v5974_v48 = vld [vmem:[#allocation26_spill] sm:$0xff] }
 0xf0e   :  { %2986 = vmatmul.mubr.bf16.vlgmr.msra.gmra.mxu1 %v2870_v19  ;;  %3713 = vmatmul.mubr.bf16.vlgmr.msra.gmra.mxu0 %v2870_v19  ;;  %v5979_v19 = vld [vmem:[#allocation21_spill] sm:$0xff] }
 0xf0f   :  { %3061 = vmatpush1.bf16.msra.mxu1 %v5292_v3  ;;  %3092 = vmatprep.mubr.bf16.mxu1 %v5838_v61  ;;  %v5973_v61 = vld [vmem:[#allocation24_spill] sm:$0xff] }
 0xf10   :  { %3062 = vmatprep.subr.bf16.mxu1 %v5298_v52  ;;  %v5975_v3 = vld [vmem:[#allocation28_spill] sm:$0xff]  ;;  %v5976_v52 = vld [vmem:[#allocation30_spill] sm:$0xff] }
 0xf13   :  { %3063 = vmatpush1.bf16.msra.mxu1 %v5306_v11 }
 0xf14   :  { %3064 = vmatprep.subr.bf16.mxu1 %v5312_v34 }
 0xf17   :  { %3065 = vmatpush1.bf16.msra.mxu1 %v5318_v28 }
 0xf18   :  { %3066 = vmatprep.subr.bf16.mxu1 %v5324_v30 }
 0xf1b   :  { %3067 = vmatpush1.bf16.msra.mxu1 %v5330_v5  ;;  %v5977_v5 = vld [vmem:[#allocation19_spill] sm:$0xff] }
 0xf1c   :  { %3068 = vmatprep.subr.bf16.mxu1 %v5953_v6 }
 0xf1f   :  { %3069 = vmatpush1.bf16.msra.mxu1 %v5955_v10 }
 0xf20   :  { %3070 = vmatprep.subr.bf16.mxu1 %v5957_v37 }
 0xf23   :  { %3071 = vmatpush1.bf16.msra.mxu1 %v5972_v53 }
 0xf24   :  { %3072 = vmatprep.subr.bf16.mxu1 %v5973_v61  ;;  %v3119_v61 = vpop.permute.xlu0 %3118 }
 0xf27   :  { %3073 = vmatpush1.bf16.msra.mxu1 %v5974_v48 }
 0xf28   :  { %3074 = vmatprep.subr.bf16.mxu1 %v5975_v3 }
 0xf2b   :  { %3075 = vmatpush1.bf16.msra.mxu1 %v5976_v52 }
 0xfae   :  { %v2905_v11 = vpop.f32.mrf.mxu1  ;;  %v2946_v34 = vpop.f32.mrf.mxu0 }
 0xfaf   :  { %v2906_v60 = vadd.f32 %v2905_v11, %v4877_v18  ;;  %v2947_v37 = vadd.f32 %v2946_v34, %v4889_v33 }
 0xfb0   :  { %v2907_v28 = vpop.f32.mrf.mxu1  ;;  %v2948_v30 = vpop.f32.mrf.mxu0 }
 0xfb1   :  { %v2949_v40 = vadd.f32 %v2948_v30, %v5977_v5  ;;  %v2908_v59 = vadd.f32 %v2907_v28, %v4882_v24 }
 0xfb2   :  { %v2909_v32 = vpop.f32.mrf.mxu1  ;;  %v2950_v31 = vpop.f32.mrf.mxu0 }
 0xfb3   :  { %v3034_v51 = vadd.f32 %v2949_v40, %v5978_v38 }
 0xfb4   :  { %v2910_v63 = vpop.f32.mrf.mxu1  ;;  %v2951_v62 = vpop.f32.mrf.mxu0 }
 0xfb5   :  { %3122 = vrot.lane.b32.xlu1 %v3034_v51, %s4183_s28 }
 0xfce   :  { %v2987_v39 = vpop.f32.mrf.mxu1  ;;  %v3028_v27 = vpop.f32.mrf.mxu0 }
 0xfcf   :  { %v2988_v44 = vadd.f32 %v2987_v39, %v5024_v43 }
 0xfd0   :  { %v2989_v58 = vpop.f32.mrf.mxu1  ;;  %v3714_v8 = vpop.f32.mrf.mxu0 }
 0xfd1   :  { %v3035_v2 = vadd.f32 %v2988_v44, %v5633_v56  ;;  %v2990_v12 = vadd.f32 %v2989_v58, %v5027_v1  ;;  %v3029_v1 = vadd.f32 %v3028_v27, %v5043_v22 }
 0xfd2   :  { %v2991_v46 = vpop.f32.mrf.mxu1  ;;  %v3031_v45 = vpop.f32.mrf.mxu0 }
 0xfd3   :  { %v3038_v50 = vadd.f32 %v3035_v2, %v2906_v60  ;;  %v3036_v7 = vadd.f32 %v2990_v12, %v5638_v26  ;;  %v3037_v56 = vadd.f32 %v3029_v1, %v5645_v9 }
 0xfd4   :  { %v2992_v35 = vpop.f32.mrf.mxu1  ;;  %v3715_v0 = vpop.f32.mrf.mxu0 }
 0xfd5   :  { %v3285_v13 = vmul.f32 -1.442695, %v3038_v50  ;;  %v3045_v43 = vadd.f32 %v3036_v7, %v2908_v59 }
 0xfd7   :  { %3995 = vpow2.f32 %v3285_v13  ;;  %v3286_v16 = vmul.f32 -1.442695, %v3045_v43 }
 0xfd9   :  { %3997 = vpow2.f32 %v3286_v16 }
 0xfe4   :  { %v3996_v47 = vpop.eup %3995 }
 0xfe5   :  { %v3042_v18 = vadd.f32 1.0, %v3996_v47 }
 0xfe6   :  { %v3998_v6 = vpop.eup %3997 }
 0xfe7   :  { %3999 = vrcp.f32 %v3042_v18  ;;  %v3049_v10 = vadd.f32 1.0, %v3998_v6 }
 0xfe9   :  { %4001 = vrcp.f32 %v3049_v10 }
 0xff4   :  { %v4000_v42 = vpop.eup %3999 }
 0xff5   :  { %v3052_v14 = vmul.f32 %v4000_v42, %v2947_v37 }
 0xff6   :  { %v4002_v24 = vpop.eup %4001 }
 0xff7   :  { %v3053_v26 = vadd.f32 %v3052_v14, %v3037_v56  ;;  %v3055_v54 = vsub.f32 1.0, %v4002_v24  ;;  %v3057_v29 = vmul.f32 %v4002_v24, %v5649_v17  ;;  %v3129_v17 = vsel %vm155_vm0, %v5979_v19, %v3103_v20 }
 0xff8   :  { %v3131_v53 = vsel %vm3130_vm2, %v3129_v17, %v3107_v55 }
 0xff9   :  { %4003 = vtanh.f32 %v3053_v26  ;;  %v3133_v48 = vsel %vm3132_vm3, %v3131_v53, %v3111_v4 }
 0xffa   :  { %v3135_v52 = vsel %vm3134_vm4, %v3133_v48, %v3115_v21 }
 0xffb   :  { %v3137_v11 = vsel %vm3136_vm5, %v3135_v52, %v3119_v61 }
0x1006   :  { %v4004_v36 = vpop.eup %4003 }
0x1007   :  { %v3056_v57 = vmul.f32 %v4004_v36, %v3055_v54 }
0x1009   :  { %v3058_v15 = vadd.f32 %v3057_v29, %v3056_v57 }
0x100b   :  { %v3059_v49 = vpack.c.bf16 %v3058_v15, %v3058_v15 }
0x100d   :  { %3093 = vmatmul.mubr.bf16.vlgmr.msra.gmra.mxu1 %v3059_v49 }
0x1027   :  { %v3123_v3 = vpop.permute.xlu1 %3122 }
0x1028   :  { %v3139_v34 = vsel %vm3138_vm6, %v3137_v11, %v3123_v3 }
0x10cd   :  { %v3094_v22 = vpop.f32.mrf.mxu1 }
0x10cf   :  { %v3095_v41 = vpop.f32.mrf.mxu1 }
0x10d0   :  { %v3096_v33 = vadd.f32 %v3095_v41, %v5977_v5 }
0x10d1   :  { %v3097_v25 = vpop.f32.mrf.mxu1 }
0x10d2   :  { %v3100_v23 = vadd.f32 %v3096_v33, %v3034_v51 }
0x10d3   :  { %v3098_v9 = vpop.f32.mrf.mxu1 }
0x10d4   :  { %3126 = vrot.lane.b32.xlu0 %v3100_v23, %s4184_s29 }
0x1146   :  { %v3127_v28 = vpop.permute.xlu0 %3126 }
0x1147   :  { %v3141_v30 = vsel %vm3140_vm7, %v3139_v34, %v3127_v28 }
0x1148   :  { %3142 = vst [vmem:[#allocation8] sm:$0xff] %v3141_v30 }
0x1149   :  { %4153 = shalt.err (!%p4150_p5)
}
0x114a   :  { %3152 = dma.vmem_to_hbm [thread:$0]  %s3150_s10, 128, %s5730_s9, [#allocation4]  }
0x114b   :  { %4166 = dma.done.wait [#allocation4], 128  }
0x114c   :  { %4167 = vsyncadd [#allocation4], 4294967168 }
0x114d   :  { %3156 = vsyncpa [#allocation3], 1 }
0x114e   :  { %3157 = vsyncpa [#allocation6], 1 }
0x114f   :  { %3158 = vsyncpa [#allocation4], 1 }

</bundles_post_ra>
